<compile_context>
chip_gen: v7x
topology: tpu7x:2x2x1
jax: 0.10.0
libtpu: 0.0.40
codegen_flags: <defaults>
</compile_context>

<pallas_src>
import math

import jax
import jax.numpy as jnp
from jax import lax
from jax.experimental import pallas as pl
from jax.experimental.pallas import tpu as pltpu

_LANE = 128
_SUBLANE = 8
_MIB = 1024 * 1024


def _round_up(x, m):
    return ((x + m - 1) // m) * m


def _make_attention_kernel(scale, with_mask, binary_mask, matmul_dtype,
                           lk_valid, lk_pad):
    """Build the kernel body (masked / unmasked, exact-f32 / bf16-MXU variants)."""
    pad_cols = lk_pad > lk_valid

    def kernel(*refs):
        if with_mask:
            q_ref, k_ref, v_ref, mask_ref, out_ref, attn_ref = refs
        else:
            q_ref, k_ref, v_ref, out_ref, attn_ref = refs

        # Fold 1/sqrt(d_k) into Q (tq*D multiplies instead of tq*Lk), in f32
        # before any narrow-precision cast.
        q = q_ref[...].astype(jnp.float32) * scale     # (TQ, D)
        k = k_ref[...]                                  # (Lk, D)  resident across q tiles
        v = v_ref[...]                                  # (Lk, Dv) resident across q tiles

        if matmul_dtype is not None:
            q = q.astype(matmul_dtype)
            if k.dtype != matmul_dtype:
                k = k.astype(matmul_dtype)

        # scores = q @ k^T : contract over D of both operands (no XLU transpose),
        # f32 accumulation on the MXU.
        scores = lax.dot_general(
            q, k,
            dimension_numbers=(((1,), (1,)), ((), ())),
            preferred_element_type=jnp.float32,
        )

        if with_mask:
            m = mask_ref[...]
            if binary_mask:
                # 0/1 mask: compare+select instead of cast+mul+add.
                scores = jnp.where(m != 0, scores - 1e9, scores)
            else:
                # Arbitrary additive mask (exactly matches scores += -1e9*mask).
                scores = scores + (-1e9) * m.astype(jnp.float32)

        if pad_cols:
            # Padded key columns (Lk -> Lk_pad) must never win the softmax.
            col = lax.broadcasted_iota(jnp.int32, scores.shape, 1)
            scores = jnp.where(col < lk_valid, scores, jnp.float32(-1e30))

        # Numerically stable softmax over the last dim.
        row_max = jnp.max(scores, axis=-1, keepdims=True)
        e = jnp.exp(scores - row_max)
        denom = jnp.sum(e, axis=-1, keepdims=True)
        r = pl.reciprocal(denom, approx=True)   # EUP
        r = r * (2.0 - denom * r)               # one Newton step -> ~f32 accuracy
        attn = e * r

        # PV matmul dtype (always f32 accumulation on the MXU).
        pv_dtype = jnp.dtype(matmul_dtype) if matmul_dtype is not None else v.dtype
        if attn_ref.dtype == pv_dtype:
            # Single cast reused for both the attn store and the PV lhs.
            attn_cast = attn.astype(pv_dtype)
            attn_ref[...] = attn_cast
            pv_lhs = attn_cast
        else:
            attn_ref[...] = attn.astype(attn_ref.dtype)
            pv_lhs = attn.astype(pv_dtype)

        if v.dtype != pv_dtype:
            v = v.astype(pv_dtype)

        out = jnp.dot(pv_lhs, v, preferred_element_type=jnp.float32)
        out_ref[...] = out.astype(out_ref.dtype)

    return kernel


def dot_product_attention(queries, keys, values, d_k, mask=None, *,
                          q_tile=None, matmul_dtype=jnp.bfloat16,
                          attn_dtype=None, out_dtype=None, binary_mask=True):
    """Pallas equivalent of DotProductAttention.forward -> (output, attention).

    matmul_dtype: MXU operand dtype (f32 accumulation). bf16 by default (4-8x
      MXU rate vs f32 on v5e/v6e/v7x); pass jnp.float32 (or None) for an exact
      f32 path.
    attn_dtype / out_dtype: output dtypes (default: queries.dtype). Passing
      bf16 for attn halves the dominant (B, Lq, Lk) HBM writeback stream.
    binary_mask: True -> mask holds only 0/1 (compare+select); set False for an
      arbitrary additive mask (exactly `scores += -1e9 * mask`).
    """
    B, Lq, D = queries.shape
    Bk, Lk, Dk = keys.shape
    Bv, Lkv, Dv = values.shape
    assert Bk == B and Bv == B and Lkv == Lk and Dk == D

    # d_k is static -> fold the scale into the kernel as a constant.
    scale = 1.0 / math.sqrt(float(d_k))
    attn_dtype = queries.dtype if attn_dtype is None else jnp.dtype(attn_dtype)
    out_dtype = queries.dtype if out_dtype is None else jnp.dtype(out_dtype)

    # Keep the attn/out last dims lane-dense: pad Lk to a multiple of 128
    # (padded key columns are masked out inside the kernel).
    Lk_pad = _round_up(Lk, _LANE)

    # Mask: keep the caller's (narrow) dtype; never broadcast to (B, Lq, Lk) in
    # HBM. A 2-D (Lq, Lk) mask is shared across the batch via its index_map.
    with_mask = mask is not None
    mask_is_2d = False
    mask_itemsize = 0
    if with_mask:
        mask = jnp.asarray(mask)
        if mask.ndim == 3 and mask.shape[0] == 1:
            mask = mask[0]
        if mask.ndim == 2:
            mask_is_2d = True
            assert mask.shape == (Lq, Lk)
        else:
            assert mask.shape == (B, Lq, Lk)
        mask_itemsize = mask.dtype.itemsize

    # ---- VMEM budget (v5e/v6e: 128 MiB physical, v7x: 64 MiB per core) ------
    try:
        phys_vmem = int(getattr(pltpu.get_tpu_info(), "vmem_capacity_bytes",
                                64 * _MIB))
    except Exception:
        phys_vmem = 64 * _MIB        # conservative (v7x per-core)
    vmem_cap = int(phys_vmem * 0.75)

    def footprint(tq, kv_bufs):
        f = 2 * tq * D * queries.dtype.itemsize                 # Q tile (dbl buf)
        f += kv_bufs * Lk_pad * D * keys.dtype.itemsize         # resident K
        f += kv_bufs * Lk_pad * Dv * values.dtype.itemsize      # resident V
        f += 2 * tq * Dv * out_dtype.itemsize                   # out tile
        f += 2 * tq * Lk_pad * attn_dtype.itemsize              # attn tile
        if with_mask:
            f += 2 * tq * Lk_pad * mask_itemsize                 # mask tile
        f += 4 * tq * Lk_pad * 4                                 # f32 softmax temps
        return f

    # ---- q tile: 256 fills the 256-wide MXU (v6e/v7x) and amortizes the
    # ~0.35us/step pipeline overhead; drop to 128 only if VMEM-bound.
    if q_tile is not None:
        assert q_tile % _SUBLANE == 0, "q_tile must be a multiple of 8"
        tq = q_tile
    elif Lq <= 256:
        tq = _round_up(Lq, _SUBLANE)
    else:
        tq = 128
        for cand in (256, 128):
            if int(1.3 * footprint(cand, 1)) <= vmem_cap:
                tq = cand
                break
    Lq_pad = _round_up(Lq, tq)

    # TODO(synk): for Lk where resident K+V no longer fit VMEM (notably v7x's
    # 64 MiB), add a KV-streamed variant (kv grid axis + running max/denominator
    # scratch) instead of holding the full K/V per batch element.

    # ---- pad inputs along the sequence dims (no-op at aligned shapes) --------
    def pad_seq(x, l_pad):
        p = l_pad - x.shape[1]
        return jnp.pad(x, ((0, 0), (0, p), (0, 0))) if p else x

    q_p = pad_seq(queries, Lq_pad)
    k_p = pad_seq(keys, Lk_pad)
    v_p = pad_seq(values, Lk_pad)

    if with_mask:
        pq, pk = Lq_pad - Lq, Lk_pad - Lk
        if pq or pk:
            if mask_is_2d:
                mask = jnp.pad(mask, ((0, pq), (0, pk)))
            else:
                mask = jnp.pad(mask, ((0, 0), (0, pq), (0, pk)))

    mm_dtype = None if matmul_dtype is None else jnp.dtype(matmul_dtype)
    kernel = _make_attention_kernel(scale, with_mask, binary_mask, mm_dtype,
                                    Lk, Lk_pad)

    args = [q_p, k_p, v_p]
    if with_mask:
        args.append(mask)

    def run(kv_single_buffer):
        # K/V block index is constant across q tiles -> single-buffer them
        # (Buffered(1)) to halve their resident VMEM footprint.
        kv_kwargs = {"pipeline_mode": pl.Buffered(1)} if kv_single_buffer else {}
        in_specs = [
            pl.BlockSpec((pl.Squeezed(), tq, D), lambda b, qi: (b, qi, 0)),
            pl.BlockSpec((pl.Squeezed(), Lk_pad, D),
                         lambda b, qi: (b, 0, 0), **kv_kwargs),
            pl.BlockSpec((pl.Squeezed(), Lk_pad, Dv),
                         lambda b, qi: (b, 0, 0), **kv_kwargs),
        ]
        if with_mask:
            if mask_is_2d:
                # Shared across the batch: index_map ignores b.
                in_specs.append(
                    pl.BlockSpec((tq, Lk_pad), lambda b, qi: (qi, 0)))
            else:
                in_specs.append(
                    pl.BlockSpec((pl.Squeezed(), tq, Lk_pad),
                                 lambda b, qi: (b, qi, 0)))
        out_specs = [
            pl.BlockSpec((pl.Squeezed(), tq, Dv), lambda b, qi: (b, qi, 0)),
            pl.BlockSpec((pl.Squeezed(), tq, Lk_pad), lambda b, qi: (b, qi, 0)),
        ]
        kv_bufs = 1 if kv_single_buffer else 2
        vmem_limit = max(32 * _MIB,
                         min(int(1.3 * footprint(tq, kv_bufs)), vmem_cap))
        grid_spec = pltpu.PrefetchScalarGridSpec(
            num_scalar_prefetch=0,
            grid=(B, Lq_pad // tq),
            in_specs=in_specs,
            out_specs=out_specs,
        )
        fn = pl.pallas_call(
            kernel,
            grid_spec=grid_spec,
            out_shape=(
                jax.ShapeDtypeStruct((B, Lq_pad, Dv), out_dtype),
                jax.ShapeDtypeStruct((B, Lq_pad, Lk_pad), attn_dtype),
            ),
            compiler_params=pltpu.CompilerParams(
                dimension_semantics=("parallel", "parallel"),
                vmem_limit_bytes=vmem_limit,
            ),
        )
        return fn(*args)

    try:
        out, attn = run(True)
    except Exception:
        # Fall back to default double-buffered K/V if Buffered(1) is rejected.
        out, attn = run(False)

    if Lq_pad != Lq or Lk_pad != Lk:
        out = out[:, :Lq, :]
        attn = attn[:, :Lq, :Lk]
    return out, attn


def _reference(queries, keys, values, d_k, mask=None):
    scores = jnp.matmul(queries, jnp.swapaxes(keys, -1, -2)) / jnp.sqrt(
        jnp.asarray(d_k, jnp.float32))
    if mask is not None:
        scores = scores + (-1e9) * mask.astype(jnp.float32)
    attn = jax.nn.softmax(scores, axis=-1)
    return jnp.matmul(attn, values), attn


if __name__ == "__main__":
    key = jax.random.PRNGKey(0)
    kq, kk, kv = jax.random.split(key, 3)

    # Lane-dense shapes: D, Dv, Lk are multiples of 128.
    B, Lq, Lk, D, Dv = 2, 256, 256, 128, 128
    d_k = float(D)

    queries = jax.random.normal(kq, (B, Lq, D), dtype=jnp.float32)
    keys = jax.random.normal(kk, (B, Lk, D), dtype=jnp.float32)
    values = jax.random.normal(kv, (B, Lk, Dv), dtype=jnp.float32)

    # Narrow-dtype (int8) 0/1 causal mask, shared across the batch (kept 2-D).
    mask_i8 = jnp.triu(jnp.ones((Lq, Lk), dtype=jnp.int8), k=1)
    mask3 = jnp.broadcast_to(mask_i8, (B, Lq, Lk))
    ref_out, ref_attn = _reference(queries, keys, values, d_k, mask3)

    # --- exact f32 MXU path, shared 2-D int8 mask, tiled over Lq -------------
    out, attn = dot_product_attention(queries, keys, values, d_k, mask_i8,
                                      q_tile=128, matmul_dtype=jnp.float32)
    out = jax.block_until_ready(out)
    attn = jax.block_until_ready(attn)
    assert out.shape == (B, Lq, Dv) and attn.shape == (B, Lq, Lk)
    assert jnp.allclose(out, ref_out, atol=1e-5, rtol=1e-5)
    assert jnp.allclose(attn, ref_attn, atol=1e-5, rtol=1e-5)

    # --- mask=None path (dedicated no-mask kernel, no zero tensor DMA) -------
    out2, attn2 = dot_product_attention(queries, keys, values, d_k, None,
                                        matmul_dtype=jnp.float32)
    ref_out2, ref_attn2 = _reference(queries, keys, values, d_k, None)
    assert jnp.allclose(jax.block_until_ready(out2), ref_out2, atol=1e-5, rtol=1e-5)
    assert jnp.allclose(jax.block_until_ready(attn2), ref_attn2, atol=1e-5, rtol=1e-5)

    # --- default perf path: bf16 MXU (f32 accum) + bf16 attn writeback -------
    out3, attn3 = dot_product_attention(queries, keys, values, d_k, mask_i8,
                                        attn_dtype=jnp.bfloat16)
    out3 = jax.block_until_ready(out3)
    attn3 = jax.block_until_ready(attn3)
    assert attn3.dtype == jnp.bfloat16
    assert jnp.allclose(out3, ref_out, atol=5e-2, rtol=5e-2)
    assert jnp.allclose(attn3.astype(jnp.float32), ref_attn, atol=5e-2, rtol=5e-2)

    # --- non-aligned shapes: Lk padding + per-batch 3-D float mask ------------
    B2, Lq2, Lk2, D2, Dv2 = 2, 200, 200, 64, 128
    kq2, kk2, kv2 = jax.random.split(jax.random.PRNGKey(1), 3)
    q2 = jax.random.normal(kq2, (B2, Lq2, D2), dtype=jnp.float32)
    k2 = jax.random.normal(kk2, (B2, Lk2, D2), dtype=jnp.float32)
    v2 = jax.random.normal(kv2, (B2, Lk2, Dv2), dtype=jnp.float32)
    m2 = jnp.broadcast_to(
        jnp.triu(jnp.ones((Lq2, Lk2), dtype=jnp.float32), k=1), (B2, Lq2, Lk2))
    out4, attn4 = dot_product_attention(q2, k2, v2, float(D2), m2,
                                        matmul_dtype=jnp.float32)
    ref_out4, ref_attn4 = _reference(q2, k2, v2, float(D2), m2)
    assert out4.shape == (B2, Lq2, Dv2) and attn4.shape == (B2, Lq2, Lk2)
    assert jnp.allclose(jax.block_until_ready(out4), ref_out4, atol=1e-5, rtol=1e-5)
    assert jnp.allclose(jax.block_until_ready(attn4), ref_attn4, atol=1e-5, rtol=1e-5)

    print("KERNEL_OK")
</pallas_src>

<mosaic_0001>
module attributes {stable_mosaic.version = 11 : i64} {
  func.func @kernel(%arg0: i32, %arg1: i32, %arg2: memref<1x128x128xf32, #tpu.memory_space<vmem>>, %arg3: memref<1x256x128xf32, #tpu.memory_space<vmem>>, %arg4: memref<1x256x128xf32, #tpu.memory_space<vmem>>, %arg5: memref<128x256xi8, #tpu.memory_space<vmem>>, %arg6: memref<1x128x128xf32, #tpu.memory_space<vmem>>, %arg7: memref<1x128x256xf32, #tpu.memory_space<vmem>>) attributes {dimension_semantics = [#tpu.dimension_semantics<parallel>, #tpu.dimension_semantics<parallel>], iteration_bounds = array<i64: 2, 2>, scalar_prefetch = 0 : i64, scratch_operands = 0 : i64, tpu.core_type = #tpu.core_type<tc>, window_params = [{transform_indices = @transform_0, window_bounds = array<i64: 1, 128, 128>}, {pipeline_mode = #tpu.pipeline_mode<synchronous>, transform_indices = @transform_1, window_bounds = array<i64: 1, 256, 128>}, {pipeline_mode = #tpu.pipeline_mode<synchronous>, transform_indices = @transform_2, window_bounds = array<i64: 1, 256, 128>}, {transform_indices = @transform_3, window_bounds = array<i64: 128, 256>}, {transform_indices = @transform_4, window_bounds = array<i64: 1, 128, 128>}, {transform_indices = @transform_5, window_bounds = array<i64: 1, 128, 256>}]} {
    %c0 = arith.constant 0 : index
    %c0_0 = arith.constant 0 : index
    %c0_1 = arith.constant 0 : index
    %0 = vector.load %arg2[%c0, %c0_0, %c0_1] : memref<1x128x128xf32, #tpu.memory_space<vmem>>, vector<1x128x128xf32>
    %1 = vector.shape_cast %0 : vector<1x128x128xf32> to vector<128x128xf32>
    %cst = arith.constant 0.0883883461 : f32
    %2 = vector.broadcast %cst : f32 to vector<128x128xf32>
    %3 = arith.mulf %1, %2 : vector<128x128xf32>
    %c0_2 = arith.constant 0 : index
    %c0_3 = arith.constant 0 : index
    %c0_4 = arith.constant 0 : index
    %4 = vector.load %arg3[%c0_2, %c0_3, %c0_4] : memref<1x256x128xf32, #tpu.memory_space<vmem>>, vector<1x256x128xf32>
    %5 = vector.shape_cast %4 : vector<1x256x128xf32> to vector<256x128xf32>
    %c0_5 = arith.constant 0 : index
    %c0_6 = arith.constant 0 : index
    %c0_7 = arith.constant 0 : index
    %6 = vector.load %arg4[%c0_5, %c0_6, %c0_7] : memref<1x256x128xf32, #tpu.memory_space<vmem>>, vector<1x256x128xf32>
    %7 = vector.shape_cast %6 : vector<1x256x128xf32> to vector<256x128xf32>
    %cst_8 = arith.constant dense<0.000000e+00> : vector<128x256xf32>
    %8 = tpu.matmul %3, %5, %cst_8 {dimension_numbers = #tpu.dot_dimension_numbers<[1], [1], [0], [0], [0, 0, 1, 0], [], []>} : vector<128x128xf32>, vector<256x128xf32>, vector<128x256xf32> -> vector<128x256xf32>
    %c0_9 = arith.constant 0 : index
    %c0_10 = arith.constant 0 : index
    %9 = vector.load %arg5[%c0_9, %c0_10] : memref<128x256xi8, #tpu.memory_space<vmem>>, vector<128x256xi8>
    %c0_i8 = arith.constant 0 : i8
    %10 = vector.broadcast %c0_i8 : i8 to vector<128x256xi8>
    %11 = arith.cmpi ne, %9, %10 : vector<128x256xi8>
    %cst_11 = arith.constant 1.000000e+09 : f32
    %12 = vector.broadcast %cst_11 : f32 to vector<128x256xf32>
    %13 = arith.subf %8, %12 : vector<128x256xf32>
    %14 = arith.select %11, %13, %8 : vector<128x256xi1>, vector<128x256xf32>
    %cst_12 = arith.constant dense<0xFF800000> : vector<128xf32>
    %15 = vector.multi_reduction <maximumf>, %14, %cst_12 [1] : vector<128x256xf32> to vector<128xf32>
    %16 = vector.shape_cast %15 : vector<128xf32> to vector<128x1xf32>
    %17 = vector.broadcast %16 : vector<128x1xf32> to vector<128x256xf32>
    %18 = arith.subf %14, %17 : vector<128x256xf32>
    %19 = math.exp %18 : vector<128x256xf32>
    %cst_13 = arith.constant dense<0.000000e+00> : vector<128xf32>
    %20 = vector.multi_reduction <add>, %19, %cst_13 [1] : vector<128x256xf32> to vector<128xf32>
    %21 = vector.shape_cast %20 : vector<128xf32> to vector<128x1xf32>
    %22 = tpu.reciprocal %21 {approx = true} : vector<128x1xf32> -> vector<128x1xf32>
    %23 = arith.mulf %21, %22 : vector<128x1xf32>
    %cst_14 = arith.constant 2.000000e+00 : f32
    %24 = vector.broadcast %cst_14 : f32 to vector<128x1xf32>
    %25 = arith.subf %24, %23 : vector<128x1xf32>
    %26 = arith.mulf %22, %25 : vector<128x1xf32>
    %27 = vector.broadcast %26 : vector<128x1xf32> to vector<128x256xf32>
    %28 = arith.mulf %19, %27 : vector<128x256xf32>
    %c0_15 = arith.constant 0 : index
    %c0_16 = arith.constant 0 : index
    %c0_17 = arith.constant 0 : index
    %29 = vector.load %arg7[%c0_15, %c0_16, %c0_17] : memref<1x128x256xf32, #tpu.memory_space<vmem>>, vector<1x128x256xf32>
    %30 = vector.shape_cast %29 : vector<1x128x256xf32> to vector<128x256xf32>
    %31 = vector.shape_cast %28 : vector<128x256xf32> to vector<1x128x256xf32>
    tpu.vector_store %arg7[%c0_15, %c0_16, %c0_17], %31 {strides = array<i32>} : memref<1x128x256xf32, #tpu.memory_space<vmem>>, vector<1x128x256xf32>,
    %cst_18 = arith.constant dense<0.000000e+00> : vector<128x128xf32>
    %32 = tpu.matmul %28, %7, %cst_18 {dimension_numbers = #tpu.dot_dimension_numbers<[1], [0], [0], [1], [0, 0, 1, 1], [], []>} : vector<128x256xf32>, vector<256x128xf32>, vector<128x128xf32> -> vector<128x128xf32>
    %c0_19 = arith.constant 0 : index
    %c0_20 = arith.constant 0 : index
    %c0_21 = arith.constant 0 : index
    %33 = vector.load %arg6[%c0_19, %c0_20, %c0_21] : memref<1x128x128xf32, #tpu.memory_space<vmem>>, vector<1x128x128xf32>
    %34 = vector.shape_cast %33 : vector<1x128x128xf32> to vector<128x128xf32>
    %35 = vector.shape_cast %32 : vector<128x128xf32> to vector<1x128x128xf32>
    tpu.vector_store %arg6[%c0_19, %c0_20, %c0_21], %35 {strides = array<i32>} : memref<1x128x128xf32, #tpu.memory_space<vmem>>, vector<1x128x128xf32>,
    return
  }
  func.func @transform_0(%arg0: i32, %arg1: i32) -> (i32, i32, i32) {
    %c0_i32 = arith.constant 0 : i32
    %c0_i32_0 = arith.constant 0 : i32
    return %arg0, %arg1, %c0_i32 : i32, i32, i32
  }
  func.func @transform_1(%arg0: i32, %arg1: i32) -> (i32, i32, i32) {
    %c0_i32 = arith.constant 0 : i32
    %c0_i32_0 = arith.constant 0 : i32
    %c0_i32_1 = arith.constant 0 : i32
    return %arg0, %c0_i32, %c0_i32_0 : i32, i32, i32
  }
  func.func @transform_2(%arg0: i32, %arg1: i32) -> (i32, i32, i32) {
    %c0_i32 = arith.constant 0 : i32
    %c0_i32_0 = arith.constant 0 : i32
    %c0_i32_1 = arith.constant 0 : i32
    return %arg0, %c0_i32, %c0_i32_0 : i32, i32, i32
  }
  func.func @transform_3(%arg0: i32, %arg1: i32) -> (i32, i32) {
    %c0_i32 = arith.constant 0 : i32
    %c0_i32_0 = arith.constant 0 : i32
    return %arg1, %c0_i32 : i32, i32
  }
  func.func @transform_4(%arg0: i32, %arg1: i32) -> (i32, i32, i32) {
    %c0_i32 = arith.constant 0 : i32
    %c0_i32_0 = arith.constant 0 : i32
    return %arg0, %arg1, %c0_i32 : i32, i32, i32
  }
  func.func @transform_5(%arg0: i32, %arg1: i32) -> (i32, i32, i32) {
    %c0_i32 = arith.constant 0 : i32
    %c0_i32_0 = arith.constant 0 : i32
    return %arg0, %arg1, %c0_i32 : i32, i32, i32
  }
}

module attributes {stable_mosaic.version = 11 : i64} {
  func.func @kernel(%arg0: i32, %arg1: i32, %arg2: memref<1x128x128xf32, #tpu.memory_space<vmem>>, %arg3: memref<1x256x128xf32, #tpu.memory_space<vmem>>, %arg4: memref<1x256x128xf32, #tpu.memory_space<vmem>>, %arg5: memref<128x256xi8, #tpu.memory_space<vmem>>, %arg6: memref<1x128x128xf32, #tpu.memory_space<vmem>>, %arg7: memref<1x128x256xf32, #tpu.memory_space<vmem>>) attributes {dimension_semantics = [#tpu.dimension_semantics<parallel>, #tpu.dimension_semantics<parallel>], iteration_bounds = array<i64: 2, 2>, scalar_prefetch = 0 : i64, scratch_operands = 0 : i64, tpu.core_type = #tpu.core_type<tc>, window_params = [{transform_indices = @transform_0, window_bounds = array<i64: 1, 128, 128>}, {transform_indices = @transform_1, window_bounds = array<i64: 1, 256, 128>}, {transform_indices = @transform_2, window_bounds = array<i64: 1, 256, 128>}, {transform_indices = @transform_3, window_bounds = array<i64: 128, 256>}, {transform_indices = @transform_4, window_bounds = array<i64: 1, 128, 128>}, {transform_indices = @transform_5, window_bounds = array<i64: 1, 128, 256>}]} {
    %c0 = arith.constant 0 : index
    %c0_0 = arith.constant 0 : index
    %c0_1 = arith.constant 0 : index
    %0 = vector.load %arg2[%c0, %c0_0, %c0_1] : memref<1x128x128xf32, #tpu.memory_space<vmem>>, vector<1x128x128xf32>
    %1 = vector.shape_cast %0 : vector<1x128x128xf32> to vector<128x128xf32>
    %cst = arith.constant 0.0883883461 : f32
    %2 = vector.broadcast %cst : f32 to vector<128x128xf32>
    %3 = arith.mulf %1, %2 : vector<128x128xf32>
    %c0_2 = arith.constant 0 : index
    %c0_3 = arith.constant 0 : index
    %c0_4 = arith.constant 0 : index
    %4 = vector.load %arg3[%c0_2, %c0_3, %c0_4] : memref<1x256x128xf32, #tpu.memory_space<vmem>>, vector<1x256x128xf32>
    %5 = vector.shape_cast %4 : vector<1x256x128xf32> to vector<256x128xf32>
    %c0_5 = arith.constant 0 : index
    %c0_6 = arith.constant 0 : index
    %c0_7 = arith.constant 0 : index
    %6 = vector.load %arg4[%c0_5, %c0_6, %c0_7] : memref<1x256x128xf32, #tpu.memory_space<vmem>>, vector<1x256x128xf32>
    %7 = vector.shape_cast %6 : vector<1x256x128xf32> to vector<256x128xf32>
    %cst_8 = arith.constant dense<0.000000e+00> : vector<128x256xf32>
    %8 = tpu.matmul %3, %5, %cst_8 {dimension_numbers = #tpu.dot_dimension_numbers<[1], [1], [0], [0], [0, 0, 1, 0], [], []>} : vector<128x128xf32>, vector<256x128xf32>, vector<128x256xf32> -> vector<128x256xf32>
    %c0_9 = arith.constant 0 : index
    %c0_10 = arith.constant 0 : index
    %9 = vector.load %arg5[%c0_9, %c0_10] : memref<128x256xi8, #tpu.memory_space<vmem>>, vector<128x256xi8>
    %c0_i8 = arith.constant 0 : i8
    %10 = vector.broadcast %c0_i8 : i8 to vector<128x256xi8>
    %11 = arith.cmpi ne, %9, %10 : vector<128x256xi8>
    %cst_11 = arith.constant 1.000000e+09 : f32
    %12 = vector.broadcast %cst_11 : f32 to vector<128x256xf32>
    %13 = arith.subf %8, %12 : vector<128x256xf32>
    %14 = arith.select %11, %13, %8 : vector<128x256xi1>, vector<128x256xf32>
    %cst_12 = arith.constant dense<0xFF800000> : vector<128xf32>
    %15 = vector.multi_reduction <maximumf>, %14, %cst_12 [1] : vector<128x256xf32> to vector<128xf32>
    %16 = vector.shape_cast %15 : vector<128xf32> to vector<128x1xf32>
    %17 = vector.broadcast %16 : vector<128x1xf32> to vector<128x256xf32>
    %18 = arith.subf %14, %17 : vector<128x256xf32>
    %19 = math.exp %18 : vector<128x256xf32>
    %cst_13 = arith.constant dense<0.000000e+00> : vector<128xf32>
    %20 = vector.multi_reduction <add>, %19, %cst_13 [1] : vector<128x256xf32> to vector<128xf32>
    %21 = vector.shape_cast %20 : vector<128xf32> to vector<128x1xf32>
    %22 = tpu.reciprocal %21 {approx = true} : vector<128x1xf32> -> vector<128x1xf32>
    %23 = arith.mulf %21, %22 : vector<128x1xf32>
    %cst_14 = arith.constant 2.000000e+00 : f32
    %24 = vector.broadcast %cst_14 : f32 to vector<128x1xf32>
    %25 = arith.subf %24, %23 : vector<128x1xf32>
    %26 = arith.mulf %22, %25 : vector<128x1xf32>
    %27 = vector.broadcast %26 : vector<128x1xf32> to vector<128x256xf32>
    %28 = arith.mulf %19, %27 : vector<128x256xf32>
    %c0_15 = arith.constant 0 : index
    %c0_16 = arith.constant 0 : index
    %c0_17 = arith.constant 0 : index
    %29 = vector.load %arg7[%c0_15, %c0_16, %c0_17] : memref<1x128x256xf32, #tpu.memory_space<vmem>>, vector<1x128x256xf32>
    %30 = vector.shape_cast %29 : vector<1x128x256xf32> to vector<128x256xf32>
    %31 = vector.shape_cast %28 : vector<128x256xf32> to vector<1x128x256xf32>
    tpu.vector_store %arg7[%c0_15, %c0_16, %c0_17], %31 {strides = array<i32>} : memref<1x128x256xf32, #tpu.memory_space<vmem>>, vector<1x128x256xf32>,
    %cst_18 = arith.constant dense<0.000000e+00> : vector<128x128xf32>
    %32 = tpu.matmul %28, %7, %cst_18 {dimension_numbers = #tpu.dot_dimension_numbers<[1], [0], [0], [1], [0, 0, 1, 1], [], []>} : vector<128x256xf32>, vector<256x128xf32>, vector<128x128xf32> -> vector<128x128xf32>
    %c0_19 = arith.constant 0 : index
    %c0_20 = arith.constant 0 : index
    %c0_21 = arith.constant 0 : index
    %33 = vector.load %arg6[%c0_19, %c0_20, %c0_21] : memref<1x128x128xf32, #tpu.memory_space<vmem>>, vector<1x128x128xf32>
    %34 = vector.shape_cast %33 : vector<1x128x128xf32> to vector<128x128xf32>
    %35 = vector.shape_cast %32 : vector<128x128xf32> to vector<1x128x128xf32>
    tpu.vector_store %arg6[%c0_19, %c0_20, %c0_21], %35 {strides = array<i32>} : memref<1x128x128xf32, #tpu.memory_space<vmem>>, vector<1x128x128xf32>,
    return
  }
  func.func @transform_0(%arg0: i32, %arg1: i32) -> (i32, i32, i32) {
    %c0_i32 = arith.constant 0 : i32
    %c0_i32_0 = arith.constant 0 : i32
    return %arg0, %arg1, %c0_i32 : i32, i32, i32
  }
  func.func @transform_1(%arg0: i32, %arg1: i32) -> (i32, i32, i32) {
    %c0_i32 = arith.constant 0 : i32
    %c0_i32_0 = arith.constant 0 : i32
    %c0_i32_1 = arith.constant 0 : i32
    return %arg0, %c0_i32, %c0_i32_0 : i32, i32, i32
  }
  func.func @transform_2(%arg0: i32, %arg1: i32) -> (i32, i32, i32) {
    %c0_i32 = arith.constant 0 : i32
    %c0_i32_0 = arith.constant 0 : i32
    %c0_i32_1 = arith.constant 0 : i32
    return %arg0, %c0_i32, %c0_i32_0 : i32, i32, i32
  }
  func.func @transform_3(%arg0: i32, %arg1: i32) -> (i32, i32) {
    %c0_i32 = arith.constant 0 : i32
    %c0_i32_0 = arith.constant 0 : i32
    return %arg1, %c0_i32 : i32, i32
  }
  func.func @transform_4(%arg0: i32, %arg1: i32) -> (i32, i32, i32) {
    %c0_i32 = arith.constant 0 : i32
    %c0_i32_0 = arith.constant 0 : i32
    return %arg0, %arg1, %c0_i32 : i32, i32, i32
  }
  func.func @transform_5(%arg0: i32, %arg1: i32) -> (i32, i32, i32) {
    %c0_i32 = arith.constant 0 : i32
    %c0_i32_0 = arith.constant 0 : i32
    return %arg0, %arg1, %c0_i32 : i32, i32, i32
  }
}

</mosaic_0001>

<bundles_post_ra>
// kernel: tpu_custom_call.1
= control target key start
LH: loop header
LB: loop body
LE: loop exit
PB: predicated region body
PF: predicated region fallthrough
CT: control target
= control target key end

     0   :  { %s3435_s0 = inlined_call_operand.hbm [shape: f32[2,256,128], index: 0, kind: input, shape index: {}]   ;;  %s3436_s1 = inlined_call_operand.hbm [shape: f32[2,256,128], index: 1, kind: input, shape index: {}]   ;;  %s3437_s2 = inlined_call_operand.hbm [shape: f32[2,256,128], index: 2, kind: input, shape index: {}]   ;;  %s3438_s3 = inlined_call_operand.hbm [shape: s8[256,256], index: 3, kind: input, shape index: {}]   ;;  %s3439_s4 = inlined_call_operand.hbm [shape: f32[2,256,128], index: 4, kind: output, shape index: {0}]   ;;  %s3440_s5 = inlined_call_operand.hbm [shape: f32[2,256,256], index: 5, kind: output, shape index: {1}]  }
   0x1   :  { %3463 = sst [smem:[#allocation26_spill]] %s3436_s1 }
   0x2   :  { %3464 = sst [smem:[#allocation27_spill]] %s3437_s2 }
   0x3   :  { %3465 = sst [smem:[#allocation28_spill]] %s3439_s4 }
   0x4   :  { %3466 = sst [smem:[#allocation29_spill]] %s3440_s5 }
   0x5   :  { %11 = vsyncpa [#allocation3], 0 }
   0x6   :  { %13 = vsyncpa [#allocation3 + $0x1], 0 }
   0x7   :  { %14 = vsyncpa [#allocation6], 0 }
   0x8   :  { %15 = vsyncpa [#allocation9], 0 }
   0x9   :  { %17 = vsyncpa [#allocation9 + $0x1], 0 }
   0xa   :  { %18 = vsyncpa [#allocation4], 0 }
   0xb   :  { %20 = vsyncpa [#allocation4 + $0x1], 0 }
   0xc   :  { %21 = vsyncpa [#allocation12], 0 }
   0xd   :  { %23 = vsyncpa [#allocation12 + $0x1], 0  ;;  %s2447_s18 = smov 0   ;;  %s2449_s19 = smov 0  }
   0xe   :  { %s2451_s20 = smov 0   ;;  %s2453_s21 = smov 0  }
   0xf   :  { %s2455_s22 = smov 0   ;;  %s2457_s23 = smov 0  }
  0x10   :  { %s2459_s24 = smov 0   ;;  %s2461_s25 = smov 0  }
  0x11   :  { %s2463_s26 = smov 0   ;;  %s2465_s27 = smov 0  }
  0x12   :  { %s2467_s28 = smov 0   ;;  %s2469_s29 = smov 0  }
  0x13   :  { %s2471_s30 = smov 0   ;;  %s2473_s6 = smov 0  }
  0x14 LB: > { %3467 = sst [smem:[#allocation18_spill]] %s2364_s22  ;;  %s1563_s7 = sadd.s32 4294967295, %s2400_s6   ;;  %s2400_s6 = sphi %s2473_s6, %s29_s6   ;;  %s2396_s30 = sphi %s2471_s30, %s3568_s30   ;;  %s2392_s29 = sphi %s2469_s29, %s3567_s29   ;;  %s2388_s28 = sphi %s2467_s28, %s3566_s28   ;;  %s2384_s27 = sphi %s2465_s27, %s3565_s27   ;;  %s2380_s26 = sphi %s2463_s26, %s3564_s26   ;;  %s2376_s25 = sphi %s2461_s25, %s3563_s25   ;;  %s2372_s24 = sphi %s2459_s24, %s3562_s24   ;;  %s2368_s23 = sphi %s2457_s23, %s3561_s23   ;;  %s2364_s22 = sphi %s2455_s22, %s3560_s22   ;;  %s2360_s21 = sphi %s2453_s21, %s3553_s21   ;;  %s2356_s20 = sphi %s2451_s20, %s3559_s20   ;;  %s2352_s19 = sphi %s2449_s19, %s3558_s19   ;;  %s2348_s18 = sphi %s2447_s18, %s3557_s18  }
  0x15   : > { %3468 = sst [smem:[#allocation19_spill]] %s2372_s24  ;;  %p89_p0 = scmp.ne.s32.totalorder %s2364_s22, %s2360_s21 }
  0x16   : > { %3469 = sst [smem:[#allocation20_spill]] %s2384_s27  ;;  %p2517_p1 = scmp.eq.s32.totalorder %s1563_s7, 0 }
  0x17   : > { %3470 = sst [smem:[#allocation21_spill]] %s2388_s28  ;;  %p2521_p2 = scmp.eq.s32.totalorder %s1563_s7, 3 }
  0x18   : > { %s3471_s8 = scalar_select %p2517_p1, 1, 0 }
  0x19   : > { %s3472_s9 = scalar_select %p2521_p2, 1, 0 }
  0x1a   : > { %p1565_p3 = scmp.ge.s32.totalorder %s2400_s6, 1  ;;  %p208_p4 = scmp.lt.s32.totalorder %s2400_s6, 5 }
  0x1b   : > { %p2529_p5 = por %p89_p0, %p2517_p1  ;;  %s1627_s11 = sshll.u32 %s2388_s28, 12 }
  0x1c   : > { %p2534_p6 = pnand %p1565_p3, %p208_p4  ;;  %s3475_s1 = sld [smem:[#allocation26_spill]] }
  0x1d   : > { %s3473_s10 = scalar_select %p2529_p5, 1, 0 }
  0x1e   : > { %s3474_s12 = scalar_select %p2534_p6, 1, 0 }
  0x1f   : > { %p1852_p7 = pneg %p2534_p6  ;;  %s2402_s16 = smov [#allocation5]  }
  0x20   : > { %s223_s17 = sshll.u32 %s2402_s16, 4  ;;  %s3477_s2 = sld [smem:[#allocation27_spill]]  ;;  %s2545_s17 = int_to_ptr.vmem [resolvable:$true] %s223_s17 }
  0x21   : > { %p2549_p8 = pnand %p1852_p7, %p2529_p5  ;;  %s2403_s22 = smov [#allocation7]  }
  0x22   : > { %s2541_s15 = scalar_lea.hbm %s3475_s1, %s1627_s11  ;;  %s2558_s4 = sshll.u32 %s2403_s22, 4  ;;  %s240_s4 = int_to_ptr.vmem [resolvable:$true] %s2558_s4 }
  0x23   : > { %s2094_s5 = scalar_lea.hbm %s2541_s15, 4096  ;;  %p2096_p10 = pneg %p2549_p8 }
  0x24   : > { %p2095_p9 = scmp.ne.s32.totalorder %s2541_s15, %s2094_s5  ;;  %s2099_s27 = scalar_lea.hbm %s3475_s1, 8192 }
  0x25   : > { %p2100_p13 = scmp.lt.u32.totalorder %s2541_s15, %s3475_s1  ;;  %p2101_p0 = scmp.lt.u32.totalorder %s2099_s27, %s2094_s5 }
  0x26   : > { %s2556_s14 = scalar_lea.hbm %s3477_s2, %s1627_s11  ;;  %p2097_p11 = pnand %p2096_p10, %p2095_p9 }
  0x27   : > { %p2102_p3 = por %p2101_p0, %p2100_p13  ;;  %p2103_p4 = scmp.lt.u32.totalorder %s2094_s5, %s2541_s15 }
  0x28   : > { %p2098_p12 = pneg %p2097_p11 }
  0x29   : > { %p2104_p7 = por %p2103_p4, %p2102_p3 }
  0x2b   : > { %p2105_p5 = pnand %p2104_p7, %p2098_p12 }
  0x2d   : > { %2108 = shalt.err (!%p2105_p5)
}
  0x2e   : > { %s2109_s22 = scalar_lea.vmem %s2545_s17, 4096  ;;  %p2117_p2 = scmp.lt.s32.totalorder %s2545_s17, %s2545_s17 }
  0x2f   : > { %p2110_p9 = scmp.ne.s32.totalorder %s2545_s17, %s2109_s22  ;;  %p2118_p1 = scmp.lt.s32.totalorder %s2109_s22, %s2109_s22 }
  0x31   : > { %p2112_p11 = pnand %p2110_p9, %p2096_p10  ;;  %p2119_p0 = por %p2118_p1, %p2117_p2 }
  0x33   : > { %p2113_p6 = pneg %p2112_p11 }
  0x35   : > { %p2120_p13 = pnand %p2119_p0, %p2113_p6 }
  0x37   : > { %2123 = shalt.err (!%p2120_p13)
}
  0x38   : > { %s3452_s5 = smov 128   ;;  %s3453_s27 = smov 8  }
  0x39   : > { %1855 = dma.hbm_to_vmem [thread:$0]  (!%p2549_p8), %s2541_s15, 4096, %s2545_s17, [#allocation6], %s3452_s5, %s3452_s5, %s3453_s27  }
  0x3a   : > { %s2124_s28 = scalar_lea.hbm %s2556_s14, 4096  ;;  %s2129_s7 = scalar_lea.hbm %s3477_s2, 8192 }
  0x3b   : > { %p2125_p1 = scmp.ne.s32.totalorder %s2556_s14, %s2124_s28  ;;  %p2130_p6 = scmp.lt.u32.totalorder %s2556_s14, %s3477_s2 }
  0x3c   : > { %p2131_p12 = scmp.lt.u32.totalorder %s2129_s7, %s2124_s28  ;;  %p2133_p4 = scmp.lt.u32.totalorder %s2124_s28, %s2556_s14 }
  0x3d   : > { %p2127_p2 = pnand %p2125_p1, %p2096_p10 }
  0x3e   : > { %p2132_p3 = por %p2131_p12, %p2130_p6 }
  0x3f   : > { %p2128_p5 = pneg %p2127_p2 }
  0x40   : > { %p2134_p7 = por %p2133_p4, %p2132_p3 }
  0x42   : > { %p2135_p9 = pnand %p2134_p7, %p2128_p5 }
  0x44   : > { %2138 = shalt.err (!%p2135_p9)
}
  0x45   : > { %s2139_s15 = scalar_lea.vmem %s240_s4, 4096  ;;  %p2147_p1 = scmp.lt.s32.totalorder %s240_s4, %s240_s4 }
  0x46   : > { %p2140_p11 = scmp.ne.s32.totalorder %s240_s4, %s2139_s15  ;;  %p2148_p2 = scmp.lt.s32.totalorder %s2139_s15, %s2139_s15 }
  0x48   : > { %p2142_p0 = pnand %p2140_p11, %p2096_p10  ;;  %p2149_p6 = por %p2148_p2, %p2147_p1 }
  0x4a   : > { %p2143_p13 = pneg %p2142_p0 }
  0x4c   : > { %p2150_p12 = pnand %p2149_p6, %p2143_p13 }
  0x4e   : > { %2153 = shalt.err (!%p2150_p12)
}
  0x4f   : > { %1858 = dma.hbm_to_vmem [thread:$0]  (!%p2549_p8), %s2556_s14, 4096, %s240_s4, [#allocation6], %s3452_s5, %s3452_s5, %s3453_s27  }
  0x50   : > { %s1564_s17 = sadd.s32 4294967294, %s2400_s6   ;;  %s38_s21 = sadd.s32 1, %s2392_s29 }
  0x51   : > { %s41_s28 = sadd.s32 1, %s2396_s30  ;;  %p39_p10 = scmp.ge.s32.totalorder %s38_s21, 2 }
  0x52   : > { %s50_s11 = sadd.s32 1, %s2380_s26  ;;  %p57_p5 = scmp.ne.s32.totalorder %s2380_s26, %s2376_s25 }
  0x53   : > { %p3460_p3 = scmp.eq.s32.totalorder %s2400_s6, 0  ;;  %s3570_s21 = smov (%p39_p10, %s38_s21), 0 }
  0x54   : > { %3478 = sst [smem:[#allocation22_spill]] %s3570_s21  ;;  %s3572_s28 = smov (!%p39_p10, %s41_s28), %s2396_s30 }
  0x55   : > { %s2624_s16 = ssub.s32 %s2392_s29, %s3570_s21  ;;  %p2628_p8 = por %p3460_p3, %p57_p5 }
  0x56   : > { %p43_p4 = scmp.ge.s32.totalorder %s3572_s28, 2  ;;  %p63_p7 = scmp.ne.s32.totalorder %s2376_s25, %s2372_s24 }
  0x57   : > { %s76_s14 = sadd.s32 1, %s2368_s23  ;;  %p3481_p11 = scmp.ne.s32.totalorder %s3471_s8, 0 }
  0x58   : > { %s3574_s28 = smov (%p43_p4, %s3572_s28), 0  ;;  %p3483_p13 = scmp.ne.s32.totalorder %s3472_s9, 0 }
  0x59   : > { %3480 = sst [smem:[#allocation23_spill]] %s3574_s28  ;;  %p2640_p0 = por %p3481_p11, %p63_p7 }
  0x5a   : > { %p2646_p1 = por %p3483_p13, %p57_p5  ;;  %s45_s22 = ssub.s32 %s2396_s30, %s3574_s28 }
  0x5b   : > { %s3482_s7 = scalar_select %p2640_p0, 1, 0 }
  0x5c   : > { %s3484_s13 = scalar_select %p2646_p1, 1, 0 }
  0x5d   : > { %p173_p2 = scmp.eq.s32.totalorder %s1564_s17, 3  ;;  %s47_s15 = sor.u32 %s2624_s16, %s45_s22 }
  0x5e   : > { %3485 = sst [smem:[#allocation24_spill]] %s3484_s13  ;;  %p74_p6 = scmp.eq.s32.totalorder %s45_s22, 0 }
  0x5f   : > { %p48_p12 = scmp.eq.s32.totalorder %s47_s15, 0  ;;  %p2653_p10 = por %p173_p2, %p63_p7 }
  0x60   : > { %s2658_s27 = scalar_select %p74_p6, %s2368_s23, %s76_s14  }
  0x61   : > { %s3486_s5 = scalar_select %p2653_p10, 1, 0 }
  0x62   : > { %s2661_s1 = scalar_select %p48_p12, %s2380_s26, %s50_s11  }
  0x63   : > { %p3459_p4 = scmp.lt.s32.totalorder %s2400_s6, 4  ;;  %s253_s9 = sand.u32 1, %s2380_s26  }
  0x64   : > { %3487 = sst [smem:[#allocation25_spill]] %s2661_s1  ;;  %s1571_s2 = sshll.u32 %s253_s9, 7 }
  0x65   : > { %s1572_s21 = sshll.u32 %s2392_s29, 4  ;;  %s1573_s24 = sshll.u32 %s2396_s30, 5 }
  0x66   : > { %s257_s28 = scalar_lea.vmem [#allocation2], %s1571_s2  ;;  %s263_s13 = sadd.s32 %s1573_s24, %s1572_s21 }
  0x67   : > { %s266_s17 = sshll.u32 %s257_s28, 4  ;;  %s1574_s22 = sshll.u32 %s263_s13, 7  ;;  %s2667_s17 = int_to_ptr.vmem [resolvable:$true] %s266_s17 }
  0x68   : > { %p2673_p5 = pnand %p3459_p4, %p2628_p8  ;;  %s2680_s1 = scalar_lea.hbm %s3435_s0, %s1574_s22 }
  0x69   : > { %s2682_s2 = scalar_lea.sflag [#allocation3], %s253_s9  ;;  %s2154_s24 = scalar_lea.hbm %s2680_s1, 2048 }
  0x6a   : > { %p2155_p7 = scmp.ne.s32.totalorder %s2680_s1, %s2154_s24  ;;  %p2156_p8 = pneg %p2673_p5 }
  0x6b   : > { %s2159_s4 = scalar_lea.hbm %s3435_s0, 8192  ;;  %p2160_p6 = scmp.lt.u32.totalorder %s2680_s1, %s3435_s0 }
  0x6c   : > { %p2157_p13 = pnand %p2156_p8, %p2155_p7  ;;  %p2161_p12 = scmp.lt.u32.totalorder %s2159_s4, %s2154_s24 }
  0x6d   : > { %p2163_p3 = scmp.lt.u32.totalorder %s2154_s24, %s2680_s1 }
  0x6e   : > { %p2158_p2 = pneg %p2157_p13  ;;  %p2162_p4 = por %p2161_p12, %p2160_p6 }
  0x70   : > { %p2164_p9 = por %p2163_p3, %p2162_p4 }
  0x72   : > { %p2165_p10 = pnand %p2164_p9, %p2158_p2 }
  0x74   : > { %2168 = shalt.err (!%p2165_p10)
}
  0x75   : > { %s2169_s9 = scalar_lea.vmem %s2667_s17, 2048  ;;  %s2406_s14 = smov [#allocation2]  }
  0x76   : > { %p2170_p7 = scmp.ne.s32.totalorder %s2667_s17, %s2169_s9  ;;  %s2174_s11 = sshll.u32 %s2406_s14, 4  ;;  %s2175_s11 = int_to_ptr.vmem [resolvable:$false] %s2174_s11 }
  0x77   : > { %s2176_s21 = scalar_lea.vmem %s2175_s11, 4096  ;;  %p2177_p0 = scmp.lt.s32.totalorder %s2667_s17, %s2175_s11 }
  0x78   : > { %p2172_p13 = pnand %p2170_p7, %p2156_p8  ;;  %p2178_p6 = scmp.lt.s32.totalorder %s2176_s21, %s2169_s9 }
  0x7a   : > { %p2173_p1 = pneg %p2172_p13  ;;  %p2179_p12 = por %p2178_p6, %p2177_p0 }
  0x7c   : > { %p2180_p3 = pnand %p2179_p12, %p2173_p1 }
  0x7e   : > { %2183 = shalt.err (!%p2180_p3)
}
  0x7f   : > { %s3489_s24 = smov 8   ;;  %s3490_s28 = smov 128  }
  0x80   : > { %1862 = dma.hbm_to_vmem [thread:$0]  (!%p2673_p5), %s2680_s1, 2048, %s2667_s17, %s2682_s2, %s3490_s28, %s3490_s28, %s3489_s24  }
  0x81   : > { %s128_s15 = sadd.s32 1, %s2356_s20  ;;  %p135_p9 = scmp.ne.s32.totalorder %s2356_s20, %s2352_s19 }
  0x82   : > { %p3491_p0 = scmp.eq.s32.totalorder %s2624_s16, 0  ;;  %p3492_p1 = scmp.eq.s32.totalorder %s2400_s6, 0 }
  0x83   : > { %p141_p4 = scmp.ne.s32.totalorder %s2352_s19, %s2348_s18  ;;  %s276_s13 = sand.u32 1, %s2356_s20  }
  0x84   : > { %s2719_s4 = scalar_select %p3491_p0, %s2356_s20, %s128_s15  }
  0x85   : > { %p137_p10 = por %p135_p9, %p3492_p1  ;;  %s1630_s22 = sshll.u32 %s2392_s29, 10 }
  0x86   : > { %p2729_p8 = por %p141_p4, %p3481_p11  ;;  %s1575_s14 = sshll.u32 %s276_s13, 6 }
  0x87   : > { %s2736_s1 = scalar_lea.hbm %s3438_s3, %s1630_s22  ;;  %p3494_p5 = scmp.lt.s32.totalorder %s2400_s6, 4 }
  0x88   : > { %s280_s8 = scalar_lea.vmem [#allocation8], %s1575_s14  ;;  %s2746_s17 = scalar_lea.sflag [#allocation9], %s276_s13 }
  0x89   : > { %p2740_p2 = pnand %p3494_p5, %p137_p10  ;;  %s288_s16 = sshll.u32 %s280_s8, 4  ;;  %s2744_s16 = int_to_ptr.vmem [resolvable:$true] %s288_s16 }
  0x8a   : > { %s2184_s2 = scalar_lea.hbm %s2736_s1, 1024  ;;  %s2189_s15 = scalar_lea.hbm %s3438_s3, 2048 }
  0x8b   : > { %p2185_p11 = scmp.ne.s32.totalorder %s2736_s1, %s2184_s2  ;;  %p2186_p7 = pneg %p2740_p2 }
  0x8c   : > { %p2190_p12 = scmp.lt.u32.totalorder %s2736_s1, %s3438_s3  ;;  %p2191_p3 = scmp.lt.u32.totalorder %s2189_s15, %s2184_s2 }
  0x8d   : > { %p2187_p13 = pnand %p2186_p7, %p2185_p11  ;;  %p2193_p0 = scmp.lt.u32.totalorder %s2184_s2, %s2736_s1 }
  0x8e   : > { %p2192_p9 = por %p2191_p3, %p2190_p12 }
  0x8f   : > { %p2188_p6 = pneg %p2187_p13 }
  0x90   : > { %p2194_p1 = por %p2193_p0, %p2192_p9 }
  0x92   : > { %p2195_p10 = pnand %p2194_p1, %p2188_p6 }
  0x94   : > { %2198 = shalt.err (!%p2195_p10)
}
  0x95   : > { %s2199_s13 = scalar_lea.vmem %s2744_s16, 1024  ;;  %s2407_s14 = smov [#allocation8]  }
  0x96   : > { %p2200_p4 = scmp.ne.s32.totalorder %s2744_s16, %s2199_s13  ;;  %s2204_s21 = sshll.u32 %s2407_s14, 4  ;;  %s2205_s21 = int_to_ptr.vmem [resolvable:$false] %s2204_s21 }
  0x97   : > { %s2206_s8 = scalar_lea.vmem %s2205_s21, 2048  ;;  %p2207_p13 = scmp.lt.s32.totalorder %s2744_s16, %s2205_s21 }
  0x98   : > { %p2202_p5 = pnand %p2200_p4, %p2186_p7  ;;  %p2208_p12 = scmp.lt.s32.totalorder %s2206_s8, %s2199_s13 }
  0x9a   : > { %p2203_p11 = pneg %p2202_p5  ;;  %p2209_p3 = por %p2208_p12, %p2207_p13 }
  0x9c   : > { %p2210_p9 = pnand %p2209_p3, %p2203_p11 }
  0x9e   : > { %2213 = shalt.err (!%p2210_p9)
}
  0x9f   : > { %s2408_s2 = smov 256   ;;  %s2409_s24 = smov 16  }
  0xa0   : > { %1865 = dma.hbm_to_vmem [thread:$0]  (!%p2740_p2), %s2736_s1, 1024, %s2744_s16, %s2746_s17, %s2408_s2, %s2408_s2, %s2409_s24  }
  0xa1   : > { %p3496_p7 = scmp.ne.s32.totalorder %s3474_s12, 0 }
  0xa2   : > { %s2777_s28 = sand.u32 (!%p3496_p7), 1, %s2376_s25   ;;  %p3497_p6 = scmp.ne.s32.totalorder (!%p3496_p7), %s3482_s7, 0 }
  0xa3   : > { %300 = sbr.rel (%p3496_p7) target bundleno = 1075 (0x433), region = 36  ;;  %s1580_s15 = sshll.u32 (!%p3496_p7), %s2777_s28, 7 }
  0xa4   : > { %s303_s22 = scalar_lea.sflag (!%p3496_p7), [#allocation3], %s2777_s28  ;;  %s2783_s11 = scalar_lea.vmem (!%p3496_p7), [#allocation2], %s1580_s15 }
  0xaa   : > { %2327 = dma.done.wait (%p3497_p6), %s303_s22, 2048  }
  0xab   : > { %2329 = vsyncadd (%p3497_p6), %s303_s22, 4294965248  ;;  %p3498_p2 = scmp.ne.s32.totalorder %s3473_s10, 0 }
  0xad   : > { %2331 = dma.done.wait (%p3498_p2), [#allocation6], 8192  }
  0xae   : > { %2333 = vsyncadd (%p3498_p2), [#allocation6], 4294959104  ;;  %s319_s12 = sand.u32 1, %s2352_s19  }
  0xaf   : > { %s1581_s1 = sshll.u32 %s319_s12, 6  ;;  %s320_s18 = scalar_lea.sflag [#allocation9], %s319_s12 }
  0xb0   : > { %s2794_s16 = scalar_lea.vmem [#allocation8], %s1581_s1 }
  0xb1   : > { %2335 = dma.done.wait (%p2729_p8), %s320_s18, 1024  }
  0xb2   : > { %2337 = vsyncadd (%p2729_p8), %s320_s18, 4294966272  ;;  %v414_v0 = vld [vmem:[#allocation5 + $0x80] sm:$0xff]  ;;  %v415_v1 = vld [vmem:[#allocation5 + $0x88] sm:$0xff]  ;;  %s1583_s10 = sshll.u32 %s2777_s28, 8  ;;  %s3543_s9 = sld [smem:[#allocation20_spill]] }
  0xb3   : > { %v398_v2 = vld [vmem:[#allocation5] sm:$0xff]  ;;  %v1776_v3 = vpack.c.bf16 %v415_v1, %v414_v0  ;;  %v399_v4 = vld [vmem:[#allocation5 + $0x8] sm:$0xff]  ;;  %v416_v5 = vld [vmem:[#allocation5 + $0x90] sm:$0xff]  ;;  %s3231_s7 = scalar_lea.vmem [#allocation11], %s1583_s10  ;;  %s3544_s17 = sld [smem:[#allocation21_spill]] }
  0xb4   : > { %v417_v6 = vld [vmem:[#allocation5 + $0x98] sm:$0xff]  ;;  %v1778_v7 = vpack.c.bf16 %v399_v4, %v398_v2  ;;  %v400_v9 = vld [vmem:[#allocation5 + $0x10] sm:$0xff]  ;;  %v418_v11 = vld [vmem:[#allocation5 + $0xa0] sm:$0xff]  ;;  %s3545_s13 = sld [smem:[#allocation24_spill]]  ;;  %s1392_s8 = sshll.u32 %s3231_s7, 4  ;;  %s3298_s8 = int_to_ptr.vmem [resolvable:$true] %s1392_s8 }
  0xb5   : > { %v1780_v8 = vpack.c.bf16 %v417_v6, %v416_v5  ;;  %1777 = vmatprep.subr.bf16.mxu0 %v1776_v3  ;;  %v401_v10 = vld [vmem:[#allocation5 + $0x18] sm:$0xff]  ;;  %v419_v12 = vld [vmem:[#allocation5 + $0xa8] sm:$0xff]  ;;  %v366_v15 = vld [vmem:[%s2783_s11] sm:$0xff]  ;;  %s3546_s12 = sld [smem:[#allocation29_spill]]  ;;  %s1358_s18 = scalar_lea.sflag [#allocation12], %s2777_s28 }
  0xb6   : > { %1779 = vmatpush3.bf16.xpose.msra.mxu0 %v1778_v7  ;;  %v1782_v13 = vpack.c.bf16 %v401_v10, %v400_v9  ;;  %v1784_v14 = vpack.c.bf16 %v419_v12, %v418_v11  ;;  %v382_v16 = vmul.f32 0.088388346, %v366_v15  ;;  %v402_v17 = vld [vmem:[#allocation5 + $0x20] sm:$0xff]  ;;  %v403_v18 = vld [vmem:[#allocation5 + $0x28] sm:$0xff]  ;;  %v420_v19 = vld [vmem:[#allocation5 + $0xb0] sm:$0xff]  ;;  %s2411_s10 = smov [#allocation11]  }
  0xb7   : > { %1781 = vmatprep.subr.bf16.mxu0 %v1780_v8  ;;  %v421_v20 = vld [vmem:[#allocation5 + $0xb8] sm:$0xff]  ;;  %v1786_v21 = vpack.c.bf16 %v403_v18, %v402_v17  ;;  %v404_v23 = vld [vmem:[#allocation5 + $0x30] sm:$0xff]  ;;  %v422_v25 = vld [vmem:[#allocation5 + $0xc0] sm:$0xff]  ;;  %v2410_v18 = vmov 0  }
  0xb8   : > { %1664 = vmatprep.mubr.f32.mxu0 %v382_v16  ;;  %v1788_v22 = vpack.c.bf16 %v421_v20, %v420_v19  ;;  %v405_v24 = vld [vmem:[#allocation5 + $0x38] sm:$0xff]  ;;  %v423_v26 = vld [vmem:[#allocation5 + $0xc8] sm:$0xff]  ;;  %v406_v29 = vld [vmem:[#allocation5 + $0x40] sm:$0xff]  ;;  %s1631_s14 = sshll.u32 %s3543_s9, 5 }
  0xb9   : > { %v1790_v27 = vpack.c.bf16 %v405_v24, %v404_v23  ;;  %v1792_v28 = vpack.c.bf16 %v423_v26, %v422_v25  ;;  %v407_v30 = vld [vmem:[#allocation5 + $0x48] sm:$0xff]  ;;  %v424_v31 = vld [vmem:[#allocation5 + $0xd0] sm:$0xff]  ;;  %v425_v32 = vld [vmem:[#allocation5 + $0xd8] sm:$0xff]  ;;  %s1623_s21 = sshll.u32 %s3544_s17, 6 }
  0xba   : > { %v1794_v33 = vpack.c.bf16 %v407_v30, %v406_v29  ;;  %v1796_v34 = vpack.c.bf16 %v425_v32, %v424_v31  ;;  %v408_v35 = vld [vmem:[#allocation5 + $0x50] sm:$0xff]  ;;  %v409_v36 = vld [vmem:[#allocation5 + $0x58] sm:$0xff]  ;;  %v426_v37 = vld [vmem:[#allocation5 + $0xe0] sm:$0xff]  ;;  %s1389_s2 = sadd.s32 %s1631_s14, %s1623_s21  ;;  %p3547_p0 = scmp.ne.s32.totalorder %s3545_s13, 0 }
  0xbb   : > { %v427_v38 = vld [vmem:[#allocation5 + $0xe8] sm:$0xff]  ;;  %v1798_v39 = vpack.c.bf16 %v409_v36, %v408_v35  ;;  %v410_v41 = vld [vmem:[#allocation5 + $0x60] sm:$0xff]  ;;  %v428_v43 = vld [vmem:[#allocation5 + $0xf0] sm:$0xff]  ;;  %s1624_s24 = sshll.u32 %s1389_s2, 7 }
  0xbc   : > { %v1800_v40 = vpack.c.bf16 %v427_v38, %v426_v37  ;;  %v411_v42 = vld [vmem:[#allocation5 + $0x68] sm:$0xff]  ;;  %v429_v44 = vld [vmem:[#allocation5 + $0xf8] sm:$0xff]  ;;  %v412_v47 = vld [vmem:[#allocation5 + $0x70] sm:$0xff]  ;;  %s3303_s1 = scalar_lea.hbm %s3546_s12, %s1624_s24 }
  0xbd   : > { %v1802_v45 = vpack.c.bf16 %v411_v42, %v410_v41  ;;  %v1804_v46 = vpack.c.bf16 %v429_v44, %v428_v43  ;;  %v413_v48 = vld [vmem:[#allocation5 + $0x78] sm:$0xff]  ;;  %v367_v50 = vld [vmem:[%s2783_s11 + $0x8] sm:$0xff]  ;;  %v368_v52 = vld [vmem:[%s2783_s11 + $0x10] sm:$0xff] }
  0xbe   : > { %1783 = vmatpush3.bf16.xpose.msra.mxu0 %v1782_v13  ;;  %v1806_v49 = vpack.c.bf16 %v413_v48, %v412_v47  ;;  %v383_v51 = vmul.f32 0.088388346, %v367_v50  ;;  %v384_v53 = vmul.f32 0.088388346, %v368_v52  ;;  %v369_v54 = vld [vmem:[%s2783_s11 + $0x18] sm:$0xff]  ;;  %v370_v56 = vld [vmem:[%s2783_s11 + $0x20] sm:$0xff] }
  0xbf   : > { %1785 = vmatprep.subr.bf16.mxu0 %v1784_v14  ;;  %v385_v55 = vmul.f32 0.088388346, %v369_v54  ;;  %v386_v57 = vmul.f32 0.088388346, %v370_v56  ;;  %v371_v58 = vld [vmem:[%s2783_s11 + $0x28] sm:$0xff]  ;;  %v372_v60 = vld [vmem:[%s2783_s11 + $0x30] sm:$0xff] }
  0xc0   : > { %v387_v59 = vmul.f32 0.088388346, %v371_v58  ;;  %v388_v61 = vmul.f32 0.088388346, %v372_v60  ;;  %v373_v62 = vld [vmem:[%s2783_s11 + $0x38] sm:$0xff]  ;;  %v374_v0 = vld [vmem:[%s2783_s11 + $0x40] sm:$0xff] }
  0xc1   : > { %v389_v63 = vmul.f32 0.088388346, %v373_v62  ;;  %v390_v1 = vmul.f32 0.088388346, %v374_v0  ;;  %v375_v2 = vld [vmem:[%s2783_s11 + $0x48] sm:$0xff]  ;;  %v376_v4 = vld [vmem:[%s2783_s11 + $0x50] sm:$0xff] }
  0xc2   : > { %v391_v3 = vmul.f32 0.088388346, %v375_v2  ;;  %v392_v5 = vmul.f32 0.088388346, %v376_v4  ;;  %v377_v6 = vld [vmem:[%s2783_s11 + $0x58] sm:$0xff]  ;;  %v378_v8 = vld [vmem:[%s2783_s11 + $0x60] sm:$0xff] }
  0xc3   : > { %v393_v7 = vmul.f32 0.088388346, %v377_v6  ;;  %v394_v9 = vmul.f32 0.088388346, %v378_v8  ;;  %v379_v10 = vld [vmem:[%s2783_s11 + $0x68] sm:$0xff]  ;;  %v380_v12 = vld [vmem:[%s2783_s11 + $0x70] sm:$0xff] }
  0xc4   : > { %v395_v11 = vmul.f32 0.088388346, %v379_v10  ;;  %v396_v13 = vmul.f32 0.088388346, %v380_v12  ;;  %v381_v14 = vld [vmem:[%s2783_s11 + $0x78] sm:$0xff]  ;;  %v624_v17 = vld [vmem:[%s2794_s16 + $0x8] sm:$0xff] }
  0xc5   : > { %v397_v15 = vmul.f32 0.088388346, %v381_v14  ;;  %vm632_vm1 = vnez %v624_v17  ;;  %v625_v29 = vld [vmem:[%s2794_s16 + $0x10] sm:$0xff]  ;;  %v626_v30 = vld [vmem:[%s2794_s16 + $0x18] sm:$0xff]  ;;  %v627_v52 = vld [vmem:[%s2794_s16 + $0x20] sm:$0xff] }
  0xc6   : > { %1787 = vmatpush3.bf16.xpose.msra.mxu0 %v1786_v21  ;;  %v672_v20 = vsel %vm632_vm1, 16843009, %v2410_v18  ;;  %vm633_vm2 = vnez %v625_v29  ;;  %vm634_vm3 = vnez %v626_v30  ;;  %vm635_vm11 = vnez %v627_v52  ;;  %v629_v56 = vld [vmem:[%s2794_s16 + $0x30] sm:$0xff] }
  0xc7   : > { %1789 = vmatprep.subr.bf16.mxu0 %v1788_v22  ;;  %v682_v22 = vunpack.c.1.s8 %v672_v20  ;;  %v680_v24 = vunpack.c.0.s8 %v672_v20  ;;  %v673_v37 = vsel %vm633_vm2, 16843009, %v2410_v18  ;;  %v674_v38 = vsel %vm634_vm3, 16843009, %v2410_v18 }
  0xc8   : > { %v687_v42 = vunpack.c.0.s8 %v673_v37  ;;  %v688_v43 = vunpack.c.0.s8 %v674_v38  ;;  %v689_v44 = vunpack.c.1.s8 %v673_v37  ;;  %v692_v58 = vunpack.c.2.s8 %v674_v38 }
  0xc9   : > { %v694_v6 = vunpack.c.3.s8 %v674_v38 }
  0xca   : > { %v719_v50 = vpack.c.b16 %v688_v43, %v687_v42 }
  0xce   : > { %1791 = vmatpush3.bf16.xpose.msra.mxu0 %v1790_v27 }
  0xcf   : > { %1793 = vmatprep.subr.bf16.mxu0 %v1792_v28  ;;  %v684_v28 = vunpack.c.2.s8 %v672_v20 }
  0xd6   : > { %1795 = vmatpush3.bf16.xpose.msra.mxu0 %v1794_v33 }
  0xd7   : > { %1797 = vmatprep.subr.bf16.mxu0 %v1796_v34  ;;  %v686_v34 = vunpack.c.3.s8 %v672_v20 }
  0xde   : > { %1799 = vmatpush3.bf16.xpose.msra.mxu0 %v1798_v39 }
  0xdf   : > { %1801 = vmatprep.subr.bf16.mxu0 %v1800_v40 }
  0xe6   : > { %1803 = vmatpush3.bf16.xpose.msra.mxu0 %v1802_v45  ;;  %v690_v45 = vunpack.c.1.s8 %v674_v38 }
  0xe7   : > { %1805 = vmatprep.subr.bf16.mxu0 %v1804_v46 }
  0xee   : > { %1807 = vmatpush3.bf16.xpose.msra.mxu0 %v1806_v49 }
  0xf5   : > { %1665 = vmatmul.mubr.f32.vlgmr.msra.gmra.mrb[0].mxu0 %v382_v16  ;;  %v623_v16 = vld [vmem:[%s2794_s16] sm:$0xff] }
  0xf6   : > { %1666 = vmatprep.mubr.f32.mxu0 %v383_v51  ;;  %vm631_vm0 = vnez %v623_v16 }
  0xf7   : > { %v671_v19 = vsel %vm631_vm0, 16843009, %v2410_v18 }
  0xf8   : > { %v681_v21 = vunpack.c.1.s8 %v671_v19  ;;  %v679_v23 = vunpack.c.0.s8 %v671_v19  ;;  %v683_v27 = vunpack.c.2.s8 %v671_v19  ;;  %v685_v33 = vunpack.c.3.s8 %v671_v19 }
  0xf9   : > { %1667 = vmatmul.mubr.f32.gmra.mrb[2].mxu0 %v383_v51  ;;  %v721_v51 = vpack.c.b16 %v690_v45, %v689_v44 }
  0xfa   : > { %1668 = vmatprep.mubr.f32.mxu0 %v384_v53  ;;  %v713_v25 = vpack.c.b16 %v682_v22, %v681_v21  ;;  %v711_v26 = vpack.c.b16 %v680_v24, %v679_v23  ;;  %v715_v35 = vpack.c.b16 %v684_v28, %v683_v27  ;;  %v717_v36 = vpack.c.b16 %v686_v34, %v685_v33 }
  0xfb   : > { %v722_v2 = vpack.c.b8 %v721_v51, %v721_v51 }
  0xfc   : > { %v714_v31 = vpack.c.b8 %v713_v25, %v713_v25  ;;  %v712_v32 = vpack.c.b8 %v711_v26, %v711_v26  ;;  %v716_v41 = vpack.c.b8 %v715_v35, %v715_v35  ;;  %v718_v46 = vpack.c.b8 %v717_v36, %v717_v36 }
  0xfd   : > { %1669 = vmatmul.mubr.f32.gmra.mrb[4].mxu0 %v384_v53  ;;  %v628_v53 = vld [vmem:[%s2794_s16 + $0x28] sm:$0xff]  ;;  %vm2862_vm15 = vnez %v722_v2 }
  0xfe   : > { %1670 = vmatprep.mubr.f32.mxu0 %v385_v55  ;;  %vm744_vm4 = vnez %v714_v31  ;;  %vm743_vm5 = vnez %v712_v32  ;;  %vm745_vm6 = vnez %v716_v41  ;;  %vm746_vm7 = vnez %v718_v46 }
  0xff   : > { %v760_v39 = vsel %vm744_vm4, 16843009, %v2410_v18  ;;  %v759_v40 = vsel %vm743_vm5, 16843009, %v2410_v18  ;;  %vm636_vm12 = vnez %v628_v53  ;;  %v762_v0 = vsel %vm746_vm7, 16843009, %v2410_v18 }
 0x100   : > { %v775_v47 = vunpack.c.0.s8 %v759_v40  ;;  %v776_v48 = vunpack.c.1.s8 %v759_v40  ;;  %v777_v49 = vunpack.c.0.s8 %v760_v39  ;;  %v778_v54 = vunpack.c.1.s8 %v760_v39 }
 0x101   : > { %1671 = vmatmul.mubr.f32.gmra.mrb[6].mxu0 %v385_v55  ;;  %v2854_v10 = vsel %vm636_vm12, 16843009, %v2410_v18  ;;  %v782_v34 = vunpack.c.1.s8 %v762_v0  ;;  %v764_v35 = vsel %vm2862_vm15, 16843009, %v2410_v18 }
 0x102   : > { %1672 = vmatprep.mubr.f32.mxu0 %v386_v57  ;;  %vm2828_vm8 = vcmp.ne.s32.totalorder %v775_v47, 0  ;;  %vm2832_vm9 = vcmp.ne.s32.totalorder %v776_v48, 0  ;;  %vm2836_vm10 = vcmp.ne.s32.totalorder %v777_v49, 0  ;;  %vm2842_vm13 = vcmp.ne.s32.totalorder %v778_v54, 0 }
 0x103   : > { %v696_v24 = vunpack.c.0.s8 %v2854_v10  ;;  %v698_v42 = vunpack.c.1.s8 %v2854_v10  ;;  %v785_v47 = vunpack.c.0.s8 %v764_v35  ;;  %vm814_vm4 = vcmp.ne.s32.totalorder %v782_v34, 0 }
 0x104   : > { %v786_v51 = vunpack.c.1.s8 %v764_v35  ;;  %v700_v60 = vunpack.c.2.s8 %v2854_v10 }
 0x105   : > { %1673 = vmatmul.mubr.f32.gmra.mrb[8].mxu0 %v386_v57  ;;  %v691_v57 = vunpack.c.2.s8 %v673_v37 }
 0x106   : > { %1674 = vmatprep.mubr.f32.mxu0 %v387_v59 }
 0x107   : > { %v723_v8 = vpack.c.b16 %v692_v58, %v691_v57 }
 0x109   : > { %1675 = vmatmul.mubr.f32.gmra.mrb[10].mxu0 %v387_v59  ;;  %v724_v26 = vpack.c.b8 %v723_v8, %v723_v8 }
 0x10a   : > { %1676 = vmatprep.mubr.f32.mxu0 %v388_v61 }
 0x10b   : > { %vm749_vm3 = vnez %v724_v26 }
 0x10c   : > { %v765_v53 = vsel %vm749_vm3, 16843009, %v2410_v18 }
 0x10d   : > { %1677 = vmatmul.mubr.f32.gmra.mrb[12].mxu0 %v388_v61  ;;  %v761_v61 = vsel %vm745_vm6, 16843009, %v2410_v18  ;;  %v787_v8 = vunpack.c.0.s8 %v765_v53 }
 0x10e   : > { %1678 = vmatprep.mubr.f32.mxu0 %v389_v63  ;;  %v779_v14 = vunpack.c.0.s8 %v761_v61 }
 0x110   : > { %vm811_vm0 = vcmp.ne.s32.totalorder %v779_v14, 0 }
 0x111   : > { %1679 = vmatmul.mubr.f32.gmra.mrb[14].mxu0 %v389_v63 }
 0x112   : > { %1680 = vmatprep.mubr.f32.mxu0 %v390_v1 }
 0x115   : > { %1681 = vmatmul.mubr.f32.gmra.mrb[16].mxu0 %v390_v1  ;;  %v720_v1 = vpack.c.b8 %v719_v50, %v719_v50 }
 0x116   : > { %1682 = vmatprep.mubr.f32.mxu0 %v391_v3 }
 0x117   : > { %vm747_vm14 = vnez %v720_v1 }
 0x118   : > { %v763_v30 = vsel %vm747_vm14, 16843009, %v2410_v18 }
 0x119   : > { %1683 = vmatmul.mubr.f32.gmra.mrb[18].mxu0 %v391_v3  ;;  %v783_v45 = vunpack.c.0.s8 %v763_v30  ;;  %v784_v46 = vunpack.c.1.s8 %v763_v30 }
 0x11a   : > { %1684 = vmatprep.mubr.f32.mxu0 %v392_v5 }
 0x11b   : > { %vm815_vm6 = vcmp.ne.s32.totalorder %v783_v45, 0  ;;  %vm2915_vm7 = vcmp.ne.s32.totalorder %v784_v46, 0 }
 0x11d   : > { %1685 = vmatmul.mubr.f32.gmra.mrb[20].mxu0 %v392_v5  ;;  %v693_v5 = vunpack.c.3.s8 %v673_v37 }
 0x11e   : > { %1686 = vmatprep.mubr.f32.mxu0 %v393_v7 }
 0x11f   : > { %v725_v22 = vpack.c.b16 %v694_v6, %v693_v5 }
 0x121   : > { %1687 = vmatmul.mubr.f32.gmra.mrb[22].mxu0 %v393_v7  ;;  %v726_v38 = vpack.c.b8 %v725_v22, %v725_v22 }
 0x122   : > { %1688 = vmatprep.mubr.f32.mxu0 %v394_v9 }
 0x123   : > { %vm2901_vm5 = vnez %v726_v38 }
 0x125   : > { %1689 = vmatmul.mubr.f32.gmra.mrb[24].mxu0 %v394_v9  ;;  %v2851_v9 = vsel %vm635_vm11, 16843009, %v2410_v18 }
 0x126   : > { %1690 = vmatprep.mubr.f32.mxu0 %v395_v11  ;;  %v695_v23 = vunpack.c.0.s8 %v2851_v9  ;;  %v697_v41 = vunpack.c.1.s8 %v2851_v9  ;;  %v701_v20 = vunpack.c.3.s8 %v2851_v9 }
 0x128   : > { %v727_v39 = vpack.c.b16 %v696_v24, %v695_v23  ;;  %v729_v58 = vpack.c.b16 %v698_v42, %v697_v41 }
 0x129   : > { %1691 = vmatmul.mubr.f32.gmra.mrb[26].mxu0 %v395_v11 }
 0x12a   : > { %1692 = vmatprep.mubr.f32.mxu0 %v396_v13  ;;  %v728_v55 = vpack.c.b8 %v727_v39, %v727_v39 }
 0x12c   : > { %vm2934_vm12 = vnez %v728_v55 }
 0x12d   : > { %1693 = vmatmul.mubr.f32.gmra.mrb[28].mxu0 %v396_v13  ;;  %v781_v13 = vunpack.c.0.s8 %v762_v0 }
 0x12e   : > { %1694 = vmatprep.mubr.f32.mxu0 %v397_v15 }
 0x12f   : > { %vm2886_vm2 = vcmp.ne.s32.totalorder %v781_v13, 0 }
 0x131   : > { %1695 = vmatmul.mubr.f32.gmra.mrb[30].mxu0 %v397_v15  ;;  %v780_v15 = vunpack.c.1.s8 %v761_v61  ;;  %v630_v61 = vld [vmem:[%s2794_s16 + $0x38] sm:$0xff]  ;;  %s2214_s16 = scalar_lea.vmem %s3298_s8, 4096 }
 0x132   : > { %vm638_vm11 = vnez %v630_v61  ;;  %p2215_p8 = scmp.ne.s32.totalorder %s3298_s8, %s2214_s16 }
 0x133   : > { %vm2876_vm1 = vcmp.ne.s32.totalorder %v780_v15, 0  ;;  %v730_v15 = vpack.c.b8 %v729_v58, %v729_v58  ;;  %v2950_v29 = vsel %vm638_vm11, 16843009, %v2410_v18 }
 0x134   : > { %v704_v41 = vunpack.c.0.s8 %v2950_v29  ;;  %v706_v0 = vunpack.c.1.s8 %v2950_v29  ;;  %p2216_p1 = pnand %p2215_p8, %p3547_p0 }
 0x135   : > { %vm2963_vm14 = vnez %v730_v15 }
 0x136   : > { %p2217_p10 = pneg %p2216_p1 }
 0x1c8   : > { %v528_v59 = vpop.f32.mrb[0].mxu0 }
 0x1c9   : > { %v1584_v62 = vadd.f32 -1e+09, %v528_v59  ;;  %v530_v63 = vpop.f32.mrb[1].mxu0 }
 0x1ca   : > { %v1585_v3 = vadd.f32 -1e+09, %v530_v63 }
 0x1cb   : > { %v2848_v7 = vsel %vm2828_vm8, %v1584_v62, %v528_v59  ;;  %v699_v59 = vunpack.c.2.s8 %v2851_v9  ;;  %vm2919_vm8 = vcmp.ne.s32.totalorder %v785_v47, 0  ;;  %v710_v47 = vunpack.c.3.s8 %v2950_v29 }
 0x1cc   : > { %v534_v11 = vpop.f32.mrb[2].mxu0  ;;  %v2858_v12 = vsel %vm2832_vm9, %v1585_v3, %v530_v63  ;;  %vm2925_vm9 = vcmp.ne.s32.totalorder %v786_v51, 0 }
 0x1cd   : > { %v1586_v16 = vadd.f32 -1e+09, %v534_v11  ;;  %v536_v17 = vpop.f32.mrb[3].mxu0  ;;  %v871_v19 = vmax.f32 %v2848_v7, %v2858_v12 }
 0x1ce   : > { %v1587_v21 = vadd.f32 -1e+09, %v536_v17 }
 0x1cf   : > { %v2870_v25 = vsel %vm2836_vm10, %v1586_v16, %v534_v11  ;;  %872 = vmax.xlane.f32.xlu0 %v871_v19  ;;  %vm637_vm10 = vnez %v629_v56  ;;  %v766_v11 = vsel %vm2901_vm5, 16843009, %v2410_v18  ;;  %v731_v16 = vpack.c.b16 %v700_v60, %v699_v59 }
 0x1d0   : > { %v2874_v27 = vsel %vm2842_vm13, %v1587_v21, %v536_v17  ;;  %v540_v28 = vpop.f32.mrb[4].mxu0  ;;  %v702_v21 = vunpack.c.3.s8 %v2854_v10  ;;  %v2945_v22 = vsel %vm637_vm10, 16843009, %v2410_v18  ;;  %vm2952_vm13 = vcmp.ne.s32.totalorder %v787_v8, 0 }
 0x1d1   : > { %v1588_v31 = vadd.f32 -1e+09, %v540_v28  ;;  %v542_v32 = vpop.f32.mrb[5].mxu0  ;;  %v874_v33 = vmax.f32 %v2870_v25, %v2874_v27  ;;  %v789_v9 = vunpack.c.0.s8 %v766_v11  ;;  %v732_v35 = vpack.c.b8 %v731_v16, %v731_v16 }
 0x1d2   : > { %v1589_v36 = vadd.f32 -1e+09, %v542_v32  ;;  %v733_v38 = vpack.c.b16 %v702_v21, %v701_v20  ;;  %v703_v39 = vunpack.c.0.s8 %v2945_v22 }
 0x1d3   : > { %875 = vmax.xlane.f32.xlu0 %v874_v33  ;;  %v2890_v40 = vsel %vm811_vm0, %v1588_v31, %v540_v28  ;;  %v788_v28 = vunpack.c.1.s8 %v765_v53  ;;  %v767_v33 = vsel %vm2934_vm12, 16843009, %v2410_v18  ;;  %vm2975_vm0 = vcmp.ne.s32.totalorder %v789_v9, 0 }
 0x1d4   : > { %v546_v43 = vpop.f32.mrb[6].mxu0  ;;  %v2896_v44 = vsel %vm2876_vm1, %v1589_v36, %v542_v32  ;;  %v790_v32 = vunpack.c.1.s8 %v766_v11  ;;  %v792_v51 = vunpack.c.1.s8 %v767_v33  ;;  %v734_v56 = vpack.c.b8 %v733_v38, %v733_v38 }
 0x1d5   : > { %v1590_v48 = vadd.f32 -1e+09, %v546_v43  ;;  %v548_v49 = vpop.f32.mrb[7].mxu0  ;;  %v877_v50 = vmax.f32 %v2890_v40, %v2896_v44  ;;  %vm820_vm15 = vcmp.ne.s32.totalorder %v788_v28, 0  ;;  %v735_v58 = vpack.c.b16 %v704_v41, %v703_v39 }
 0x1d6   : > { %v1591_v52 = vadd.f32 -1e+09, %v548_v49  ;;  %vm2979_vm1 = vcmp.ne.s32.totalorder %v790_v32, 0  ;;  %vm3015_vm5 = vnez %v734_v56 }
 0x1d7   : > { %v2908_v57 = vsel %vm2886_vm2, %v1590_v48, %v546_v43  ;;  %878 = vmax.xlane.f32.xlu1 %v877_v50  ;;  %v791_v50 = vunpack.c.0.s8 %v767_v33  ;;  %vm2992_vm2 = vnez %v732_v35  ;;  %v736_v20 = vpack.c.b8 %v735_v58, %v735_v58 }
 0x1d8   : > { %v2913_v62 = vsel %vm814_vm4, %v1591_v52, %v548_v49  ;;  %v552_v63 = vpop.f32.mrb[8].mxu0  ;;  %v768_v52 = vsel %vm2963_vm14, 16843009, %v2410_v18  ;;  %vm824_vm4 = vcmp.ne.s32.totalorder %v792_v51, 0  ;;  %v769_v11 = vsel %vm2992_vm2, 16843009, %v2410_v18 }
 0x1d9   : > { %v1592_v2 = vadd.f32 -1e+09, %v552_v63  ;;  %v554_v3 = vpop.f32.mrb[9].mxu0  ;;  %v880_v4 = vmax.f32 %v2908_v57, %v2913_v62  ;;  %vm3004_vm3 = vcmp.ne.s32.totalorder %v791_v50, 0  ;;  %v794_v5 = vunpack.c.1.s8 %v768_v52 }
 0x1da   : > { %v1593_v6 = vadd.f32 -1e+09, %v554_v3  ;;  %v795_v33 = vunpack.c.0.s8 %v769_v11  ;;  %v796_v34 = vunpack.c.1.s8 %v769_v11  ;;  %v770_v35 = vsel %vm3015_vm5, 16843009, %v2410_v18 }
 0x1db   : > { %v2932_v13 = vsel %vm815_vm6, %v1592_v2, %v552_v63  ;;  %881 = vmax.xlane.f32.xlu1 %v880_v4  ;;  %v705_v63 = vunpack.c.1.s8 %v2945_v22  ;;  %v793_v4 = vunpack.c.0.s8 %v768_v52  ;;  %v797_v52 = vunpack.c.0.s8 %v770_v35 }
 0x1dc   : > { %v2940_v17 = vsel %vm2915_vm7, %v1593_v6, %v554_v3  ;;  %v558_v19 = vpop.f32.mrb[10].mxu0  ;;  %vm3031_vm7 = vcmp.ne.s32.totalorder %v794_v5, 0  ;;  %vm828_vm10 = vcmp.ne.s32.totalorder %v796_v34, 0 }
 0x1dd   : > { %v1594_v23 = vadd.f32 -1e+09, %v558_v19  ;;  %v560_v24 = vpop.f32.mrb[11].mxu0  ;;  %v883_v26 = vmax.f32 %v2932_v13, %v2940_v17  ;;  %v737_v21 = vpack.c.b16 %v706_v0, %v705_v63  ;;  %vm3027_vm6 = vcmp.ne.s32.totalorder %v793_v4, 0 }
 0x1de   : > { %v1595_v30 = vadd.f32 -1e+09, %v560_v24  ;;  %vm829_vm12 = vcmp.ne.s32.totalorder %v797_v52, 0 }
 0x1df   : > { %v2958_v10 = vsel %vm2919_vm8, %v1594_v23, %v558_v19  ;;  %884 = vmax.xlane.f32.xlu0 %v883_v26  ;;  %v708_v26 = vunpack.c.2.s8 %v2950_v29  ;;  %vm3042_vm8 = vnez %v736_v20 }
 0x1e0   : > { %v2969_v36 = vsel %vm2925_vm9, %v1595_v30, %v560_v24  ;;  %v564_v37 = vpop.f32.mrb[12].mxu0  ;;  %v707_v24 = vunpack.c.2.s8 %v2945_v22  ;;  %vm827_vm9 = vcmp.ne.s32.totalorder %v795_v33, 0  ;;  %v771_v29 = vsel %vm3042_vm8, 16843009, %v2410_v18 }
 0x1e1   : > { %v1596_v42 = vadd.f32 -1e+09, %v564_v37  ;;  %v566_v43 = vpop.f32.mrb[13].mxu0  ;;  %v886_v45 = vmax.f32 %v2958_v10, %v2969_v36 }
 0x1e2   : > { %v1597_v46 = vadd.f32 -1e+09, %v566_v43 }
 0x1e3   : > { %v2985_v49 = vsel %vm2952_vm13, %v1596_v42, %v564_v37  ;;  %887 = vmax.xlane.f32.xlu1 %v886_v45  ;;  %v738_v42 = vpack.c.b8 %v737_v21, %v737_v21  ;;  %v739_v45 = vpack.c.b16 %v708_v26, %v707_v24 }
 0x1e4   : > { %v2990_v53 = vsel %vm820_vm15, %v1597_v46, %v566_v43  ;;  %v570_v54 = vpop.f32.mrb[14].mxu0  ;;  %v709_v46 = vunpack.c.3.s8 %v2945_v22 }
 0x1e5   : > { %v1598_v59 = vadd.f32 -1e+09, %v570_v54  ;;  %v572_v60 = vpop.f32.mrb[15].mxu0  ;;  %v889_v61 = vmax.f32 %v2985_v49, %v2990_v53  ;;  %vm756_vm11 = vnez %v738_v42 }
 0x1e6   : > { %v1599_v1 = vadd.f32 -1e+09, %v572_v60  ;;  %v772_v11 = vsel %vm756_vm11, 16843009, %v2410_v18 }
 0x1e7   : > { %v3002_v2 = vsel %vm2975_vm0, %v1598_v59, %v570_v54  ;;  %890 = vmax.xlane.f32.xlu0 %v889_v61  ;;  %v798_v54 = vunpack.c.1.s8 %v770_v35  ;;  %v740_v59 = vpack.c.b8 %v739_v45, %v739_v45  ;;  %v801_v21 = vunpack.c.0.s8 %v772_v11 }
 0x1e8   : > { %v3010_v6 = vsel %vm2979_vm1, %v1599_v1, %v572_v60  ;;  %v576_v8 = vpop.f32.mrb[16].mxu0  ;;  %v741_v60 = vpack.c.b16 %v710_v47, %v709_v46  ;;  %v799_v1 = vunpack.c.0.s8 %v771_v29 }
 0x1e9   : > { %v1600_v15 = vadd.f32 -1e+09, %v576_v8  ;;  %v578_v16 = vpop.f32.mrb[17].mxu0  ;;  %v892_v19 = vmax.f32 %v3002_v2, %v3010_v6  ;;  %vm830_vm13 = vcmp.ne.s32.totalorder %v798_v54, 0  ;;  %vm757_vm14 = vnez %v740_v59 }
 0x1ea   : > { %v1601_v23 = vadd.f32 -1e+09, %v578_v16  ;;  %vm831_vm15 = vcmp.ne.s32.totalorder %v799_v1, 0  ;;  %v773_v31 = vsel %vm757_vm14, 16843009, %v2410_v18  ;;  %vm833_vm2 = vcmp.ne.s32.totalorder %v801_v21, 0 }
 0x1eb   : > { %v3025_v28 = vsel %vm3004_vm3, %v1600_v15, %v576_v8  ;;  %893 = vmax.xlane.f32.xlu1 %v892_v19  ;;  %v800_v8 = vunpack.c.1.s8 %v771_v29  ;;  %v742_v15 = vpack.c.b8 %v741_v60, %v741_v60  ;;  %v804_v42 = vunpack.c.1.s8 %v773_v31  ;;  %v431_v21 = vld [vmem:[#allocation7 + $0x8] sm:$0xff] }
 0x1ec   : > { %v3035_v9 = vsel %vm824_vm4, %v1601_v23, %v578_v16  ;;  %v582_v32 = vpop.f32.mrb[18].mxu0  ;;  %v802_v23 = vunpack.c.1.s8 %v772_v11  ;;  %v446_v11 = vld [vmem:[#allocation7 + $0x80] sm:$0xff] }
 0x1ed   : > { %v1602_v37 = vadd.f32 -1e+09, %v582_v32  ;;  %v584_v38 = vpop.f32.mrb[19].mxu0  ;;  %v895_v39 = vmax.f32 %v3025_v28, %v3035_v9  ;;  %vm832_vm0 = vcmp.ne.s32.totalorder %v800_v8, 0  ;;  %vm758_vm1 = vnez %v742_v15  ;;  %v430_v15 = vld [vmem:[#allocation7] sm:$0xff] }
 0x1ee   : > { %v1603_v43 = vadd.f32 -1e+09, %v584_v38  ;;  %vm834_vm3 = vcmp.ne.s32.totalorder %v802_v23, 0  ;;  %vm836_vm5 = vcmp.ne.s32.totalorder %v804_v42, 0  ;;  %v448_v23 = vld [vmem:[#allocation7 + $0x90] sm:$0xff]  ;;  %v435_v42 = vld [vmem:[#allocation7 + $0x28] sm:$0xff] }
 0x1ef   : > { %v3050_v48 = vsel %vm3027_vm6, %v1602_v37, %v582_v32  ;;  %896 = vmax.xlane.f32.xlu0 %v895_v39  ;;  %v803_v37 = vunpack.c.0.s8 %v773_v31  ;;  %v432_v31 = vld [vmem:[#allocation7 + $0x10] sm:$0xff] }
 0x1f0   : > { %v3054_v50 = vsel %vm3031_vm7, %v1603_v43, %v584_v38  ;;  %v588_v51 = vpop.f32.mrb[20].mxu0  ;;  %v774_v43 = vsel %vm758_vm1, 16843009, %v2410_v18 }
 0x1f1   : > { %v1604_v55 = vadd.f32 -1e+09, %v588_v51  ;;  %v590_v56 = vpop.f32.mrb[21].mxu0  ;;  %v898_v22 = vmax.f32 %v3050_v48, %v3054_v50  ;;  %vm835_vm4 = vcmp.ne.s32.totalorder %v803_v37, 0  ;;  %v805_v52 = vunpack.c.0.s8 %v774_v43  ;;  %v451_v37 = vld [vmem:[#allocation7 + $0xa8] sm:$0xff] }
 0x1f2   : > { %v1605_v58 = vadd.f32 -1e+09, %v590_v56 }
 0x1f3   : > { %v3061_v61 = vsel %vm827_vm9, %v1604_v55, %v588_v51  ;;  %899 = vmax.xlane.f32.xlu1 %v898_v22  ;;  %v806_v22 = vunpack.c.1.s8 %v774_v43  ;;  %vm837_vm6 = vcmp.ne.s32.totalorder %v805_v52, 0 }
 0x1f4   : > { %v3063_v63 = vsel %vm828_vm10, %v1605_v58, %v590_v56  ;;  %v594_v0 = vpop.f32.mrb[22].mxu0 }
 0x1f5   : > { %v1606_v3 = vadd.f32 -1e+09, %v594_v0  ;;  %v596_v4 = vpop.f32.mrb[23].mxu0  ;;  %v901_v5 = vmax.f32 %v3061_v61, %v3063_v63  ;;  %vm838_vm7 = vcmp.ne.s32.totalorder %v806_v22, 0 }
 0x1f6   : > { %v1607_v14 = vadd.f32 -1e+09, %v596_v4 }
 0x1f7   : > { %v3068_v16 = vsel %vm829_vm12, %v1606_v3, %v594_v0  ;;  %902 = vmax.xlane.f32.xlu0 %v901_v5 }
 0x1f8   : > { %v3070_v19 = vsel %vm830_vm13, %v1607_v14, %v596_v4  ;;  %v600_v20 = vpop.f32.mrb[24].mxu0  ;;  %v447_v14 = vld [vmem:[#allocation7 + $0x88] sm:$0xff] }
 0x1f9   : > { %v1608_v24 = vadd.f32 -1e+09, %v600_v20  ;;  %v602_v26 = vpop.f32.mrb[25].mxu0  ;;  %v904_v30 = vmax.f32 %v3068_v16, %v3070_v19 }
 0x1fa   : > { %v1609_v32 = vadd.f32 -1e+09, %v602_v26 }
 0x1fb   : > { %v3075_v33 = vsel %vm831_vm15, %v1608_v24, %v600_v20  ;;  %905 = vmax.xlane.f32.xlu1 %v904_v30  ;;  %v1808_v20 = vpack.c.bf16 %v447_v14, %v446_v11  ;;  %v449_v24 = vld [vmem:[#allocation7 + $0x98] sm:$0xff] }
 0x1fc   : > { %v3077_v34 = vsel %vm832_vm0, %v1609_v32, %v602_v26  ;;  %v606_v35 = vpop.f32.mrb[26].mxu0  ;;  %v1810_v26 = vpack.c.bf16 %v431_v21, %v430_v15  ;;  %v1812_v30 = vpack.c.bf16 %v449_v24, %v448_v23  ;;  %v433_v32 = vld [vmem:[#allocation7 + $0x18] sm:$0xff] }
 0x1fd   : > { %v1610_v38 = vadd.f32 -1e+09, %v606_v35  ;;  %v608_v39 = vpop.f32.mrb[27].mxu0  ;;  %v907_v41 = vmax.f32 %v3075_v33, %v3077_v34  ;;  %1809 = vmatprep.subr.bf16.mxu1 %v1808_v20 }
 0x1fe   : > { %v1611_v45 = vadd.f32 -1e+09, %v608_v39  ;;  %1811 = vmatpush3.bf16.msra.mxu1 %v1810_v26 }
 0x1ff   : > { %v3082_v46 = vsel %vm833_vm2, %v1610_v38, %v606_v35  ;;  %908 = vmax.xlane.f32.xlu0 %v907_v41  ;;  %v450_v35 = vld [vmem:[#allocation7 + $0xa0] sm:$0xff]  ;;  %v1814_v38 = vpack.c.bf16 %v433_v32, %v432_v31  ;;  %1813 = vmatprep.subr.bf16.mxu1 %v1812_v30 }
 0x200   : > { %v3084_v47 = vsel %vm834_vm3, %v1611_v45, %v608_v39  ;;  %v612_v51 = vpop.f32.mrb[28].mxu0  ;;  %v1816_v39 = vpack.c.bf16 %v451_v37, %v450_v35  ;;  %v434_v41 = vld [vmem:[#allocation7 + $0x20] sm:$0xff] }
 0x201   : > { %v1612_v54 = vadd.f32 -1e+09, %v612_v51  ;;  %v614_v55 = vpop.f32.mrb[29].mxu0  ;;  %v910_v56 = vmax.f32 %v3082_v46, %v3084_v47  ;;  %v1818_v43 = vpack.c.bf16 %v435_v42, %v434_v41 }
 0x202   : > { %v1613_v29 = vadd.f32 -1e+09, %v614_v55  ;;  %1815 = vmatpush3.bf16.msra.mxu1 %v1814_v38 }
 0x203   : > { %v3088_v58 = vsel %vm835_vm4, %v1612_v54, %v612_v51  ;;  %911 = vmax.xlane.f32.xlu1 %v910_v56  ;;  %1817 = vmatprep.subr.bf16.mxu1 %v1816_v39 }
 0x204   : > { %v3090_v18 = vsel %vm836_vm5, %v1613_v29, %v614_v55  ;;  %v618_v59 = vpop.f32.mrb[30].mxu0 }
 0x205   : > { %v1614_v60 = vadd.f32 -1e+09, %v618_v59  ;;  %v620_v0 = vpop.f32.mrb[31].mxu0  ;;  %v913_v1 = vmax.f32 %v3088_v58, %v3090_v18 }
 0x206   : > { %v1615_v3 = vadd.f32 -1e+09, %v620_v0  ;;  %1819 = vmatpush3.bf16.msra.mxu1 %v1818_v43 }
 0x207   : > { %v3094_v4 = vsel %vm837_vm6, %v1614_v60, %v618_v59  ;;  %914 = vmax.xlane.f32.xlu0 %v913_v1 }
 0x208   : > { %v3096_v5 = vsel %vm838_vm7, %v1615_v3, %v620_v0 }
 0x209   : > { %v916_v8 = vmax.f32 %v3094_v4, %v3096_v5 }
 0x20b   : > { %917 = vmax.xlane.f32.xlu1 %v916_v8 }
 0x25c   : > { %v873_v45 = vpop.xlane.xlu0 %872 }
 0x25d   : > { %v919_v51 = vsub.f32 %v2848_v7, %v873_v45  ;;  %v920_v52 = vsub.f32 %v2858_v12, %v873_v45 }
 0x25f   : > { %v951_v54 = vmul.f32 1.442695, %v919_v51  ;;  %v953_v55 = vmul.f32 1.442695, %v920_v52 }
 0x260   : > { %v876_v56 = vpop.xlane.xlu0 %875 }
 0x261   : > { %1998 = vpow2.f32 %v951_v54  ;;  %v921_v22 = vsub.f32 %v2870_v25, %v876_v56  ;;  %v922_v29 = vsub.f32 %v2874_v27, %v876_v56  ;;  %v453_v56 = vld [vmem:[#allocation7 + $0xb8] sm:$0xff] }
 0x262   : > { %2000 = vpow2.f32 %v953_v55 }
 0x263   : > { %v955_v59 = vmul.f32 1.442695, %v921_v22  ;;  %v957_v60 = vmul.f32 1.442695, %v922_v29 }
 0x264   : > { %v879_v0 = vpop.xlane.xlu1 %878 }
 0x265   : > { %2002 = vpow2.f32 %v955_v59  ;;  %v923_v1 = vsub.f32 %v2890_v40, %v879_v0  ;;  %v924_v3 = vsub.f32 %v2896_v44, %v879_v0  ;;  %v436_v0 = vld [vmem:[#allocation7 + $0x30] sm:$0xff] }
 0x266   : > { %2004 = vpow2.f32 %v957_v60 }
 0x267   : > { %v959_v7 = vmul.f32 1.442695, %v923_v1  ;;  %v961_v12 = vmul.f32 1.442695, %v924_v3  ;;  %v437_v1 = vld [vmem:[#allocation7 + $0x38] sm:$0xff] }
 0x268   : > { %v882_v8 = vpop.xlane.xlu1 %881 }
 0x269   : > { %2006 = vpow2.f32 %v959_v7  ;;  %v925_v11 = vsub.f32 %v2908_v57, %v882_v8  ;;  %v926_v25 = vsub.f32 %v2913_v62, %v882_v8 }
 0x26a   : > { %2008 = vpow2.f32 %v961_v12 }
 0x26b   : > { %v3108_v27 = vpop.eup %1998  ;;  %v963_v14 = vmul.f32 1.442695, %v925_v11  ;;  %v965_v15 = vmul.f32 1.442695, %v926_v25  ;;  %v454_v11 = vld [vmem:[#allocation7 + $0xc0] sm:$0xff]  ;;  %v455_v25 = vld [vmem:[#allocation7 + $0xc8] sm:$0xff] }
 0x26c   : > { %v3110_v20 = vpop.eup %2000  ;;  %v885_v21 = vpop.xlane.xlu0 %884 }
 0x26d   : > { %2010 = vpow2.f32 %v963_v14  ;;  %v927_v40 = vsub.f32 %v2932_v13, %v885_v21  ;;  %v928_v44 = vsub.f32 %v2940_v17, %v885_v21  ;;  %v1015_v23 = vadd.f32 %v3110_v20, %v3108_v27 }
 0x26e   : > { %2012 = vpow2.f32 %v965_v15 }
 0x26f   : > { %v3116_v57 = vpop.eup %2002  ;;  %v967_v62 = vmul.f32 1.442695, %v927_v40  ;;  %v969_v24 = vmul.f32 1.442695, %v928_v44  ;;  %1016 = vadd.xlane.f32.xlu0 %v1015_v23  ;;  %v1824_v40 = vpack.c.bf16 %v455_v25, %v454_v11  ;;  %v438_v44 = vld [vmem:[#allocation7 + $0x40] sm:$0xff]  ;;  %v439_v23 = vld [vmem:[#allocation7 + $0x48] sm:$0xff] }
 0x270   : > { %v3118_v26 = vpop.eup %2004  ;;  %v888_v30 = vpop.xlane.xlu1 %887 }
 0x271   : > { %2014 = vpow2.f32 %v967_v62  ;;  %v929_v31 = vsub.f32 %v2958_v10, %v888_v30  ;;  %v930_v32 = vsub.f32 %v2969_v36, %v888_v30  ;;  %v1018_v13 = vadd.f32 %v3118_v26, %v3116_v57 }
 0x272   : > { %2016 = vpow2.f32 %v969_v24 }
 0x273   : > { %v3124_v17 = vpop.eup %2006  ;;  %v971_v35 = vmul.f32 1.442695, %v929_v31  ;;  %v973_v37 = vmul.f32 1.442695, %v930_v32  ;;  %1019 = vadd.xlane.f32.xlu1 %v1018_v13  ;;  %v456_v32 = vld [vmem:[#allocation7 + $0xd0] sm:$0xff]  ;;  %v457_v13 = vld [vmem:[#allocation7 + $0xd8] sm:$0xff] }
 0x274   : > { %v3126_v38 = vpop.eup %2008  ;;  %v891_v39 = vpop.xlane.xlu0 %890 }
 0x275   : > { %2018 = vpow2.f32 %v971_v35  ;;  %v931_v41 = vsub.f32 %v2985_v49, %v891_v39  ;;  %v932_v42 = vsub.f32 %v2990_v53, %v891_v39  ;;  %v1021_v10 = vadd.f32 %v3126_v38, %v3124_v17  ;;  %v452_v53 = vld [vmem:[#allocation7 + $0xb0] sm:$0xff] }
 0x276   : > { %2020 = vpow2.f32 %v973_v37  ;;  %v1820_v60 = vpack.c.bf16 %v453_v56, %v452_v53 }
 0x277   : > { %v3132_v36 = vpop.eup %2010  ;;  %v975_v43 = vmul.f32 1.442695, %v931_v41  ;;  %v977_v45 = vmul.f32 1.442695, %v932_v42  ;;  %1022 = vadd.xlane.f32.xlu0 %v1021_v10  ;;  %v1828_v41 = vpack.c.bf16 %v457_v13, %v456_v32  ;;  %v440_v42 = vld [vmem:[#allocation7 + $0x50] sm:$0xff]  ;;  %v441_v10 = vld [vmem:[#allocation7 + $0x58] sm:$0xff] }
 0x278   : > { %v3134_v51 = vpop.eup %2012  ;;  %v894_v52 = vpop.xlane.xlu1 %893  ;;  %1821 = vmatprep.subr.bf16.mxu1 %v1820_v60  ;;  %v442_v60 = vld [vmem:[#allocation7 + $0x60] sm:$0xff] }
 0x279   : > { %2022 = vpow2.f32 %v975_v43  ;;  %v933_v54 = vsub.f32 %v3002_v2, %v894_v52  ;;  %v934_v55 = vsub.f32 %v3010_v6, %v894_v52  ;;  %v1024_v49 = vadd.f32 %v3134_v51, %v3132_v36 }
 0x27a   : > { %2024 = vpow2.f32 %v977_v45  ;;  %v1822_v2 = vpack.c.bf16 %v437_v1, %v436_v0  ;;  %v443_v0 = vld [vmem:[#allocation7 + $0x68] sm:$0xff] }
 0x27b   : > { %v3140_v22 = vpop.eup %2014  ;;  %v979_v29 = vmul.f32 1.442695, %v933_v54  ;;  %v981_v59 = vmul.f32 1.442695, %v934_v55  ;;  %1025 = vadd.xlane.f32.xlu1 %v1024_v49  ;;  %v458_v55 = vld [vmem:[#allocation7 + $0xe0] sm:$0xff]  ;;  %v459_v49 = vld [vmem:[#allocation7 + $0xe8] sm:$0xff] }
 0x27c   : > { %v3142_v3 = vpop.eup %2016  ;;  %v897_v7 = vpop.xlane.xlu0 %896  ;;  %1823 = vmatpush3.bf16.msra.mxu1 %v1822_v2 }
 0x27d   : > { %2026 = vpow2.f32 %v979_v29  ;;  %v935_v6 = vsub.f32 %v3025_v28, %v897_v7  ;;  %v936_v12 = vsub.f32 %v3035_v9, %v897_v7  ;;  %v1027_v8 = vadd.f32 %v3142_v3, %v3140_v22  ;;  %1825 = vmatprep.subr.bf16.mxu1 %v1824_v40  ;;  %v444_v40 = vld [vmem:[#allocation7 + $0x70] sm:$0xff] }
 0x27e   : > { %2028 = vpow2.f32 %v981_v59  ;;  %v1826_v9 = vpack.c.bf16 %v439_v23, %v438_v44  ;;  %v1832_v59 = vpack.c.bf16 %v459_v49, %v458_v55  ;;  %v445_v44 = vld [vmem:[#allocation7 + $0x78] sm:$0xff] }
 0x27f   : > { %v3148_v14 = vpop.eup %2018  ;;  %v983_v15 = vmul.f32 1.442695, %v935_v6  ;;  %v985_v21 = vmul.f32 1.442695, %v936_v12  ;;  %1028 = vadd.xlane.f32.xlu0 %v1027_v8  ;;  %v460_v12 = vld [vmem:[#allocation7 + $0xf0] sm:$0xff]  ;;  %v461_v8 = vld [vmem:[#allocation7 + $0xf8] sm:$0xff] }
 0x280   : > { %v3150_v62 = vpop.eup %2020  ;;  %v900_v28 = vpop.xlane.xlu1 %899  ;;  %1827 = vmatpush3.bf16.msra.mxu1 %v1826_v9 }
 0x281   : > { %2030 = vpow2.f32 %v983_v15  ;;  %v937_v24 = vsub.f32 %v3050_v48, %v900_v28  ;;  %v938_v30 = vsub.f32 %v3054_v50, %v900_v28  ;;  %v1030_v31 = vadd.f32 %v3150_v62, %v3148_v14  ;;  %1829 = vmatprep.subr.bf16.mxu1 %v1828_v41 }
 0x282   : > { %2032 = vpow2.f32 %v985_v21  ;;  %v1830_v50 = vpack.c.bf16 %v441_v10, %v440_v42  ;;  %v1836_v21 = vpack.c.bf16 %v461_v8, %v460_v12 }
 0x283   : > { %v3156_v35 = vpop.eup %2022  ;;  %v987_v37 = vmul.f32 1.442695, %v937_v24  ;;  %v989_v39 = vmul.f32 1.442695, %v938_v30  ;;  %1031 = vadd.xlane.f32.xlu1 %v1030_v31 }
 0x284   : > { %v3158_v43 = vpop.eup %2024  ;;  %v903_v48 = vpop.xlane.xlu0 %902  ;;  %1831 = vmatpush3.bf16.msra.mxu1 %v1830_v50 }
 0x285   : > { %2034 = vpow2.f32 %v987_v37  ;;  %v939_v45 = vsub.f32 %v3061_v61, %v903_v48  ;;  %v940_v52 = vsub.f32 %v3063_v63, %v903_v48  ;;  %v1033_v54 = vadd.f32 %v3158_v43, %v3156_v35  ;;  %1833 = vmatprep.subr.bf16.mxu1 %v1832_v59 }
 0x286   : > { %2036 = vpow2.f32 %v989_v39  ;;  %v1834_v63 = vpack.c.bf16 %v443_v0, %v442_v60 }
 0x287   : > { %v3164_v53 = vpop.eup %2026  ;;  %v991_v56 = vmul.f32 1.442695, %v939_v45  ;;  %v993_v29 = vmul.f32 1.442695, %v940_v52  ;;  %1034 = vadd.xlane.f32.xlu0 %v1033_v54 }
 0x288   : > { %v3166_v1 = vpop.eup %2028  ;;  %v906_v61 = vpop.xlane.xlu1 %905  ;;  %1835 = vmatpush3.bf16.msra.mxu1 %v1834_v63 }
 0x289   : > { %2038 = vpow2.f32 %v991_v56  ;;  %v941_v7 = vsub.f32 %v3068_v16, %v906_v61  ;;  %v942_v2 = vsub.f32 %v3070_v19, %v906_v61  ;;  %v1036_v6 = vadd.f32 %v3166_v1, %v3164_v53  ;;  %1837 = vmatprep.subr.bf16.mxu1 %v1836_v21 }
 0x28a   : > { %2040 = vpow2.f32 %v993_v29  ;;  %v1838_v19 = vpack.c.bf16 %v445_v44, %v444_v40 }
 0x28b   : > { %v3172_v11 = vpop.eup %2030  ;;  %v995_v25 = vmul.f32 1.442695, %v941_v7  ;;  %v997_v15 = vmul.f32 1.442695, %v942_v2  ;;  %1037 = vadd.xlane.f32.xlu1 %v1036_v6 }
 0x28c   : > { %v3174_v23 = vpop.eup %2032  ;;  %v909_v16 = vpop.xlane.xlu0 %908  ;;  %1839 = vmatpush3.bf16.msra.mxu1 %v1838_v19 }
 0x28d   : > { %2042 = vpow2.f32 %v995_v25  ;;  %v943_v28 = vsub.f32 %v3075_v33, %v909_v16  ;;  %v944_v9 = vsub.f32 %v3077_v34, %v909_v16  ;;  %v1039_v24 = vadd.f32 %v3174_v23, %v3172_v11 }
 0x28e   : > { %2044 = vpow2.f32 %v997_v15 }
 0x28f   : > { %v3180_v30 = vpop.eup %2034  ;;  %v999_v31 = vmul.f32 1.442695, %v943_v28  ;;  %v1001_v32 = vmul.f32 1.442695, %v944_v9  ;;  %1040 = vadd.xlane.f32.xlu0 %v1039_v24 }
 0x290   : > { %v3182_v13 = vpop.eup %2036  ;;  %v912_v37 = vpop.xlane.xlu1 %911 }
 0x291   : > { %2046 = vpow2.f32 %v999_v31  ;;  %v945_v39 = vsub.f32 %v3082_v46, %v912_v37  ;;  %v946_v33 = vsub.f32 %v3084_v47, %v912_v37  ;;  %v1042_v34 = vadd.f32 %v3182_v13, %v3180_v30 }
 0x292   : > { %2048 = vpow2.f32 %v1001_v32 }
 0x293   : > { %v3188_v41 = vpop.eup %2038  ;;  %v1003_v42 = vmul.f32 1.442695, %v945_v39  ;;  %v1005_v10 = vmul.f32 1.442695, %v946_v33  ;;  %1043 = vadd.xlane.f32.xlu1 %v1042_v34 }
 0x294   : > { %v3190_v48 = vpop.eup %2040  ;;  %v915_v50 = vpop.xlane.xlu0 %914 }
 0x295   : > { %2050 = vpow2.f32 %v1003_v42  ;;  %v947_v45 = vsub.f32 %v3088_v58, %v915_v50  ;;  %v948_v52 = vsub.f32 %v3090_v18, %v915_v50  ;;  %v1045_v46 = vadd.f32 %v3190_v48, %v3188_v41 }
 0x296   : > { %2052 = vpow2.f32 %v1005_v10 }
 0x297   : > { %v3196_v47 = vpop.eup %2042  ;;  %v1007_v54 = vmul.f32 1.442695, %v947_v45  ;;  %v1009_v55 = vmul.f32 1.442695, %v948_v52  ;;  %1046 = vadd.xlane.f32.xlu0 %v1045_v46 }
 0x298   : > { %v3198_v49 = vpop.eup %2044  ;;  %v918_v56 = vpop.xlane.xlu1 %917 }
 0x299   : > { %2054 = vpow2.f32 %v1007_v54  ;;  %v949_v29 = vsub.f32 %v3094_v4, %v918_v56  ;;  %v950_v59 = vsub.f32 %v3096_v5, %v918_v56  ;;  %v1048_v58 = vadd.f32 %v3198_v49, %v3196_v47 }
 0x29a   : > { %2056 = vpow2.f32 %v1009_v55 }
 0x29b   : > { %v3204_v18 = vpop.eup %2046  ;;  %v1011_v60 = vmul.f32 1.442695, %v949_v29  ;;  %v1013_v0 = vmul.f32 1.442695, %v950_v59  ;;  %1049 = vadd.xlane.f32.xlu1 %v1048_v58 }
 0x29c   : > { %v3206_v61 = vpop.eup %2048 }
 0x29d   : > { %2058 = vpow2.f32 %v1011_v60  ;;  %v1051_v63 = vadd.f32 %v3206_v61, %v3204_v18 }
 0x29e   : > { %2060 = vpow2.f32 %v1013_v0 }
 0x29f   : > { %v3210_v7 = vpop.eup %2050  ;;  %1052 = vadd.xlane.f32.xlu0 %v1051_v63 }
 0x2a0   : > { %v3212_v4 = vpop.eup %2052 }
 0x2a1   : > { %v1054_v5 = vadd.f32 %v3212_v4, %v3210_v7 }
 0x2a3   : > { %v3216_v2 = vpop.eup %2054  ;;  %1055 = vadd.xlane.f32.xlu1 %v1054_v5 }
 0x2a4   : > { %v3218_v6 = vpop.eup %2056 }
 0x2a5   : > { %v1057_v12 = vadd.f32 %v3218_v6, %v3216_v2 }
 0x2a7   : > { %v3222_v8 = vpop.eup %2058  ;;  %1058 = vadd.xlane.f32.xlu0 %v1057_v12 }
 0x2a8   : > { %v3224_v25 = vpop.eup %2060 }
 0x2a9   : > { %v1060_v15 = vadd.f32 %v3224_v25, %v3222_v8 }
 0x2ab   : > { %1061 = vadd.xlane.f32.xlu1 %v1060_v15 }
 0x2fc   : > { %v1017_v21 = vpop.xlane.xlu0 %1016 }
 0x2fd   : > { %2062 = vrcp.f32 %v1017_v21 }
 0x300   : > { %v1020_v40 = vpop.xlane.xlu1 %1019 }
 0x301   : > { %2064 = vrcp.f32 %v1020_v40 }
 0x304   : > { %v1023_v44 = vpop.xlane.xlu0 %1022 }
 0x305   : > { %2066 = vrcp.f32 %v1023_v44 }
 0x307   : > { %v2063_v16 = vpop.eup %2062 }
 0x308   : > { %v1079_v19 = vmul.f32 %v2063_v16, %v1017_v21  ;;  %v1026_v28 = vpop.xlane.xlu1 %1025 }
 0x309   : > { %2068 = vrcp.f32 %v1026_v28 }
 0x30a   : > { %v1095_v9 = vsub.f32 2.0, %v1079_v19 }
 0x30b   : > { %v2065_v24 = vpop.eup %2064 }
 0x30c   : > { %v1080_v31 = vmul.f32 %v2065_v24, %v1020_v40  ;;  %v1029_v32 = vpop.xlane.xlu0 %1028  ;;  %v1111_v37 = vmul.f32 %v2063_v16, %v1095_v9 }
 0x30d   : > { %2070 = vrcp.f32 %v1029_v32 }
 0x30e   : > { %v1096_v39 = vsub.f32 2.0, %v1080_v31  ;;  %v1128_v33 = vmul.f32 %v3110_v20, %v1111_v37  ;;  %v1127_v34 = vmul.f32 %v3108_v27, %v1111_v37 }
 0x30f   : > { %v2067_v42 = vpop.eup %2066 }
 0x310   : > { %v1112_v10 = vmul.f32 %v2065_v24, %v1096_v39  ;;  %v1081_v50 = vmul.f32 %v2067_v42, %v1023_v44  ;;  %1160 = vst [vmem:[%s3231_s7 + $0x8] sm:$0xff] %v1128_v33  ;;  %1255 = vmatprep.mubr.f32.mxu1 %v1128_v33  ;;  %v1032_v45 = vpop.xlane.xlu1 %1031  ;;  %1159 = vst [vmem:[%s3231_s7] sm:$0xff] %v1127_v34 }
 0x311   : > { %2072 = vrcp.f32 %v1032_v45  ;;  %1256 = vmatmul.mubr.f32.vlgmr.msra.gmra.mrb[0].mxu1 %v1127_v34 }
 0x312   : > { %v1097_v52 = vsub.f32 2.0, %v1081_v50  ;;  %v1130_v20 = vmul.f32 %v3118_v26, %v1112_v10  ;;  %v1129_v27 = vmul.f32 %v3116_v57, %v1112_v10 }
 0x313   : > { %v2069_v46 = vpop.eup %2068 }
 0x314   : > { %v1113_v54 = vmul.f32 %v2067_v42, %v1097_v52  ;;  %v1082_v55 = vmul.f32 %v2069_v46, %v1026_v28  ;;  %v1035_v56 = vpop.xlane.xlu0 %1034  ;;  %1162 = vst [vmem:[%s3231_s7 + $0x18] sm:$0xff] %v1130_v20  ;;  %1260 = vmatprep.mubr.f32.mxu1 %v1130_v20  ;;  %1161 = vst [vmem:[%s3231_s7 + $0x10] sm:$0xff] %v1129_v27 }
 0x315   : > { %2074 = vrcp.f32 %v1035_v56  ;;  %1261 = vmatmul.mubr.f32.gmra.mrb[2].mxu1 %v1129_v27 }
 0x316   : > { %v1098_v29 = vsub.f32 2.0, %v1082_v55  ;;  %v1132_v59 = vmul.f32 %v3126_v38, %v1113_v54  ;;  %v1131_v58 = vmul.f32 %v3124_v17, %v1113_v54 }
 0x317   : > { %v2071_v60 = vpop.eup %2070 }
 0x318   : > { %v1114_v26 = vmul.f32 %v2069_v46, %v1098_v29  ;;  %v1083_v57 = vmul.f32 %v2071_v60, %v1029_v32  ;;  %1164 = vst [vmem:[%s3231_s7 + $0x28] sm:$0xff] %v1132_v59  ;;  %1265 = vmatprep.mubr.f32.mxu1 %v1132_v59  ;;  %v1038_v0 = vpop.xlane.xlu1 %1037  ;;  %1163 = vst [vmem:[%s3231_s7 + $0x20] sm:$0xff] %v1131_v58 }
 0x319   : > { %2076 = vrcp.f32 %v1038_v0  ;;  %1266 = vmatmul.mubr.f32.gmra.mrb[4].mxu1 %v1131_v58 }
 0x31a   : > { %v1099_v63 = vsub.f32 2.0, %v1083_v57  ;;  %v1134_v5 = vmul.f32 %v3134_v51, %v1114_v26  ;;  %v1133_v12 = vmul.f32 %v3132_v36, %v1114_v26 }
 0x31b   : > { %v2073_v38 = vpop.eup %2072 }
 0x31c   : > { %v1115_v15 = vmul.f32 %v2071_v60, %v1099_v63  ;;  %v1084_v17 = vmul.f32 %v2073_v38, %v1032_v45  ;;  %v1041_v21 = vpop.xlane.xlu0 %1040  ;;  %1166 = vst [vmem:[%s3231_s7 + $0x38] sm:$0xff] %v1134_v5  ;;  %1270 = vmatprep.mubr.f32.mxu1 %v1134_v5  ;;  %1165 = vst [vmem:[%s3231_s7 + $0x30] sm:$0xff] %v1133_v12 }
 0x31d   : > { %2078 = vrcp.f32 %v1041_v21  ;;  %1271 = vmatmul.mubr.f32.gmra.mrb[6].mxu1 %v1133_v12 }
 0x31e   : > { %v1100_v40 = vsub.f32 2.0, %v1084_v17  ;;  %v1136_v44 = vmul.f32 %v3142_v3, %v1115_v15  ;;  %v1135_v16 = vmul.f32 %v3140_v22, %v1115_v15 }
 0x31f   : > { %v2075_v19 = vpop.eup %2074 }
 0x320   : > { %v1116_v51 = vmul.f32 %v2073_v38, %v1100_v40  ;;  %v1085_v36 = vmul.f32 %v2075_v19, %v1035_v56  ;;  %1168 = vst [vmem:[%s3231_s7 + $0x48] sm:$0xff] %v1136_v44  ;;  %1275 = vmatprep.mubr.f32.mxu1 %v1136_v44  ;;  %v1044_v28 = vpop.xlane.xlu1 %1043  ;;  %1167 = vst [vmem:[%s3231_s7 + $0x40] sm:$0xff] %v1135_v16 }
 0x321   : > { %2080 = vrcp.f32 %v1044_v28  ;;  %1276 = vmatmul.mubr.f32.gmra.mrb[8].mxu1 %v1135_v16 }
 0x322   : > { %v1101_v9 = vsub.f32 2.0, %v1085_v36  ;;  %v1138_v24 = vmul.f32 %v3150_v62, %v1116_v51  ;;  %v1137_v31 = vmul.f32 %v3148_v14, %v1116_v51 }
 0x323   : > { %v2077_v3 = vpop.eup %2076 }
 0x324   : > { %v1117_v32 = vmul.f32 %v2075_v19, %v1101_v9  ;;  %v1086_v22 = vmul.f32 %v2077_v3, %v1038_v0  ;;  %v1047_v37 = vpop.xlane.xlu0 %1046  ;;  %1170 = vst [vmem:[%s3231_s7 + $0x58] sm:$0xff] %v1138_v24  ;;  %1280 = vmatprep.mubr.f32.mxu1 %v1138_v24  ;;  %1169 = vst [vmem:[%s3231_s7 + $0x50] sm:$0xff] %v1137_v31 }
 0x325   : > { %2082 = vrcp.f32 %v1047_v37  ;;  %1281 = vmatmul.mubr.f32.gmra.mrb[10].mxu1 %v1137_v31 }
 0x326   : > { %v1102_v39 = vsub.f32 2.0, %v1086_v22  ;;  %v1140_v33 = vmul.f32 %v3158_v43, %v1117_v32  ;;  %v1139_v34 = vmul.f32 %v3156_v35, %v1117_v32 }
 0x327   : > { %v2079_v42 = vpop.eup %2078 }
 0x328   : > { %v1118_v62 = vmul.f32 %v2077_v3, %v1102_v39  ;;  %v1087_v14 = vmul.f32 %v2079_v42, %v1041_v21  ;;  %1172 = vst [vmem:[%s3231_s7 + $0x68] sm:$0xff] %v1140_v33  ;;  %1285 = vmatprep.mubr.f32.mxu1 %v1140_v33  ;;  %v1050_v10 = vpop.xlane.xlu1 %1049  ;;  %1171 = vst [vmem:[%s3231_s7 + $0x60] sm:$0xff] %v1139_v34 }
 0x329   : > { %2084 = vrcp.f32 %v1050_v10  ;;  %1286 = vmatmul.mubr.f32.gmra.mrb[12].mxu1 %v1139_v34 }
 0x32a   : > { %v1103_v50 = vsub.f32 2.0, %v1087_v14  ;;  %v1142_v45 = vmul.f32 %v3166_v1, %v1118_v62  ;;  %v1141_v52 = vmul.f32 %v3164_v53, %v1118_v62 }
 0x32b   : > { %v2081_v43 = vpop.eup %2080 }
 0x32c   : > { %v1119_v20 = vmul.f32 %v2079_v42, %v1103_v50  ;;  %v1088_v35 = vmul.f32 %v2081_v43, %v1044_v28  ;;  %v1053_v27 = vpop.xlane.xlu0 %1052  ;;  %1174 = vst [vmem:[%s3231_s7 + $0x78] sm:$0xff] %v1142_v45  ;;  %1290 = vmatprep.mubr.f32.mxu1 %v1142_v45  ;;  %1173 = vst [vmem:[%s3231_s7 + $0x70] sm:$0xff] %v1141_v52 }
 0x32d   : > { %2086 = vrcp.f32 %v1053_v27  ;;  %1291 = vmatmul.mubr.f32.gmra.mrb[14].mxu1 %v1141_v52 }
 0x32e   : > { %v1104_v46 = vsub.f32 2.0, %v1088_v35  ;;  %v1144_v54 = vmul.f32 %v3174_v23, %v1119_v20  ;;  %v1143_v55 = vmul.f32 %v3172_v11, %v1119_v20 }
 0x32f   : > { %v2083_v56 = vpop.eup %2082 }
 0x330   : > { %v1120_v1 = vmul.f32 %v2081_v43, %v1104_v46  ;;  %v1089_v53 = vmul.f32 %v2083_v56, %v1047_v37  ;;  %1176 = vst [vmem:[%s3231_s7 + $0x88] sm:$0xff] %v1144_v54  ;;  %1295 = vmatprep.mubr.f32.mxu1 %v1144_v54  ;;  %v1056_v29 = vpop.xlane.xlu1 %1055  ;;  %1175 = vst [vmem:[%s3231_s7 + $0x80] sm:$0xff] %v1143_v55 }
 0x331   : > { %2088 = vrcp.f32 %v1056_v29  ;;  %1296 = vmatmul.mubr.f32.gmra.mrb[16].mxu1 %v1143_v55 }
 0x332   : > { %v1105_v59 = vsub.f32 2.0, %v1089_v53  ;;  %v1146_v58 = vmul.f32 %v3182_v13, %v1120_v1  ;;  %v1145_v60 = vmul.f32 %v3180_v30, %v1120_v1 }
 0x333   : > { %v2085_v23 = vpop.eup %2084 }
 0x334   : > { %v1121_v26 = vmul.f32 %v2083_v56, %v1105_v59  ;;  %v1090_v11 = vmul.f32 %v2085_v23, %v1050_v10  ;;  %v1059_v57 = vpop.xlane.xlu0 %1058  ;;  %1178 = vst [vmem:[%s3231_s7 + $0x98] sm:$0xff] %v1146_v58  ;;  %1300 = vmatprep.mubr.f32.mxu1 %v1146_v58  ;;  %1177 = vst [vmem:[%s3231_s7 + $0x90] sm:$0xff] %v1145_v60 }
 0x335   : > { %2090 = vrcp.f32 %v1059_v57  ;;  %1301 = vmatmul.mubr.f32.gmra.mrb[18].mxu1 %v1145_v60 }
 0x336   : > { %v1106_v0 = vsub.f32 2.0, %v1090_v11  ;;  %v1148_v63 = vmul.f32 %v3190_v48, %v1121_v26  ;;  %v1147_v5 = vmul.f32 %v3188_v41, %v1121_v26 }
 0x337   : > { %v2087_v13 = vpop.eup %2086 }
 0x338   : > { %v1122_v12 = vmul.f32 %v2085_v23, %v1106_v0  ;;  %v1091_v30 = vmul.f32 %v2087_v13, %v1053_v27  ;;  %1180 = vst [vmem:[%s3231_s7 + $0xa8] sm:$0xff] %v1148_v63  ;;  %1305 = vmatprep.mubr.f32.mxu1 %v1148_v63  ;;  %v1062_v38 = vpop.xlane.xlu1 %1061  ;;  %1179 = vst [vmem:[%s3231_s7 + $0xa0] sm:$0xff] %v1147_v5 }
 0x339   : > { %2092 = vrcp.f32 %v1062_v38  ;;  %1306 = vmatmul.mubr.f32.gmra.mrb[20].mxu1 %v1147_v5 }
 0x33a   : > { %v1107_v15 = vsub.f32 2.0, %v1091_v30  ;;  %v1150_v17 = vmul.f32 %v3198_v49, %v1122_v12  ;;  %v1149_v21 = vmul.f32 %v3196_v47, %v1122_v12 }
 0x33b   : > { %v2089_v48 = vpop.eup %2088 }
 0x33c   : > { %v1123_v41 = vmul.f32 %v2087_v13, %v1107_v15  ;;  %v1092_v40 = vmul.f32 %v2089_v48, %v1056_v29  ;;  %1182 = vst [vmem:[%s3231_s7 + $0xb8] sm:$0xff] %v1150_v17  ;;  %1310 = vmatprep.mubr.f32.mxu1 %v1150_v17  ;;  %1181 = vst [vmem:[%s3231_s7 + $0xb0] sm:$0xff] %v1149_v21 }
 0x33d   : > { %1311 = vmatmul.mubr.f32.gmra.mrb[22].mxu1 %v1149_v21 }
 0x33e   : > { %v1108_v44 = vsub.f32 2.0, %v1092_v40  ;;  %v1152_v16 = vmul.f32 %v3206_v61, %v1123_v41  ;;  %v1151_v19 = vmul.f32 %v3204_v18, %v1123_v41 }
 0x33f   : > { %v2091_v51 = vpop.eup %2090 }
 0x340   : > { %v1124_v36 = vmul.f32 %v2089_v48, %v1108_v44  ;;  %v1093_v49 = vmul.f32 %v2091_v51, %v1059_v57  ;;  %1184 = vst [vmem:[%s3231_s7 + $0xc8] sm:$0xff] %v1152_v16  ;;  %1315 = vmatprep.mubr.f32.mxu1 %v1152_v16  ;;  %1183 = vst [vmem:[%s3231_s7 + $0xc0] sm:$0xff] %v1151_v19 }
 0x341   : > { %1316 = vmatmul.mubr.f32.gmra.mrb[24].mxu1 %v1151_v19 }
 0x342   : > { %v1109_v47 = vsub.f32 2.0, %v1093_v49  ;;  %v1154_v28 = vmul.f32 %v3212_v4, %v1124_v36  ;;  %v1153_v9 = vmul.f32 %v3210_v7, %v1124_v36 }
 0x343   : > { %v2093_v24 = vpop.eup %2092 }
 0x344   : > { %v1125_v31 = vmul.f32 %v2091_v51, %v1109_v47  ;;  %v1094_v61 = vmul.f32 %v2093_v24, %v1062_v38  ;;  %1186 = vst [vmem:[%s3231_s7 + $0xd8] sm:$0xff] %v1154_v28  ;;  %1320 = vmatprep.mubr.f32.mxu1 %v1154_v28  ;;  %1185 = vst [vmem:[%s3231_s7 + $0xd0] sm:$0xff] %v1153_v9 }
 0x345   : > { %1321 = vmatmul.mubr.f32.gmra.mrb[26].mxu1 %v1153_v9 }
 0x346   : > { %v1110_v18 = vsub.f32 2.0, %v1094_v61  ;;  %v1156_v3 = vmul.f32 %v3218_v6, %v1125_v31  ;;  %v1155_v32 = vmul.f32 %v3216_v2, %v1125_v31 }
 0x348   : > { %v1126_v4 = vmul.f32 %v2093_v24, %v1110_v18  ;;  %1188 = vst [vmem:[%s3231_s7 + $0xe8] sm:$0xff] %v1156_v3  ;;  %1325 = vmatprep.mubr.f32.mxu1 %v1156_v3  ;;  %1187 = vst [vmem:[%s3231_s7 + $0xe0] sm:$0xff] %v1155_v32 }
 0x349   : > { %1326 = vmatmul.mubr.f32.gmra.mrb[28].mxu1 %v1155_v32 }
 0x34a   : > { %v1158_v7 = vmul.f32 %v3224_v25, %v1126_v4  ;;  %v1157_v22 = vmul.f32 %v3222_v8, %v1126_v4 }
 0x34c   : > { %1190 = vst [vmem:[%s3231_s7 + $0xf8] sm:$0xff] %v1158_v7  ;;  %1330 = vmatprep.mubr.f32.mxu1 %v1158_v7  ;;  %1189 = vst [vmem:[%s3231_s7 + $0xf0] sm:$0xff] %v1157_v22  ;;  %s2218_s7 = sshll.u32 %s2411_s10, 4  ;;  %s2219_s7 = int_to_ptr.vmem [resolvable:$false] %s2218_s7 }
 0x34d   : > { %1331 = vmatmul.mubr.f32.gmra.mrb[30].mxu1 %v1157_v22  ;;  %s2220_s14 = scalar_lea.vmem %s2219_s7, 8192  ;;  %p2221_p4 = scmp.lt.s32.totalorder %s3298_s8, %s2219_s7 }
 0x34e   : > { %p2222_p5 = scmp.lt.s32.totalorder %s2220_s14, %s2214_s16 }
 0x350   : > { %p2223_p11 = por %p2222_p5, %p2221_p4 }
 0x352   : > { %p2224_p13 = pnand %p2223_p11, %p2217_p10 }
 0x354   : > { %2227 = shalt.err (!%p2224_p13)
}
 0x355   : > { %s2228_s21 = scalar_lea.hbm %s3303_s1, 4096  ;;  %s2232_s22 = scalar_lea.hbm %s3546_s12, 16384 }
 0x356   : > { %p2229_p12 = scmp.ne.s32.totalorder %s3303_s1, %s2228_s21  ;;  %p2233_p7 = scmp.lt.u32.totalorder %s3303_s1, %s3546_s12 }
 0x357   : > { %p2234_p6 = scmp.lt.u32.totalorder %s2232_s22, %s2228_s21  ;;  %p2236_p8 = scmp.lt.u32.totalorder %s2228_s21, %s3303_s1 }
 0x358   : > { %p2230_p3 = pnand %p2229_p12, %p3547_p0 }
 0x359   : > { %p2235_p2 = por %p2234_p6, %p2233_p7 }
 0x35a   : > { %p2231_p9 = pneg %p2230_p3 }
 0x35b   : > { %p2237_p1 = por %p2236_p8, %p2235_p2 }
 0x35d   : > { %p2238_p10 = pnand %p2237_p1, %p2231_p9 }
 0x35f   : > { %2241 = shalt.err (!%p2238_p10)
}
 0x360   : > { %s2412_s16 = smov 256   ;;  %s2413_s7 = smov 16  }
 0x361   : > { %1849 = dma.vmem_to_hbm [thread:$0]  (%p3547_p0), %s3298_s8, 4096, %s3303_s1, %s1358_s18, %s2412_s16, %s2412_s16, %s2413_s7  }
 0x362   : > { %s3331_s14 = scalar_lea.vmem [#allocation10], %s1580_s15  ;;  %s1618_s15 = sshll.u32 %s3543_s9, 4 }
 0x363   : > { %s1619_s8 = sshll.u32 %s3544_s17, 5  ;;  %s1373_s21 = sshll.u32 %s3331_s14, 4  ;;  %s3356_s21 = int_to_ptr.vmem [resolvable:$true] %s1373_s21 }
 0x364   : > { %s1370_s1 = sadd.s32 %s1619_s8, %s1618_s15  ;;  %s3548_s22 = sld [smem:[#allocation28_spill]] }
 0x365   : > { %s1620_s18 = sshll.u32 %s1370_s1, 7  ;;  %s1353_s17 = scalar_lea.sflag [#allocation4], %s2777_s28 }
 0x366   : > { %s2242_s10 = scalar_lea.vmem %s3356_s21, 2048  ;;  %s2414_s16 = smov [#allocation10]  }
 0x367   : > { %p2243_p4 = scmp.ne.s32.totalorder %s3356_s21, %s2242_s10  ;;  %s2246_s7 = sshll.u32 %s2414_s16, 4  ;;  %s2247_s7 = int_to_ptr.vmem [resolvable:$false] %s2246_s7 }
 0x368   : > { %s2248_s15 = scalar_lea.vmem %s2247_s7, 4096  ;;  %p2249_p13 = scmp.lt.s32.totalorder %s3356_s21, %s2247_s7 }
 0x369   : > { %p2244_p5 = pnand %p2243_p4, %p3547_p0  ;;  %p2250_p12 = scmp.lt.s32.totalorder %s2248_s15, %s2242_s10 }
 0x36a   : > { %s3549_s11 = smov %s3548_s22  ;;  %s3354_s9 = scalar_lea.hbm %s3548_s22, %s1620_s18 }
 0x36b   : > { %p2245_p11 = pneg %p2244_p5  ;;  %p2251_p3 = por %p2250_p12, %p2249_p13 }
 0x36d   : > { %p2252_p9 = pnand %p2251_p3, %p2245_p11 }
 0x3e4   : > { %v1728_v2 = vpop.f32.mrb[0].mxu1 }
 0x3e5   : > { %v1729_v6 = vpop.f32.mrb[1].mxu1 }
 0x3e6   : > { %v1730_v8 = vadd.f32 %v1729_v6, %v1728_v2 }
 0x3e8   : > { %1336 = vst [vmem:[%s3331_s14] sm:$0xff] %v1730_v8  ;;  %v1731_v25 = vpop.f32.mrb[2].mxu1 }
 0x3e9   : > { %v1732_v37 = vpop.f32.mrb[3].mxu1 }
 0x3ea   : > { %v1733_v39 = vadd.f32 %v1732_v37, %v1731_v25 }
 0x3ec   : > { %1337 = vst [vmem:[%s3331_s14 + $0x8] sm:$0xff] %v1733_v39  ;;  %v1734_v33 = vpop.f32.mrb[4].mxu1 }
 0x3ed   : > { %v1735_v34 = vpop.f32.mrb[5].mxu1 }
 0x3ee   : > { %v1736_v42 = vadd.f32 %v1735_v34, %v1734_v33 }
 0x3f0   : > { %1338 = vst [vmem:[%s3331_s14 + $0x10] sm:$0xff] %v1736_v42  ;;  %v1737_v62 = vpop.f32.mrb[6].mxu1 }
 0x3f1   : > { %v1738_v14 = vpop.f32.mrb[7].mxu1 }
 0x3f2   : > { %v1739_v10 = vadd.f32 %v1738_v14, %v1737_v62 }
 0x3f4   : > { %1339 = vst [vmem:[%s3331_s14 + $0x18] sm:$0xff] %v1739_v10  ;;  %v1740_v50 = vpop.f32.mrb[8].mxu1 }
 0x3f5   : > { %v1741_v45 = vpop.f32.mrb[9].mxu1 }
 0x3f6   : > { %v1742_v52 = vadd.f32 %v1741_v45, %v1740_v50 }
 0x3f8   : > { %1340 = vst [vmem:[%s3331_s14 + $0x20] sm:$0xff] %v1742_v52  ;;  %v1743_v43 = vpop.f32.mrb[10].mxu1 }
 0x3f9   : > { %v1744_v20 = vpop.f32.mrb[11].mxu1 }
 0x3fa   : > { %v1745_v35 = vadd.f32 %v1744_v20, %v1743_v43 }
 0x3fc   : > { %1341 = vst [vmem:[%s3331_s14 + $0x28] sm:$0xff] %v1745_v35  ;;  %v1746_v27 = vpop.f32.mrb[12].mxu1 }
 0x3fd   : > { %v1747_v46 = vpop.f32.mrb[13].mxu1 }
 0x3fe   : > { %v1748_v54 = vadd.f32 %v1747_v46, %v1746_v27 }
 0x400   : > { %1342 = vst [vmem:[%s3331_s14 + $0x30] sm:$0xff] %v1748_v54  ;;  %v1749_v55 = vpop.f32.mrb[14].mxu1 }
 0x401   : > { %v1750_v56 = vpop.f32.mrb[15].mxu1 }
 0x402   : > { %v1751_v1 = vadd.f32 %v1750_v56, %v1749_v55 }
 0x404   : > { %1343 = vst [vmem:[%s3331_s14 + $0x38] sm:$0xff] %v1751_v1  ;;  %v1752_v53 = vpop.f32.mrb[16].mxu1 }
 0x405   : > { %v1753_v29 = vpop.f32.mrb[17].mxu1 }
 0x406   : > { %v1754_v59 = vadd.f32 %v1753_v29, %v1752_v53 }
 0x408   : > { %1344 = vst [vmem:[%s3331_s14 + $0x40] sm:$0xff] %v1754_v59  ;;  %v1755_v58 = vpop.f32.mrb[18].mxu1 }
 0x409   : > { %v1756_v60 = vpop.f32.mrb[19].mxu1 }
 0x40a   : > { %v1757_v23 = vadd.f32 %v1756_v60, %v1755_v58 }
 0x40c   : > { %1345 = vst [vmem:[%s3331_s14 + $0x48] sm:$0xff] %v1757_v23  ;;  %v1758_v26 = vpop.f32.mrb[20].mxu1 }
 0x40d   : > { %v1759_v11 = vpop.f32.mrb[21].mxu1 }
 0x40e   : > { %v1760_v57 = vadd.f32 %v1759_v11, %v1758_v26 }
 0x410   : > { %1346 = vst [vmem:[%s3331_s14 + $0x50] sm:$0xff] %v1760_v57  ;;  %v1761_v0 = vpop.f32.mrb[22].mxu1 }
 0x411   : > { %v1762_v63 = vpop.f32.mrb[23].mxu1 }
 0x412   : > { %v1763_v5 = vadd.f32 %v1762_v63, %v1761_v0 }
 0x414   : > { %1347 = vst [vmem:[%s3331_s14 + $0x58] sm:$0xff] %v1763_v5  ;;  %v1764_v13 = vpop.f32.mrb[24].mxu1 }
 0x415   : > { %v1765_v12 = vpop.f32.mrb[25].mxu1 }
 0x416   : > { %v1766_v30 = vadd.f32 %v1765_v12, %v1764_v13 }
 0x418   : > { %1348 = vst [vmem:[%s3331_s14 + $0x60] sm:$0xff] %v1766_v30  ;;  %v1767_v38 = vpop.f32.mrb[26].mxu1 }
 0x419   : > { %v1768_v15 = vpop.f32.mrb[27].mxu1 }
 0x41a   : > { %v1769_v17 = vadd.f32 %v1768_v15, %v1767_v38 }
 0x41c   : > { %1349 = vst [vmem:[%s3331_s14 + $0x68] sm:$0xff] %v1769_v17  ;;  %v1770_v21 = vpop.f32.mrb[28].mxu1 }
 0x41d   : > { %v1771_v48 = vpop.f32.mrb[29].mxu1 }
 0x41e   : > { %v1772_v41 = vadd.f32 %v1771_v48, %v1770_v21 }
 0x420   : > { %1350 = vst [vmem:[%s3331_s14 + $0x70] sm:$0xff] %v1772_v41  ;;  %v1773_v40 = vpop.f32.mrb[30].mxu1 }
 0x421   : > { %v1774_v44 = vpop.f32.mrb[31].mxu1 }
 0x422   : > { %v1775_v16 = vadd.f32 %v1774_v44, %v1773_v40 }
 0x424   : > { %1351 = vst [vmem:[%s3331_s14 + $0x78] sm:$0xff] %v1775_v16 }
 0x425   : > { %2255 = shalt.err (!%p2252_p9)
}
 0x426   : > { %s2256_s14 = scalar_lea.hbm %s3354_s9, 2048  ;;  %s2260_s18 = scalar_lea.hbm %s3549_s11, 8192 }
 0x427   : > { %p2257_p7 = scmp.ne.s32.totalorder %s3354_s9, %s2256_s14  ;;  %p2261_p8 = scmp.lt.u32.totalorder %s3354_s9, %s3549_s11 }
 0x428   : > { %p2262_p1 = scmp.lt.u32.totalorder %s2260_s18, %s2256_s14  ;;  %p2264_p4 = scmp.lt.u32.totalorder %s2256_s14, %s3354_s9 }
 0x429   : > { %p2258_p6 = pnand %p2257_p7, %p3547_p0 }
 0x42a   : > { %p2263_p10 = por %p2262_p1, %p2261_p8 }
 0x42b   : > { %p2259_p2 = pneg %p2258_p6 }
 0x42c   : > { %p2265_p5 = por %p2264_p4, %p2263_p10 }
 0x42e   : > { %p2266_p11 = pnand %p2265_p5, %p2259_p2 }
 0x430   : > { %2269 = shalt.err (!%p2266_p11)
}
 0x431   : > { %s2415_s22 = smov 128   ;;  %s2416_s10 = smov 8  }
 0x432   : > { %1848 = dma.vmem_to_hbm [thread:$0]  (%p3547_p0), %s3356_s21, 2048, %s3354_s9, %s1353_s17, %s2415_s22, %s2415_s22, %s2416_s10  }
 0x433 PF: > { %s3550_s16 = sld [smem:[#allocation19_spill]]  ;;  %p1874_p13 = scmp.ge.s32.totalorder %s2400_s6, 2 }
 0x434   : > { %p3551_p12 = scmp.ne.s32.totalorder %s3486_s5, 0 }
 0x436   : > { %p1867_p3 = pnand %p1874_p13, %p3551_p12 }
 0x439   : > { %s1407_s7 = sand.u32 1, %s3550_s16  }
 0x43a   : > { %s1408_s15 = scalar_lea.sflag [#allocation4], %s1407_s7 }
 0x43b   : > { %2339 = dma.done.wait (!%p1867_p3), %s1408_s15, 2048  }
 0x43c   : > { %2341 = vsyncadd (!%p1867_p3), %s1408_s15, 4294965248  ;;  %s1417_s14 = scalar_lea.sflag [#allocation12], %s1407_s7 }
 0x43d   : > { %2343 = dma.done.wait (!%p1867_p3), %s1417_s14, 4096  }
 0x43e   : > { %2345 = vsyncadd (!%p1867_p3), %s1417_s14, 4294963200  ;;  %s29_s6 = sadd.s32 1, %s2400_s6   ;;  %s3553_s21 = sld [smem:[#allocation18_spill]] }
 0x43f   : > { %p3388_p9 = scmp.ge.s32.totalorder %s29_s6, 6   ;;  %s3554_s5 = sld [smem:[#allocation25_spill]] }
 0x440   : > { %s3555_s9 = sld [smem:[#allocation22_spill]]  ;;  %s3556_s17 = sld [smem:[#allocation23_spill]] }
 0x441   : > { %s3557_s18 = smov %s2352_s19  ;;  %s3558_s19 = smov %s2356_s20 }
 0x442   : > { %s3559_s20 = smov %s2719_s4  ;;  %s3560_s22 = smov %s2368_s23 }
 0x443   : > { %s3561_s23 = smov %s2658_s27  ;;  %s3562_s24 = smov %s2376_s25 }
 0x444   : > { %s3563_s25 = smov %s2380_s26  ;;  %s3565_s27 = smov %s2392_s29 }
 0x445   : > { %s3564_s26 = smov %s3554_s5  ;;  %s3566_s28 = smov %s2396_s30 }
 0x446   : > { %s3567_s29 = smov %s3555_s9  ;;  %s3568_s30 = smov %s3556_s17 }
 0x447   :  { %28 = sbr.rel (!%p3388_p9) target bundleno = 20 (0x14), region = 121 }
 0x44e   :  { %1422 = vsyncpa [#allocation3], 1 }
 0x44f   :  { %1424 = vsyncpa [#allocation3 + $0x1], 1 }
 0x450   :  { %1425 = vsyncpa [#allocation6], 1 }
 0x451   :  { %1426 = vsyncpa [#allocation9], 1 }
 0x452   :  { %1428 = vsyncpa [#allocation9 + $0x1], 1 }
 0x453   :  { %1429 = vsyncpa [#allocation4], 1 }
 0x454   :  { %1431 = vsyncpa [#allocation4 + $0x1], 1 }
 0x455   :  { %1432 = vsyncpa [#allocation12], 1 }
 0x456   :  { %1434 = vsyncpa [#allocation12 + $0x1], 1 }

// kernel: tpu_custom_call.1
= control target key start
LH: loop header
LB: loop body
LE: loop exit
PB: predicated region body
PF: predicated region fallthrough
CT: control target
= control target key end

     0   :  { %s3580_s0 = inlined_call_operand.hbm [shape: f32[2,256,128], index: 0, kind: input, shape index: {}]   ;;  %s3581_s1 = inlined_call_operand.hbm [shape: f32[2,256,128], index: 1, kind: input, shape index: {}]   ;;  %s3582_s2 = inlined_call_operand.hbm [shape: f32[2,256,128], index: 2, kind: input, shape index: {}]   ;;  %s3583_s3 = inlined_call_operand.hbm [shape: s8[256,256], index: 3, kind: input, shape index: {}]   ;;  %s3584_s4 = inlined_call_operand.hbm [shape: f32[2,256,128], index: 4, kind: output, shape index: {0}]   ;;  %s3585_s5 = inlined_call_operand.hbm [shape: f32[2,256,256], index: 5, kind: output, shape index: {1}]  }
   0x1   :  { %3616 = sst [smem:[#allocation31_spill]] %s3581_s1 }
   0x2   :  { %3617 = sst [smem:[#allocation32_spill]] %s3583_s3 }
   0x3   :  { %3618 = sst [smem:[#allocation33_spill]] %s3584_s4 }
   0x4   :  { %3619 = sst [smem:[#allocation34_spill]] %s3585_s5 }
   0x5   :  { %11 = vsyncpa [#allocation3], 0 }
   0x6   :  { %13 = vsyncpa [#allocation3 + $0x1], 0 }
   0x7   :  { %14 = vsyncpa [#allocation6], 0 }
   0x8   :  { %16 = vsyncpa [#allocation6 + $0x1], 0 }
   0x9   :  { %17 = vsyncpa [#allocation9], 0 }
   0xa   :  { %19 = vsyncpa [#allocation9 + $0x1], 0 }
   0xb   :  { %20 = vsyncpa [#allocation4], 0 }
   0xc   :  { %22 = vsyncpa [#allocation4 + $0x1], 0 }
   0xd   :  { %23 = vsyncpa [#allocation12], 0 }
   0xe   :  { %25 = vsyncpa [#allocation12 + $0x1], 0  ;;  %s2500_s18 = smov 0   ;;  %s2502_s19 = smov 0  }
   0xf   :  { %s2504_s20 = smov 0   ;;  %s2506_s21 = smov 0  }
  0x10   :  { %s2508_s22 = smov 0   ;;  %s2510_s23 = smov 0  }
  0x11   :  { %s2512_s24 = smov 0   ;;  %s2514_s25 = smov 0  }
  0x12   :  { %s2516_s26 = smov 0   ;;  %s2518_s27 = smov 0  }
  0x13   :  { %s2520_s28 = smov 0   ;;  %s2522_s29 = smov 0  }
  0x14   :  { %s2524_s30 = smov 0   ;;  %s2526_s6 = smov 0  }
  0x15 LB: > { %3620 = sst [smem:[#allocation18_spill]] %s2417_s22  ;;  %s2569_s7 = sadd.s32 4294967295, %s2453_s6   ;;  %s2453_s6 = sphi %s2526_s6, %s31_s6   ;;  %s2449_s30 = sphi %s2524_s30, %s3737_s30   ;;  %s2445_s29 = sphi %s2522_s29, %s3736_s29   ;;  %s2441_s28 = sphi %s2520_s28, %s3735_s28   ;;  %s2437_s27 = sphi %s2518_s27, %s3734_s27   ;;  %s2433_s26 = sphi %s2516_s26, %s3733_s26   ;;  %s2429_s25 = sphi %s2514_s25, %s3732_s25   ;;  %s2425_s24 = sphi %s2512_s24, %s3724_s24   ;;  %s2421_s23 = sphi %s2510_s23, %s3731_s23   ;;  %s2417_s22 = sphi %s2508_s22, %s3730_s22   ;;  %s2413_s21 = sphi %s2506_s21, %s3722_s21   ;;  %s2409_s20 = sphi %s2504_s20, %s3729_s20   ;;  %s2405_s19 = sphi %s2502_s19, %s3728_s19   ;;  %s2401_s18 = sphi %s2500_s18, %s3727_s18  }
  0x16   : > { %3621 = sst [smem:[#allocation19_spill]] %s2425_s24  ;;  %p3595_p0 = scmp.eq.s32.totalorder %s2453_s6, 0 }
  0x17   : > { %3622 = sst [smem:[#allocation20_spill]] %s2429_s25  ;;  %p3594_p1 = scmp.eq.s32.totalorder %s2569_s7, 0 }
  0x18   : > { %3623 = sst [smem:[#allocation21_spill]] %s2437_s27  ;;  %p85_p2 = scmp.ne.s32.totalorder %s2421_s23, %s2417_s22 }
  0x19   : > { %3624 = sst [smem:[#allocation22_spill]] %s2441_s28  ;;  %p91_p3 = scmp.ne.s32.totalorder %s2417_s22, %s2413_s21 }
  0x1a   : > { %3625 = sst [smem:[#allocation23_spill]] %s2569_s7  ;;  %p87_p4 = por %p85_p2, %p3595_p0 }
  0x1b   : > { %p3593_p5 = scmp.lt.s32.totalorder %s2453_s6, 4  ;;  %p2583_p6 = por %p91_p3, %p3594_p1 }
  0x1c   : > { %s246_s11 = sand.u32 1, %s2453_s6   ;;  %s248_s12 = sand.u32 1, %s2421_s23  }
  0x1d   : > { %s3626_s10 = scalar_select %p2583_p6, 1, 0 }
  0x1e   : > { %s2589_s13 = sshll.u32 %s248_s12, 8  ;;  %s1683_s14 = sshll.u32 %s2449_s30, 12 }
  0x1f   : > { %3627 = sst [smem:[#allocation24_spill]] %s3626_s10  ;;  %s3628_s1 = sld [smem:[#allocation31_spill]] }
  0x20   : > { %s250_s21 = scalar_lea.vmem [#allocation5], %s2589_s13  ;;  %p2600_p7 = pnand %p3593_p5, %p87_p4 }
  0x21   : > { %s257_s9 = sshll.u32 %s250_s21, 4  ;;  %s2609_s15 = scalar_lea.hbm %s3582_s2, %s1683_s14  ;;  %s2604_s9 = int_to_ptr.vmem [resolvable:$true] %s257_s9 }
  0x22   : > { %s2611_s16 = scalar_lea.sflag [#allocation6], %s246_s11  ;;  %p3600_p9 = pneg %p2600_p7 }
  0x25   : > { %s2595_s17 = scalar_lea.hbm %s3628_s1, %s1683_s14  ;;  %s2152_s27 = scalar_lea.hbm %s3628_s1, 8192 }
  0x26   : > { %s2147_s5 = scalar_lea.hbm %s2595_s17, 4096  ;;  %p2153_p12 = scmp.lt.u32.totalorder %s2595_s17, %s3628_s1 }
  0x27   : > { %p2148_p8 = scmp.ne.s32.totalorder %s2595_s17, %s2147_s5  ;;  %p2154_p13 = scmp.lt.u32.totalorder %s2152_s27, %s2147_s5 }
  0x28   : > { %p2156_p3 = scmp.lt.u32.totalorder %s2147_s5, %s2595_s17 }
  0x29   : > { %p2150_p10 = pnand %p3600_p9, %p2148_p8  ;;  %p2155_p2 = por %p2154_p13, %p2153_p12 }
  0x2b   : > { %p2151_p11 = pneg %p2150_p10  ;;  %p2157_p4 = por %p2156_p3, %p2155_p2 }
  0x2d   : > { %p2158_p5 = pnand %p2157_p4, %p2151_p11 }
  0x2f   : > { %2161 = shalt.err (!%p2158_p5)
}
  0x30   : > { %s2162_s4 = scalar_lea.vmem %s2604_s9, 4096  ;;  %s2455_s28 = smov [#allocation5]  }
  0x31   : > { %p2163_p8 = scmp.ne.s32.totalorder %s2604_s9, %s2162_s4  ;;  %s2167_s11 = sshll.u32 %s2455_s28, 4  ;;  %s2168_s11 = int_to_ptr.vmem [resolvable:$false] %s2167_s11 }
  0x32   : > { %s2169_s22 = scalar_lea.vmem %s2168_s11, 8192  ;;  %p2170_p0 = scmp.lt.s32.totalorder %s2604_s9, %s2168_s11 }
  0x33   : > { %p2165_p10 = pnand %p2163_p8, %p3600_p9  ;;  %p2171_p12 = scmp.lt.s32.totalorder %s2169_s22, %s2162_s4 }
  0x35   : > { %p2166_p1 = pneg %p2165_p10  ;;  %p2172_p13 = por %p2171_p12, %p2170_p0 }
  0x37   : > { %p2173_p2 = pnand %p2172_p13, %p2166_p1 }
  0x39   : > { %2176 = shalt.err (!%p2173_p2)
}
  0x3a   : > { %s3596_s5 = smov 128   ;;  %s3598_s27 = smov 8  }
  0x3b   : > { %1914 = dma.hbm_to_vmem [thread:$0]  (!%p2600_p7), %s2595_s17, 4096, %s2604_s9, %s2611_s16, %s3596_s5, %s3596_s5, %s3598_s27  }
  0x3c   : > { %s271_s10 = scalar_lea.vmem [#allocation7], %s2589_s13  ;;  %p1633_p0 = scmp.ge.s32.totalorder %s2453_s6, 1 }
  0x3d   : > { %s278_s14 = sshll.u32 %s271_s10, 4  ;;  %p308_p1 = scmp.lt.s32.totalorder %s2453_s6, 5  ;;  %s2644_s14 = int_to_ptr.vmem [resolvable:$true] %s278_s14 }
  0x3e   : > { %s1616_s21 = sadd.s32 4294967294, %s2453_s6   ;;  %s40_s4 = sadd.s32 1, %s2445_s29 }
  0x3f   : > { %p2647_p5 = pnand %p1633_p0, %p308_p1  ;;  %s52_s28 = sadd.s32 1, %s2433_s26 }
  0x40   : > { %p41_p11 = scmp.ge.s32.totalorder %s40_s4, 2  ;;  %p59_p3 = scmp.ne.s32.totalorder %s2433_s26, %s2429_s25 }
  0x41   : > { %s3630_s12 = scalar_select %p2647_p5, 1, 0 }
  0x42   : > { %p65_p4 = scmp.ne.s32.totalorder %s2429_s25, %s2425_s24  ;;  %p169_p8 = scmp.eq.s32.totalorder %s2569_s7, 3 }
  0x43   : > { %3631 = sst [smem:[#allocation25_spill]] %s3630_s12  ;;  %s3739_s4 = smov (%p41_p11, %s40_s4), 0 }
  0x44   : > { %3632 = sst [smem:[#allocation26_spill]] %s3739_s4  ;;  %s3633_s9 = sadd.s32 1, %s2449_s30 }
  0x45   : > { %s3741_s9 = smov (!%p41_p11, %s3633_s9), %s2449_s30  ;;  %s2666_s13 = ssub.s32 %s2445_s29, %s3739_s4 }
  0x46   : > { %p3634_p10 = scmp.eq.s32.totalorder %s2453_s6, 0  ;;  %p45_p13 = scmp.ge.s32.totalorder %s3741_s9, 2 }
  0x47   : > { %p3636_p2 = scmp.eq.s32.totalorder %s2569_s7, 0  ;;  %p2684_p11 = por %p169_p8, %p59_p3 }
  0x48   : > { %p2670_p12 = por %p3634_p10, %p59_p3  ;;  %s3743_s9 = smov (%p45_p13, %s3741_s9), 0 }
  0x49   : > { %p2679_p0 = por %p3636_p2, %p65_p4  ;;  %3641 = sst [smem:[#allocation29_spill]] %s3743_s9 }
  0x4a   : > { %s3639_s22 = scalar_select %p2684_p11, 1, 0 }
  0x4b   : > { %s3637_s11 = scalar_select %p2679_p0, 1, 0 }
  0x4c   : > { %3640 = sst [smem:[#allocation28_spill]] %s3639_s22  ;;  %p175_p10 = scmp.eq.s32.totalorder %s1616_s21, 3 }
  0x4d   : > { %3638 = sst [smem:[#allocation27_spill]] %s3637_s11  ;;  %s223_s10 = sand.u32 1, %s2433_s26  }
  0x4e   : > { %s47_s5 = ssub.s32 %s2449_s30, %s3743_s9  ;;  %p2697_p1 = por %p175_p10, %p65_p4 }
  0x4f   : > { %s49_s27 = sor.u32 %s2666_s13, %s47_s5  ;;  %p76_p9 = scmp.eq.s32.totalorder %s47_s5, 0 }
  0x50   : > { %p50_p2 = scmp.eq.s32.totalorder %s49_s27, 0  ;;  %s3644_s4 = sadd.s32 1, %s2421_s23 }
  0x51   : > { %s3642_s1 = scalar_select %p2697_p1, 1, 0 }
  0x52   : > { %s2704_s22 = scalar_select %p76_p9, %s2421_s23, %s3644_s4  }
  0x53   : > { %3643 = sst [smem:[#allocation30_spill]] %s3642_s1  ;;  %s1619_s21 = sshll.u32 %s223_s10, 7 }
  0x54   : > { %s2707_s11 = scalar_select %p50_p2, %s2433_s26, %s52_s28  }
  0x55   : > { %s1620_s9 = sshll.u32 %s2445_s29, 4  ;;  %s1621_s12 = sshll.u32 %s2449_s30, 5 }
  0x56   : > { %s233_s5 = sadd.s32 %s1621_s12, %s1620_s9  ;;  %s227_s3 = scalar_lea.vmem [#allocation2], %s1619_s21 }
  0x57   : > { %s236_s27 = sshll.u32 %s227_s3, 4  ;;  %s1622_s24 = sshll.u32 %s233_s5, 7  ;;  %s2713_s27 = int_to_ptr.vmem [resolvable:$true] %s236_s27 }
  0x58   : > { %s2718_s1 = scalar_lea.hbm %s3580_s0, %s1622_s24  ;;  %p3645_p9 = scmp.lt.s32.totalorder %s2453_s6, 4 }
  0x59   : > { %s2177_s28 = scalar_lea.hbm %s2609_s15, 4096  ;;  %p3647_p8 = pneg %p2600_p7 }
  0x5a   : > { %p2724_p3 = pnand %p3645_p9, %p2670_p12  ;;  %p2178_p4 = scmp.ne.s32.totalorder %s2609_s15, %s2177_s28 }
  0x5b   : > { %s2182_s9 = scalar_lea.hbm %s3582_s2, 8192  ;;  %p2183_p2 = scmp.lt.u32.totalorder %s2609_s15, %s3582_s2 }
  0x5c   : > { %p2180_p13 = pnand %p2178_p4, %p3647_p8  ;;  %p2184_p1 = scmp.lt.u32.totalorder %s2182_s9, %s2177_s28 }
  0x5d   : > { %p2186_p12 = scmp.lt.u32.totalorder %s2177_s28, %s2609_s15 }
  0x5e   : > { %p2181_p10 = pneg %p2180_p13  ;;  %p2185_p11 = por %p2184_p1, %p2183_p2 }
  0x60   : > { %p2187_p9 = por %p2186_p12, %p2185_p11 }
  0x62   : > { %p2188_p6 = pnand %p2187_p9, %p2181_p10 }
  0x64   : > { %2191 = shalt.err (!%p2188_p6)
}
  0x65   : > { %s2192_s24 = scalar_lea.vmem %s2644_s14, 4096  ;;  %s2458_s7 = smov [#allocation7]  }
  0x66   : > { %p2193_p4 = scmp.ne.s32.totalorder %s2644_s14, %s2192_s24  ;;  %s2197_s17 = sshll.u32 %s2458_s7, 4  ;;  %s2198_s17 = int_to_ptr.vmem [resolvable:$false] %s2197_s17 }
  0x67   : > { %s2199_s5 = scalar_lea.vmem %s2198_s17, 8192  ;;  %p2200_p5 = scmp.lt.s32.totalorder %s2644_s14, %s2198_s17 }
  0x68   : > { %p2195_p13 = pnand %p2193_p4, %p3647_p8  ;;  %p2201_p1 = scmp.lt.s32.totalorder %s2199_s5, %s2192_s24 }
  0x6a   : > { %p2196_p0 = pneg %p2195_p13  ;;  %p2202_p2 = por %p2201_p1, %p2200_p5 }
  0x6c   : > { %p2203_p11 = pnand %p2202_p2, %p2196_p0 }
  0x6e   : > { %2206 = shalt.err (!%p2203_p11)
}
  0x6f   : > { %s3648_s28 = smov 8   ;;  %s3649_s3 = smov 128  }
  0x70   : > { %1917 = dma.hbm_to_vmem [thread:$0]  (!%p2600_p7), %s2609_s15, 4096, %s2644_s14, %s2611_s16, %s3649_s3, %s3649_s3, %s3648_s28  }
  0x71   : > { %s2757_s12 = scalar_lea.sflag [#allocation3], %s223_s10  ;;  %s2207_s9 = scalar_lea.hbm %s2718_s1, 2048 }
  0x72   : > { %p2208_p6 = scmp.ne.s32.totalorder %s2718_s1, %s2207_s9  ;;  %p2209_p5 = pneg %p2724_p3 }
  0x73   : > { %s2212_s25 = scalar_lea.hbm %s3580_s0, 8192  ;;  %p2213_p12 = scmp.lt.u32.totalorder %s2718_s1, %s3580_s0 }
  0x74   : > { %p2210_p0 = pnand %p2209_p5, %p2208_p6  ;;  %p2214_p7 = scmp.lt.u32.totalorder %s2212_s25, %s2207_s9 }
  0x75   : > { %p2216_p4 = scmp.lt.u32.totalorder %s2207_s9, %s2718_s1 }
  0x76   : > { %p2211_p10 = pneg %p2210_p0  ;;  %p2215_p9 = por %p2214_p7, %p2213_p12 }
  0x78   : > { %p2217_p8 = por %p2216_p4, %p2215_p9 }
  0x7a   : > { %p2218_p13 = pnand %p2217_p8, %p2211_p10 }
  0x7c   : > { %2221 = shalt.err (!%p2218_p13)
}
  0x7d   : > { %s2222_s15 = scalar_lea.vmem %s2713_s27, 2048  ;;  %s2459_s16 = smov [#allocation2]  }
  0x7e   : > { %p2223_p1 = scmp.ne.s32.totalorder %s2713_s27, %s2222_s15  ;;  %s2227_s14 = sshll.u32 %s2459_s16, 4  ;;  %s2228_s14 = int_to_ptr.vmem [resolvable:$false] %s2227_s14 }
  0x7f   : > { %s2229_s10 = scalar_lea.vmem %s2228_s14, 4096  ;;  %p2230_p6 = scmp.lt.s32.totalorder %s2713_s27, %s2228_s14 }
  0x80   : > { %p2225_p2 = pnand %p2223_p1, %p2209_p5  ;;  %p2231_p0 = scmp.lt.s32.totalorder %s2229_s10, %s2222_s15 }
  0x82   : > { %p2226_p11 = pneg %p2225_p2  ;;  %p2232_p12 = por %p2231_p0, %p2230_p6 }
  0x84   : > { %p2233_p7 = pnand %p2232_p12, %p2226_p11 }
  0x86   : > { %2236 = shalt.err (!%p2233_p7)
}
  0x87   : > { %s3650_s17 = sld [smem:[#allocation23_spill]]  ;;  %s130_s4 = sadd.s32 1, %s2409_s20 }
  0x88   : > { %1911 = dma.hbm_to_vmem [thread:$0]  (!%p2724_p3), %s2718_s1, 2048, %s2713_s27, %s2757_s12, %s3649_s3, %s3649_s3, %s3648_s28  }
  0x89   : > { %p3651_p5 = scmp.eq.s32.totalorder %s2666_s13, 0  ;;  %p137_p10 = scmp.ne.s32.totalorder %s2409_s20, %s2405_s19 }
  0x8a   : > { %p143_p9 = scmp.ne.s32.totalorder %s2405_s19, %s2401_s18  ;;  %s288_s9 = sand.u32 1, %s2409_s20  }
  0x8b   : > { %s2792_s5 = scalar_select %p3651_p5, %s2409_s20, %s130_s4  }
  0x8c   : > { %s1686_s8 = sshll.u32 %s2445_s29, 10  ;;  %p3652_p4 = scmp.eq.s32.totalorder %s2453_s6, 0 }
  0x8d   : > { %p3653_p13 = scmp.eq.s32.totalorder %s3650_s17, 0  ;;  %s1629_s25 = sshll.u32 %s288_s9, 6 }
  0x8e   : > { %p139_p8 = por %p137_p10, %p3652_p4  ;;  %s3655_s15 = sld [smem:[#allocation32_spill]] }
  0x8f   : > { %p2804_p1 = por %p143_p9, %p3653_p13  ;;  %s292_s18 = scalar_lea.vmem [#allocation8], %s1629_s25 }
  0x90   : > { %s300_s13 = sshll.u32 %s292_s18, 4  ;;  %p3656_p3 = scmp.lt.s32.totalorder %s2453_s6, 4  ;;  %s2819_s13 = int_to_ptr.vmem [resolvable:$true] %s300_s13 }
  0x91   : > { %s2821_s28 = scalar_lea.sflag [#allocation9], %s288_s9 }
  0x92   : > { %p2815_p2 = pnand %p3656_p3, %p139_p8 }
  0x94   : > { %s2811_s1 = scalar_lea.hbm %s3655_s15, %s1686_s8  ;;  %p2239_p6 = pneg %p2815_p2 }
  0x95   : > { %s2237_s3 = scalar_lea.hbm %s2811_s1, 1024  ;;  %s2242_s14 = scalar_lea.hbm %s3655_s15, 2048 }
  0x96   : > { %p2238_p11 = scmp.ne.s32.totalorder %s2811_s1, %s2237_s3  ;;  %p2243_p7 = scmp.lt.u32.totalorder %s2811_s1, %s3655_s15 }
  0x97   : > { %p2244_p5 = scmp.lt.u32.totalorder %s2242_s14, %s2237_s3  ;;  %p2246_p9 = scmp.lt.u32.totalorder %s2237_s3, %s2811_s1 }
  0x98   : > { %p2240_p0 = pnand %p2239_p6, %p2238_p11 }
  0x99   : > { %p2245_p10 = por %p2244_p5, %p2243_p7 }
  0x9a   : > { %p2241_p12 = pneg %p2240_p0 }
  0x9b   : > { %p2247_p4 = por %p2246_p9, %p2245_p10 }
  0x9d   : > { %p2248_p8 = pnand %p2247_p4, %p2241_p12 }
  0x9f   : > { %2251 = shalt.err (!%p2248_p8)
}
  0xa0   : > { %s2252_s4 = scalar_lea.vmem %s2819_s13, 1024  ;;  %s2460_s9 = smov [#allocation8]  }
  0xa1   : > { %p2253_p13 = scmp.ne.s32.totalorder %s2819_s13, %s2252_s4  ;;  %s2257_s8 = sshll.u32 %s2460_s9, 4  ;;  %s2258_s8 = int_to_ptr.vmem [resolvable:$false] %s2257_s8 }
  0xa2   : > { %s2259_s25 = scalar_lea.vmem %s2258_s8, 2048  ;;  %p2260_p0 = scmp.lt.s32.totalorder %s2819_s13, %s2258_s8 }
  0xa3   : > { %p2255_p3 = pnand %p2253_p13, %p2239_p6  ;;  %p2261_p7 = scmp.lt.s32.totalorder %s2259_s25, %s2252_s4 }
  0xa5   : > { %p2256_p11 = pneg %p2255_p3  ;;  %p2262_p5 = por %p2261_p7, %p2260_p0 }
  0xa7   : > { %p2263_p10 = pnand %p2262_p5, %p2256_p11 }
  0xa9   : > { %2266 = shalt.err (!%p2263_p10)
}
  0xaa   : > { %s2461_s24 = smov 256   ;;  %s2462_s7 = smov 16  }
  0xab   : > { %1920 = dma.hbm_to_vmem [thread:$0]  (!%p2815_p2), %s2811_s1, 1024, %s2819_s13, %s2821_s28, %s2461_s24, %s2461_s24, %s2462_s7  }
  0xac   : > { %s3658_s18 = sld [smem:[#allocation25_spill]] }
  0xb2   : > { %p3659_p6 = scmp.ne.s32.totalorder %s3658_s18, 0 }
  0xb3   : > { %s3660_s3 = sld [smem:[#allocation20_spill]] (!%p3659_p6)  ;;  %s3661_s12 = sld [smem:[#allocation27_spill]] (!%p3659_p6) }
  0xb4   : > { %312 = sbr.rel (%p3659_p6) target bundleno = 1101 (0x44d), region = 36 }
  0xb9   : > { %s2852_s16 = sand.u32 (!%p3659_p6), 1, %s3660_s3   ;;  %p3662_p12 = scmp.ne.s32.totalorder (!%p3659_p6), %s3661_s12, 0 }
  0xba   : > { %s1634_s14 = sshll.u32 (!%p3659_p6), %s2852_s16, 7  ;;  %s315_s10 = scalar_lea.sflag (!%p3659_p6), [#allocation3], %s2852_s16 }
  0xbb   : > { %s2858_s17 = scalar_lea.vmem [#allocation2], %s1634_s14 }
  0xbc   : > { %2380 = dma.done.wait (%p3662_p12), %s315_s10, 2048  }
  0xbd   : > { %2382 = vsyncadd (%p3662_p12), %s315_s10, 4294965248  ;;  %s3663_s1 = sld [smem:[#allocation23_spill]]  ;;  %s3664_s13 = sld [smem:[#allocation18_spill]] }
  0xbe   : > { %s3665_s27 = sld [smem:[#allocation24_spill]] }
  0xc3   : > { %s323_s28 = sand.u32 1, %s3663_s1   ;;  %s325_s4 = sand.u32 1, %s3664_s13  }
  0xc4   : > { %s1635_s9 = sshll.u32 %s325_s4, 8  ;;  %s324_s8 = scalar_lea.sflag [#allocation6], %s323_s28 }
  0xc5   : > { %s2866_s25 = scalar_lea.vmem [#allocation5], %s1635_s9  ;;  %p3666_p2 = scmp.ne.s32.totalorder %s3665_s27, 0 }
  0xc7   : > { %2384 = dma.done.wait (%p3666_p2), %s324_s8, 8192  }
  0xc8   : > { %2386 = vsyncadd (%p3666_p2), %s324_s8, 4294959104  ;;  %s341_s24 = sand.u32 1, %s2405_s19   ;;  %s2873_s18 = scalar_lea.vmem [#allocation7], %s1635_s9 }
  0xc9   : > { %s1637_s7 = sshll.u32 %s341_s24, 6  ;;  %s342_s3 = scalar_lea.sflag [#allocation9], %s341_s24 }
  0xca   : > { %s2875_s12 = scalar_lea.vmem [#allocation8], %s1637_s7 }
  0xcb   : > { %2388 = dma.done.wait (%p2804_p1), %s342_s3, 1024  }
  0xcc   : > { %2390 = vsyncadd (%p2804_p1), %s342_s3, 4294966272  ;;  %v446_v0 = vld [vmem:[%s2866_s25 + $0x80] sm:$0xff]  ;;  %v447_v1 = vld [vmem:[%s2866_s25 + $0x88] sm:$0xff]  ;;  %s1639_s21 = sshll.u32 %s2852_s16, 8  ;;  %s3712_s1 = sld [smem:[#allocation22_spill]] }
  0xcd   : > { %v430_v2 = vld [vmem:[%s2866_s25] sm:$0xff]  ;;  %v1832_v3 = vpack.c.bf16 %v447_v1, %v446_v0  ;;  %v431_v4 = vld [vmem:[%s2866_s25 + $0x8] sm:$0xff]  ;;  %v448_v5 = vld [vmem:[%s2866_s25 + $0x90] sm:$0xff]  ;;  %s3376_s10 = scalar_lea.vmem [#allocation11], %s1639_s21  ;;  %s3713_s13 = sld [smem:[#allocation28_spill]] }
  0xce   : > { %v449_v6 = vld [vmem:[%s2866_s25 + $0x98] sm:$0xff]  ;;  %v1834_v7 = vpack.c.bf16 %v431_v4, %v430_v2  ;;  %v432_v9 = vld [vmem:[%s2866_s25 + $0x10] sm:$0xff]  ;;  %v450_v11 = vld [vmem:[%s2866_s25 + $0xa0] sm:$0xff]  ;;  %s1424_s4 = sshll.u32 %s3376_s10, 4  ;;  %s3714_s7 = sld [smem:[#allocation34_spill]]  ;;  %s3443_s4 = int_to_ptr.vmem [resolvable:$true] %s1424_s4 }
  0xcf   : > { %v1836_v8 = vpack.c.bf16 %v449_v6, %v448_v5  ;;  %1833 = vmatprep.subr.bf16.mxu0 %v1832_v3  ;;  %v433_v10 = vld [vmem:[%s2866_s25 + $0x18] sm:$0xff]  ;;  %v451_v12 = vld [vmem:[%s2866_s25 + $0xa8] sm:$0xff]  ;;  %v398_v15 = vld [vmem:[%s2858_s17] sm:$0xff]  ;;  %s1390_s3 = scalar_lea.sflag [#allocation12], %s2852_s16  ;;  %s2464_s21 = smov [#allocation11]  }
  0xd0   : > { %1835 = vmatpush3.bf16.xpose.msra.mxu0 %v1834_v7  ;;  %v1838_v13 = vpack.c.bf16 %v433_v10, %v432_v9  ;;  %v1840_v14 = vpack.c.bf16 %v451_v12, %v450_v11  ;;  %v414_v16 = vmul.f32 0.088388346, %v398_v15  ;;  %v434_v17 = vld [vmem:[%s2866_s25 + $0x20] sm:$0xff]  ;;  %v435_v18 = vld [vmem:[%s2866_s25 + $0x28] sm:$0xff]  ;;  %v452_v19 = vld [vmem:[%s2866_s25 + $0xb0] sm:$0xff] }
  0xd1   : > { %1837 = vmatprep.subr.bf16.mxu0 %v1836_v8  ;;  %v453_v20 = vld [vmem:[%s2866_s25 + $0xb8] sm:$0xff]  ;;  %v1842_v21 = vpack.c.bf16 %v435_v18, %v434_v17  ;;  %v436_v23 = vld [vmem:[%s2866_s25 + $0x30] sm:$0xff]  ;;  %v454_v25 = vld [vmem:[%s2866_s25 + $0xc0] sm:$0xff]  ;;  %v2463_v18 = vmov 0  }
  0xd2   : > { %1720 = vmatprep.mubr.f32.mxu0 %v414_v16  ;;  %v1844_v22 = vpack.c.bf16 %v453_v20, %v452_v19  ;;  %v437_v24 = vld [vmem:[%s2866_s25 + $0x38] sm:$0xff]  ;;  %v455_v26 = vld [vmem:[%s2866_s25 + $0xc8] sm:$0xff]  ;;  %v438_v29 = vld [vmem:[%s2866_s25 + $0x40] sm:$0xff]  ;;  %s1679_s28 = sshll.u32 %s3712_s1, 6 }
  0xd3   : > { %v1846_v27 = vpack.c.bf16 %v437_v24, %v436_v23  ;;  %v1848_v28 = vpack.c.bf16 %v455_v26, %v454_v25  ;;  %v439_v30 = vld [vmem:[%s2866_s25 + $0x48] sm:$0xff]  ;;  %v456_v31 = vld [vmem:[%s2866_s25 + $0xd0] sm:$0xff]  ;;  %v457_v32 = vld [vmem:[%s2866_s25 + $0xd8] sm:$0xff]  ;;  %p3715_p9 = scmp.ne.s32.totalorder %s3713_s13, 0 }
  0xd4   : > { %v1850_v33 = vpack.c.bf16 %v439_v30, %v438_v29  ;;  %v1852_v34 = vpack.c.bf16 %v457_v32, %v456_v31  ;;  %v440_v35 = vld [vmem:[%s2866_s25 + $0x50] sm:$0xff]  ;;  %v441_v36 = vld [vmem:[%s2866_s25 + $0x58] sm:$0xff]  ;;  %v458_v37 = vld [vmem:[%s2866_s25 + $0xe0] sm:$0xff] }
  0xd5   : > { %v459_v38 = vld [vmem:[%s2866_s25 + $0xe8] sm:$0xff]  ;;  %v1854_v39 = vpack.c.bf16 %v441_v36, %v440_v35  ;;  %v442_v41 = vld [vmem:[%s2866_s25 + $0x60] sm:$0xff]  ;;  %v460_v43 = vld [vmem:[%s2866_s25 + $0xf0] sm:$0xff] }
  0xd6   : > { %v1856_v40 = vpack.c.bf16 %v459_v38, %v458_v37  ;;  %v443_v42 = vld [vmem:[%s2866_s25 + $0x68] sm:$0xff]  ;;  %v461_v44 = vld [vmem:[%s2866_s25 + $0xf8] sm:$0xff]  ;;  %v444_v47 = vld [vmem:[%s2866_s25 + $0x70] sm:$0xff] }
  0xd7   : > { %v1858_v45 = vpack.c.bf16 %v443_v42, %v442_v41  ;;  %v1860_v46 = vpack.c.bf16 %v461_v44, %v460_v43  ;;  %v445_v48 = vld [vmem:[%s2866_s25 + $0x78] sm:$0xff]  ;;  %v399_v50 = vld [vmem:[%s2858_s17 + $0x8] sm:$0xff]  ;;  %v400_v52 = vld [vmem:[%s2858_s17 + $0x10] sm:$0xff] }
  0xd8   : > { %1839 = vmatpush3.bf16.xpose.msra.mxu0 %v1838_v13  ;;  %v1862_v49 = vpack.c.bf16 %v445_v48, %v444_v47  ;;  %v415_v51 = vmul.f32 0.088388346, %v399_v50  ;;  %v416_v53 = vmul.f32 0.088388346, %v400_v52  ;;  %v401_v54 = vld [vmem:[%s2858_s17 + $0x18] sm:$0xff]  ;;  %v402_v56 = vld [vmem:[%s2858_s17 + $0x20] sm:$0xff] }
  0xd9   : > { %1841 = vmatprep.subr.bf16.mxu0 %v1840_v14  ;;  %v417_v55 = vmul.f32 0.088388346, %v401_v54  ;;  %v418_v57 = vmul.f32 0.088388346, %v402_v56  ;;  %v403_v58 = vld [vmem:[%s2858_s17 + $0x28] sm:$0xff]  ;;  %v404_v60 = vld [vmem:[%s2858_s17 + $0x30] sm:$0xff] }
  0xda   : > { %v419_v59 = vmul.f32 0.088388346, %v403_v58  ;;  %v420_v61 = vmul.f32 0.088388346, %v404_v60  ;;  %v405_v62 = vld [vmem:[%s2858_s17 + $0x38] sm:$0xff]  ;;  %v406_v0 = vld [vmem:[%s2858_s17 + $0x40] sm:$0xff] }
  0xdb   : > { %v421_v63 = vmul.f32 0.088388346, %v405_v62  ;;  %v422_v1 = vmul.f32 0.088388346, %v406_v0  ;;  %v407_v2 = vld [vmem:[%s2858_s17 + $0x48] sm:$0xff]  ;;  %v408_v4 = vld [vmem:[%s2858_s17 + $0x50] sm:$0xff] }
  0xdc   : > { %v423_v3 = vmul.f32 0.088388346, %v407_v2  ;;  %v424_v5 = vmul.f32 0.088388346, %v408_v4  ;;  %v409_v6 = vld [vmem:[%s2858_s17 + $0x58] sm:$0xff]  ;;  %v410_v8 = vld [vmem:[%s2858_s17 + $0x60] sm:$0xff] }
  0xdd   : > { %v425_v7 = vmul.f32 0.088388346, %v409_v6  ;;  %v426_v9 = vmul.f32 0.088388346, %v410_v8  ;;  %v411_v10 = vld [vmem:[%s2858_s17 + $0x68] sm:$0xff]  ;;  %v412_v12 = vld [vmem:[%s2858_s17 + $0x70] sm:$0xff] }
  0xde   : > { %v427_v11 = vmul.f32 0.088388346, %v411_v10  ;;  %v428_v13 = vmul.f32 0.088388346, %v412_v12  ;;  %v413_v14 = vld [vmem:[%s2858_s17 + $0x78] sm:$0xff]  ;;  %v656_v17 = vld [vmem:[%s2875_s12 + $0x8] sm:$0xff] }
  0xdf   : > { %v429_v15 = vmul.f32 0.088388346, %v413_v14  ;;  %vm664_vm1 = vnez %v656_v17  ;;  %v657_v29 = vld [vmem:[%s2875_s12 + $0x10] sm:$0xff]  ;;  %v658_v30 = vld [vmem:[%s2875_s12 + $0x18] sm:$0xff]  ;;  %v659_v52 = vld [vmem:[%s2875_s12 + $0x20] sm:$0xff]  ;;  %s3711_s17 = sld [smem:[#allocation21_spill]] }
  0xe0   : > { %1843 = vmatpush3.bf16.xpose.msra.mxu0 %v1842_v21  ;;  %v704_v20 = vsel %vm664_vm1, 16843009, %v2463_v18  ;;  %vm665_vm2 = vnez %v657_v29  ;;  %vm666_vm3 = vnez %v658_v30  ;;  %vm667_vm11 = vnez %v659_v52  ;;  %v661_v56 = vld [vmem:[%s2875_s12 + $0x30] sm:$0xff] }
  0xe1   : > { %1845 = vmatprep.subr.bf16.mxu0 %v1844_v22  ;;  %v714_v22 = vunpack.c.1.s8 %v704_v20  ;;  %v712_v24 = vunpack.c.0.s8 %v704_v20  ;;  %v705_v37 = vsel %vm665_vm2, 16843009, %v2463_v18  ;;  %v706_v38 = vsel %vm666_vm3, 16843009, %v2463_v18 }
  0xe2   : > { %v719_v42 = vunpack.c.0.s8 %v705_v37  ;;  %v720_v43 = vunpack.c.0.s8 %v706_v38  ;;  %v721_v44 = vunpack.c.1.s8 %v705_v37  ;;  %v724_v58 = vunpack.c.2.s8 %v706_v38 }
  0xe3   : > { %v726_v6 = vunpack.c.3.s8 %v706_v38 }
  0xe4   : > { %v751_v50 = vpack.c.b16 %v720_v43, %v719_v42 }
  0xe5   : > { %s1687_s27 = sshll.u32 %s3711_s17, 5 }
  0xe6   : > { %s1421_s9 = sadd.s32 %s1687_s27, %s1679_s28 }
  0xe7   : > { %s1680_s8 = sshll.u32 %s1421_s9, 7 }
  0xe8   : > { %1847 = vmatpush3.bf16.xpose.msra.mxu0 %v1846_v27 }
  0xe9   : > { %1849 = vmatprep.subr.bf16.mxu0 %v1848_v28  ;;  %v716_v28 = vunpack.c.2.s8 %v704_v20 }
  0xf0   : > { %1851 = vmatpush3.bf16.xpose.msra.mxu0 %v1850_v33 }
  0xf1   : > { %1853 = vmatprep.subr.bf16.mxu0 %v1852_v34  ;;  %v718_v34 = vunpack.c.3.s8 %v704_v20 }
  0xf8   : > { %1855 = vmatpush3.bf16.xpose.msra.mxu0 %v1854_v39 }
  0xf9   : > { %1857 = vmatprep.subr.bf16.mxu0 %v1856_v40 }
 0x100   : > { %1859 = vmatpush3.bf16.xpose.msra.mxu0 %v1858_v45  ;;  %v722_v45 = vunpack.c.1.s8 %v706_v38 }
 0x101   : > { %1861 = vmatprep.subr.bf16.mxu0 %v1860_v46 }
 0x108   : > { %1863 = vmatpush3.bf16.xpose.msra.mxu0 %v1862_v49 }
 0x10f   : > { %1721 = vmatmul.mubr.f32.vlgmr.msra.gmra.mrb[0].mxu0 %v414_v16  ;;  %v655_v16 = vld [vmem:[%s2875_s12] sm:$0xff] }
 0x110   : > { %1722 = vmatprep.mubr.f32.mxu0 %v415_v51  ;;  %vm663_vm0 = vnez %v655_v16 }
 0x111   : > { %v703_v19 = vsel %vm663_vm0, 16843009, %v2463_v18 }
 0x112   : > { %v713_v21 = vunpack.c.1.s8 %v703_v19  ;;  %v711_v23 = vunpack.c.0.s8 %v703_v19  ;;  %v715_v27 = vunpack.c.2.s8 %v703_v19  ;;  %v717_v33 = vunpack.c.3.s8 %v703_v19 }
 0x113   : > { %1723 = vmatmul.mubr.f32.gmra.mrb[2].mxu0 %v415_v51  ;;  %v753_v51 = vpack.c.b16 %v722_v45, %v721_v44 }
 0x114   : > { %1724 = vmatprep.mubr.f32.mxu0 %v416_v53  ;;  %v745_v25 = vpack.c.b16 %v714_v22, %v713_v21  ;;  %v743_v26 = vpack.c.b16 %v712_v24, %v711_v23  ;;  %v747_v35 = vpack.c.b16 %v716_v28, %v715_v27  ;;  %v749_v36 = vpack.c.b16 %v718_v34, %v717_v33 }
 0x115   : > { %v754_v2 = vpack.c.b8 %v753_v51, %v753_v51 }
 0x116   : > { %v746_v31 = vpack.c.b8 %v745_v25, %v745_v25  ;;  %v744_v32 = vpack.c.b8 %v743_v26, %v743_v26  ;;  %v748_v41 = vpack.c.b8 %v747_v35, %v747_v35  ;;  %v750_v46 = vpack.c.b8 %v749_v36, %v749_v36 }
 0x117   : > { %1725 = vmatmul.mubr.f32.gmra.mrb[4].mxu0 %v416_v53  ;;  %v660_v53 = vld [vmem:[%s2875_s12 + $0x28] sm:$0xff]  ;;  %vm2975_vm15 = vnez %v754_v2 }
 0x118   : > { %1726 = vmatprep.mubr.f32.mxu0 %v417_v55  ;;  %vm776_vm4 = vnez %v746_v31  ;;  %vm775_vm5 = vnez %v744_v32  ;;  %vm777_vm6 = vnez %v748_v41  ;;  %vm778_vm7 = vnez %v750_v46 }
 0x119   : > { %v792_v39 = vsel %vm776_vm4, 16843009, %v2463_v18  ;;  %v791_v40 = vsel %vm775_vm5, 16843009, %v2463_v18  ;;  %vm668_vm12 = vnez %v660_v53  ;;  %v794_v0 = vsel %vm778_vm7, 16843009, %v2463_v18 }
 0x11a   : > { %v807_v47 = vunpack.c.0.s8 %v791_v40  ;;  %v808_v48 = vunpack.c.1.s8 %v791_v40  ;;  %v809_v49 = vunpack.c.0.s8 %v792_v39  ;;  %v810_v54 = vunpack.c.1.s8 %v792_v39 }
 0x11b   : > { %1727 = vmatmul.mubr.f32.gmra.mrb[6].mxu0 %v417_v55  ;;  %v2967_v10 = vsel %vm668_vm12, 16843009, %v2463_v18  ;;  %v814_v34 = vunpack.c.1.s8 %v794_v0  ;;  %v796_v35 = vsel %vm2975_vm15, 16843009, %v2463_v18 }
 0x11c   : > { %1728 = vmatprep.mubr.f32.mxu0 %v418_v57  ;;  %vm2941_vm8 = vcmp.ne.s32.totalorder %v807_v47, 0  ;;  %vm2945_vm9 = vcmp.ne.s32.totalorder %v808_v48, 0  ;;  %vm2949_vm10 = vcmp.ne.s32.totalorder %v809_v49, 0  ;;  %vm2955_vm13 = vcmp.ne.s32.totalorder %v810_v54, 0 }
 0x11d   : > { %v728_v24 = vunpack.c.0.s8 %v2967_v10  ;;  %v730_v42 = vunpack.c.1.s8 %v2967_v10  ;;  %v817_v47 = vunpack.c.0.s8 %v796_v35  ;;  %vm846_vm4 = vcmp.ne.s32.totalorder %v814_v34, 0 }
 0x11e   : > { %v818_v51 = vunpack.c.1.s8 %v796_v35  ;;  %v732_v60 = vunpack.c.2.s8 %v2967_v10 }
 0x11f   : > { %1729 = vmatmul.mubr.f32.gmra.mrb[8].mxu0 %v418_v57  ;;  %v723_v57 = vunpack.c.2.s8 %v705_v37 }
 0x120   : > { %1730 = vmatprep.mubr.f32.mxu0 %v419_v59 }
 0x121   : > { %v755_v8 = vpack.c.b16 %v724_v58, %v723_v57 }
 0x123   : > { %1731 = vmatmul.mubr.f32.gmra.mrb[10].mxu0 %v419_v59  ;;  %v756_v26 = vpack.c.b8 %v755_v8, %v755_v8 }
 0x124   : > { %1732 = vmatprep.mubr.f32.mxu0 %v420_v61 }
 0x125   : > { %vm781_vm3 = vnez %v756_v26 }
 0x126   : > { %v797_v53 = vsel %vm781_vm3, 16843009, %v2463_v18 }
 0x127   : > { %1733 = vmatmul.mubr.f32.gmra.mrb[12].mxu0 %v420_v61  ;;  %v793_v61 = vsel %vm777_vm6, 16843009, %v2463_v18  ;;  %v819_v8 = vunpack.c.0.s8 %v797_v53 }
 0x128   : > { %1734 = vmatprep.mubr.f32.mxu0 %v421_v63  ;;  %v811_v14 = vunpack.c.0.s8 %v793_v61 }
 0x12a   : > { %vm843_vm0 = vcmp.ne.s32.totalorder %v811_v14, 0 }
 0x12b   : > { %1735 = vmatmul.mubr.f32.gmra.mrb[14].mxu0 %v421_v63 }
 0x12c   : > { %1736 = vmatprep.mubr.f32.mxu0 %v422_v1 }
 0x12f   : > { %1737 = vmatmul.mubr.f32.gmra.mrb[16].mxu0 %v422_v1  ;;  %v752_v1 = vpack.c.b8 %v751_v50, %v751_v50 }
 0x130   : > { %1738 = vmatprep.mubr.f32.mxu0 %v423_v3 }
 0x131   : > { %vm779_vm14 = vnez %v752_v1 }
 0x132   : > { %v795_v30 = vsel %vm779_vm14, 16843009, %v2463_v18 }
 0x133   : > { %1739 = vmatmul.mubr.f32.gmra.mrb[18].mxu0 %v423_v3  ;;  %v815_v45 = vunpack.c.0.s8 %v795_v30  ;;  %v816_v46 = vunpack.c.1.s8 %v795_v30 }
 0x134   : > { %1740 = vmatprep.mubr.f32.mxu0 %v424_v5 }
 0x135   : > { %vm847_vm6 = vcmp.ne.s32.totalorder %v815_v45, 0  ;;  %vm3028_vm7 = vcmp.ne.s32.totalorder %v816_v46, 0 }
 0x137   : > { %1741 = vmatmul.mubr.f32.gmra.mrb[20].mxu0 %v424_v5  ;;  %v725_v5 = vunpack.c.3.s8 %v705_v37 }
 0x138   : > { %1742 = vmatprep.mubr.f32.mxu0 %v425_v7 }
 0x139   : > { %v757_v22 = vpack.c.b16 %v726_v6, %v725_v5 }
 0x13b   : > { %1743 = vmatmul.mubr.f32.gmra.mrb[22].mxu0 %v425_v7  ;;  %v758_v38 = vpack.c.b8 %v757_v22, %v757_v22 }
 0x13c   : > { %1744 = vmatprep.mubr.f32.mxu0 %v426_v9 }
 0x13d   : > { %vm3014_vm5 = vnez %v758_v38 }
 0x13f   : > { %1745 = vmatmul.mubr.f32.gmra.mrb[24].mxu0 %v426_v9  ;;  %v2964_v9 = vsel %vm667_vm11, 16843009, %v2463_v18 }
 0x140   : > { %1746 = vmatprep.mubr.f32.mxu0 %v427_v11  ;;  %v727_v23 = vunpack.c.0.s8 %v2964_v9  ;;  %v729_v41 = vunpack.c.1.s8 %v2964_v9  ;;  %v733_v20 = vunpack.c.3.s8 %v2964_v9 }
 0x142   : > { %v759_v39 = vpack.c.b16 %v728_v24, %v727_v23  ;;  %v761_v58 = vpack.c.b16 %v730_v42, %v729_v41 }
 0x143   : > { %1747 = vmatmul.mubr.f32.gmra.mrb[26].mxu0 %v427_v11 }
 0x144   : > { %1748 = vmatprep.mubr.f32.mxu0 %v428_v13  ;;  %v760_v55 = vpack.c.b8 %v759_v39, %v759_v39 }
 0x146   : > { %vm3047_vm12 = vnez %v760_v55 }
 0x147   : > { %1749 = vmatmul.mubr.f32.gmra.mrb[28].mxu0 %v428_v13  ;;  %v813_v13 = vunpack.c.0.s8 %v794_v0 }
 0x148   : > { %1750 = vmatprep.mubr.f32.mxu0 %v429_v15 }
 0x149   : > { %vm2999_vm2 = vcmp.ne.s32.totalorder %v813_v13, 0 }
 0x14b   : > { %1751 = vmatmul.mubr.f32.gmra.mrb[30].mxu0 %v429_v15  ;;  %v812_v15 = vunpack.c.1.s8 %v793_v61  ;;  %v662_v61 = vld [vmem:[%s2875_s12 + $0x38] sm:$0xff]  ;;  %s2267_s12 = scalar_lea.vmem %s3443_s4, 4096 }
 0x14c   : > { %vm670_vm11 = vnez %v662_v61  ;;  %p2268_p1 = scmp.ne.s32.totalorder %s3443_s4, %s2267_s12 }
 0x14d   : > { %vm2989_vm1 = vcmp.ne.s32.totalorder %v812_v15, 0  ;;  %v762_v15 = vpack.c.b8 %v761_v58, %v761_v58  ;;  %v3063_v29 = vsel %vm670_vm11, 16843009, %v2463_v18 }
 0x14e   : > { %v736_v41 = vunpack.c.0.s8 %v3063_v29  ;;  %v738_v0 = vunpack.c.1.s8 %v3063_v29  ;;  %p2269_p4 = pnand %p2268_p1, %p3715_p9 }
 0x14f   : > { %vm3076_vm14 = vnez %v762_v15 }
 0x150   : > { %p2270_p8 = pneg %p2269_p4 }
 0x1e2   : > { %v560_v59 = vpop.f32.mrb[0].mxu0 }
 0x1e3   : > { %v1640_v62 = vadd.f32 -1e+09, %v560_v59  ;;  %v562_v63 = vpop.f32.mrb[1].mxu0 }
 0x1e4   : > { %v1641_v3 = vadd.f32 -1e+09, %v562_v63 }
 0x1e5   : > { %v2961_v7 = vsel %vm2941_vm8, %v1640_v62, %v560_v59  ;;  %v731_v59 = vunpack.c.2.s8 %v2964_v9  ;;  %vm3032_vm8 = vcmp.ne.s32.totalorder %v817_v47, 0  ;;  %v742_v47 = vunpack.c.3.s8 %v3063_v29 }
 0x1e6   : > { %v566_v11 = vpop.f32.mrb[2].mxu0  ;;  %v2971_v12 = vsel %vm2945_vm9, %v1641_v3, %v562_v63  ;;  %vm3038_vm9 = vcmp.ne.s32.totalorder %v818_v51, 0 }
 0x1e7   : > { %v1642_v16 = vadd.f32 -1e+09, %v566_v11  ;;  %v568_v17 = vpop.f32.mrb[3].mxu0  ;;  %v903_v19 = vmax.f32 %v2961_v7, %v2971_v12 }
 0x1e8   : > { %v1643_v21 = vadd.f32 -1e+09, %v568_v17 }
 0x1e9   : > { %v2983_v25 = vsel %vm2949_vm10, %v1642_v16, %v566_v11  ;;  %904 = vmax.xlane.f32.xlu0 %v903_v19  ;;  %vm669_vm10 = vnez %v661_v56  ;;  %v798_v11 = vsel %vm3014_vm5, 16843009, %v2463_v18  ;;  %v763_v16 = vpack.c.b16 %v732_v60, %v731_v59 }
 0x1ea   : > { %v2987_v27 = vsel %vm2955_vm13, %v1643_v21, %v568_v17  ;;  %v572_v28 = vpop.f32.mrb[4].mxu0  ;;  %v734_v21 = vunpack.c.3.s8 %v2967_v10  ;;  %v3058_v22 = vsel %vm669_vm10, 16843009, %v2463_v18  ;;  %vm3065_vm13 = vcmp.ne.s32.totalorder %v819_v8, 0 }
 0x1eb   : > { %v1644_v31 = vadd.f32 -1e+09, %v572_v28  ;;  %v574_v32 = vpop.f32.mrb[5].mxu0  ;;  %v906_v33 = vmax.f32 %v2983_v25, %v2987_v27  ;;  %v821_v9 = vunpack.c.0.s8 %v798_v11  ;;  %v764_v35 = vpack.c.b8 %v763_v16, %v763_v16 }
 0x1ec   : > { %v1645_v36 = vadd.f32 -1e+09, %v574_v32  ;;  %v765_v38 = vpack.c.b16 %v734_v21, %v733_v20  ;;  %v735_v39 = vunpack.c.0.s8 %v3058_v22 }
 0x1ed   : > { %907 = vmax.xlane.f32.xlu0 %v906_v33  ;;  %v3003_v40 = vsel %vm843_vm0, %v1644_v31, %v572_v28  ;;  %v820_v28 = vunpack.c.1.s8 %v797_v53  ;;  %v799_v33 = vsel %vm3047_vm12, 16843009, %v2463_v18  ;;  %vm3088_vm0 = vcmp.ne.s32.totalorder %v821_v9, 0 }
 0x1ee   : > { %v578_v43 = vpop.f32.mrb[6].mxu0  ;;  %v3009_v44 = vsel %vm2989_vm1, %v1645_v36, %v574_v32  ;;  %v822_v32 = vunpack.c.1.s8 %v798_v11  ;;  %v824_v51 = vunpack.c.1.s8 %v799_v33  ;;  %v766_v56 = vpack.c.b8 %v765_v38, %v765_v38 }
 0x1ef   : > { %v1646_v48 = vadd.f32 -1e+09, %v578_v43  ;;  %v580_v49 = vpop.f32.mrb[7].mxu0  ;;  %v909_v50 = vmax.f32 %v3003_v40, %v3009_v44  ;;  %vm852_vm15 = vcmp.ne.s32.totalorder %v820_v28, 0  ;;  %v767_v58 = vpack.c.b16 %v736_v41, %v735_v39 }
 0x1f0   : > { %v1647_v52 = vadd.f32 -1e+09, %v580_v49  ;;  %vm3092_vm1 = vcmp.ne.s32.totalorder %v822_v32, 0  ;;  %vm3128_vm5 = vnez %v766_v56 }
 0x1f1   : > { %v3021_v57 = vsel %vm2999_vm2, %v1646_v48, %v578_v43  ;;  %910 = vmax.xlane.f32.xlu1 %v909_v50  ;;  %v823_v50 = vunpack.c.0.s8 %v799_v33  ;;  %vm3105_vm2 = vnez %v764_v35  ;;  %v768_v20 = vpack.c.b8 %v767_v58, %v767_v58 }
 0x1f2   : > { %v3026_v62 = vsel %vm846_vm4, %v1647_v52, %v580_v49  ;;  %v584_v63 = vpop.f32.mrb[8].mxu0  ;;  %v800_v52 = vsel %vm3076_vm14, 16843009, %v2463_v18  ;;  %vm856_vm4 = vcmp.ne.s32.totalorder %v824_v51, 0  ;;  %v801_v11 = vsel %vm3105_vm2, 16843009, %v2463_v18 }
 0x1f3   : > { %v1648_v2 = vadd.f32 -1e+09, %v584_v63  ;;  %v586_v3 = vpop.f32.mrb[9].mxu0  ;;  %v912_v4 = vmax.f32 %v3021_v57, %v3026_v62  ;;  %vm3117_vm3 = vcmp.ne.s32.totalorder %v823_v50, 0  ;;  %v826_v5 = vunpack.c.1.s8 %v800_v52 }
 0x1f4   : > { %v1649_v6 = vadd.f32 -1e+09, %v586_v3  ;;  %v827_v33 = vunpack.c.0.s8 %v801_v11  ;;  %v828_v34 = vunpack.c.1.s8 %v801_v11  ;;  %v802_v35 = vsel %vm3128_vm5, 16843009, %v2463_v18 }
 0x1f5   : > { %v3045_v13 = vsel %vm847_vm6, %v1648_v2, %v584_v63  ;;  %913 = vmax.xlane.f32.xlu1 %v912_v4  ;;  %v737_v63 = vunpack.c.1.s8 %v3058_v22  ;;  %v825_v4 = vunpack.c.0.s8 %v800_v52  ;;  %v829_v52 = vunpack.c.0.s8 %v802_v35 }
 0x1f6   : > { %v3053_v17 = vsel %vm3028_vm7, %v1649_v6, %v586_v3  ;;  %v590_v19 = vpop.f32.mrb[10].mxu0  ;;  %vm3144_vm7 = vcmp.ne.s32.totalorder %v826_v5, 0  ;;  %vm860_vm10 = vcmp.ne.s32.totalorder %v828_v34, 0 }
 0x1f7   : > { %v1650_v23 = vadd.f32 -1e+09, %v590_v19  ;;  %v592_v24 = vpop.f32.mrb[11].mxu0  ;;  %v915_v26 = vmax.f32 %v3045_v13, %v3053_v17  ;;  %v769_v21 = vpack.c.b16 %v738_v0, %v737_v63  ;;  %vm3140_vm6 = vcmp.ne.s32.totalorder %v825_v4, 0 }
 0x1f8   : > { %v1651_v30 = vadd.f32 -1e+09, %v592_v24  ;;  %vm861_vm12 = vcmp.ne.s32.totalorder %v829_v52, 0 }
 0x1f9   : > { %v3071_v10 = vsel %vm3032_vm8, %v1650_v23, %v590_v19  ;;  %916 = vmax.xlane.f32.xlu0 %v915_v26  ;;  %v740_v26 = vunpack.c.2.s8 %v3063_v29  ;;  %vm3155_vm8 = vnez %v768_v20 }
 0x1fa   : > { %v3082_v36 = vsel %vm3038_vm9, %v1651_v30, %v592_v24  ;;  %v596_v37 = vpop.f32.mrb[12].mxu0  ;;  %v739_v24 = vunpack.c.2.s8 %v3058_v22  ;;  %vm859_vm9 = vcmp.ne.s32.totalorder %v827_v33, 0  ;;  %v803_v29 = vsel %vm3155_vm8, 16843009, %v2463_v18 }
 0x1fb   : > { %v1652_v42 = vadd.f32 -1e+09, %v596_v37  ;;  %v598_v43 = vpop.f32.mrb[13].mxu0  ;;  %v918_v45 = vmax.f32 %v3071_v10, %v3082_v36 }
 0x1fc   : > { %v1653_v46 = vadd.f32 -1e+09, %v598_v43 }
 0x1fd   : > { %v3098_v49 = vsel %vm3065_vm13, %v1652_v42, %v596_v37  ;;  %919 = vmax.xlane.f32.xlu1 %v918_v45  ;;  %v770_v42 = vpack.c.b8 %v769_v21, %v769_v21  ;;  %v771_v45 = vpack.c.b16 %v740_v26, %v739_v24 }
 0x1fe   : > { %v3103_v53 = vsel %vm852_vm15, %v1653_v46, %v598_v43  ;;  %v602_v54 = vpop.f32.mrb[14].mxu0  ;;  %v741_v46 = vunpack.c.3.s8 %v3058_v22 }
 0x1ff   : > { %v1654_v59 = vadd.f32 -1e+09, %v602_v54  ;;  %v604_v60 = vpop.f32.mrb[15].mxu0  ;;  %v921_v61 = vmax.f32 %v3098_v49, %v3103_v53  ;;  %vm788_vm11 = vnez %v770_v42 }
 0x200   : > { %v1655_v1 = vadd.f32 -1e+09, %v604_v60  ;;  %v804_v11 = vsel %vm788_vm11, 16843009, %v2463_v18 }
 0x201   : > { %v3115_v2 = vsel %vm3088_vm0, %v1654_v59, %v602_v54  ;;  %922 = vmax.xlane.f32.xlu0 %v921_v61  ;;  %v830_v54 = vunpack.c.1.s8 %v802_v35  ;;  %v772_v59 = vpack.c.b8 %v771_v45, %v771_v45  ;;  %v833_v21 = vunpack.c.0.s8 %v804_v11 }
 0x202   : > { %v3123_v6 = vsel %vm3092_vm1, %v1655_v1, %v604_v60  ;;  %v608_v8 = vpop.f32.mrb[16].mxu0  ;;  %v773_v60 = vpack.c.b16 %v742_v47, %v741_v46  ;;  %v831_v1 = vunpack.c.0.s8 %v803_v29 }
 0x203   : > { %v1656_v15 = vadd.f32 -1e+09, %v608_v8  ;;  %v610_v16 = vpop.f32.mrb[17].mxu0  ;;  %v924_v19 = vmax.f32 %v3115_v2, %v3123_v6  ;;  %vm862_vm13 = vcmp.ne.s32.totalorder %v830_v54, 0  ;;  %vm789_vm14 = vnez %v772_v59 }
 0x204   : > { %v1657_v23 = vadd.f32 -1e+09, %v610_v16  ;;  %vm863_vm15 = vcmp.ne.s32.totalorder %v831_v1, 0  ;;  %v805_v31 = vsel %vm789_vm14, 16843009, %v2463_v18  ;;  %vm865_vm2 = vcmp.ne.s32.totalorder %v833_v21, 0 }
 0x205   : > { %v3138_v28 = vsel %vm3117_vm3, %v1656_v15, %v608_v8  ;;  %925 = vmax.xlane.f32.xlu1 %v924_v19  ;;  %v832_v8 = vunpack.c.1.s8 %v803_v29  ;;  %v774_v15 = vpack.c.b8 %v773_v60, %v773_v60  ;;  %v836_v42 = vunpack.c.1.s8 %v805_v31  ;;  %v463_v21 = vld [vmem:[%s2873_s18 + $0x8] sm:$0xff] }
 0x206   : > { %v3148_v9 = vsel %vm856_vm4, %v1657_v23, %v610_v16  ;;  %v614_v32 = vpop.f32.mrb[18].mxu0  ;;  %v834_v23 = vunpack.c.1.s8 %v804_v11  ;;  %v478_v11 = vld [vmem:[%s2873_s18 + $0x80] sm:$0xff] }
 0x207   : > { %v1658_v37 = vadd.f32 -1e+09, %v614_v32  ;;  %v616_v38 = vpop.f32.mrb[19].mxu0  ;;  %v927_v39 = vmax.f32 %v3138_v28, %v3148_v9  ;;  %vm864_vm0 = vcmp.ne.s32.totalorder %v832_v8, 0  ;;  %vm790_vm1 = vnez %v774_v15  ;;  %v462_v15 = vld [vmem:[%s2873_s18] sm:$0xff] }
 0x208   : > { %v1659_v43 = vadd.f32 -1e+09, %v616_v38  ;;  %vm866_vm3 = vcmp.ne.s32.totalorder %v834_v23, 0  ;;  %vm868_vm5 = vcmp.ne.s32.totalorder %v836_v42, 0  ;;  %v480_v23 = vld [vmem:[%s2873_s18 + $0x90] sm:$0xff]  ;;  %v467_v42 = vld [vmem:[%s2873_s18 + $0x28] sm:$0xff] }
 0x209   : > { %v3163_v48 = vsel %vm3140_vm6, %v1658_v37, %v614_v32  ;;  %928 = vmax.xlane.f32.xlu0 %v927_v39  ;;  %v835_v37 = vunpack.c.0.s8 %v805_v31  ;;  %v464_v31 = vld [vmem:[%s2873_s18 + $0x10] sm:$0xff] }
 0x20a   : > { %v3167_v50 = vsel %vm3144_vm7, %v1659_v43, %v616_v38  ;;  %v620_v51 = vpop.f32.mrb[20].mxu0  ;;  %v806_v43 = vsel %vm790_vm1, 16843009, %v2463_v18 }
 0x20b   : > { %v1660_v55 = vadd.f32 -1e+09, %v620_v51  ;;  %v622_v56 = vpop.f32.mrb[21].mxu0  ;;  %v930_v22 = vmax.f32 %v3163_v48, %v3167_v50  ;;  %vm867_vm4 = vcmp.ne.s32.totalorder %v835_v37, 0  ;;  %v837_v52 = vunpack.c.0.s8 %v806_v43  ;;  %v483_v37 = vld [vmem:[%s2873_s18 + $0xa8] sm:$0xff] }
 0x20c   : > { %v1661_v58 = vadd.f32 -1e+09, %v622_v56 }
 0x20d   : > { %v3174_v61 = vsel %vm859_vm9, %v1660_v55, %v620_v51  ;;  %931 = vmax.xlane.f32.xlu1 %v930_v22  ;;  %v838_v22 = vunpack.c.1.s8 %v806_v43  ;;  %vm869_vm6 = vcmp.ne.s32.totalorder %v837_v52, 0 }
 0x20e   : > { %v3176_v63 = vsel %vm860_vm10, %v1661_v58, %v622_v56  ;;  %v626_v0 = vpop.f32.mrb[22].mxu0 }
 0x20f   : > { %v1662_v3 = vadd.f32 -1e+09, %v626_v0  ;;  %v628_v4 = vpop.f32.mrb[23].mxu0  ;;  %v933_v5 = vmax.f32 %v3174_v61, %v3176_v63  ;;  %vm870_vm7 = vcmp.ne.s32.totalorder %v838_v22, 0 }
 0x210   : > { %v1663_v14 = vadd.f32 -1e+09, %v628_v4 }
 0x211   : > { %v3181_v16 = vsel %vm861_vm12, %v1662_v3, %v626_v0  ;;  %934 = vmax.xlane.f32.xlu0 %v933_v5 }
 0x212   : > { %v3183_v19 = vsel %vm862_vm13, %v1663_v14, %v628_v4  ;;  %v632_v20 = vpop.f32.mrb[24].mxu0  ;;  %v479_v14 = vld [vmem:[%s2873_s18 + $0x88] sm:$0xff] }
 0x213   : > { %v1664_v24 = vadd.f32 -1e+09, %v632_v20  ;;  %v634_v26 = vpop.f32.mrb[25].mxu0  ;;  %v936_v30 = vmax.f32 %v3181_v16, %v3183_v19 }
 0x214   : > { %v1665_v32 = vadd.f32 -1e+09, %v634_v26 }
 0x215   : > { %v3188_v33 = vsel %vm863_vm15, %v1664_v24, %v632_v20  ;;  %937 = vmax.xlane.f32.xlu1 %v936_v30  ;;  %v1864_v20 = vpack.c.bf16 %v479_v14, %v478_v11  ;;  %v481_v24 = vld [vmem:[%s2873_s18 + $0x98] sm:$0xff] }
 0x216   : > { %v3190_v34 = vsel %vm864_vm0, %v1665_v32, %v634_v26  ;;  %v638_v35 = vpop.f32.mrb[26].mxu0  ;;  %v1866_v26 = vpack.c.bf16 %v463_v21, %v462_v15  ;;  %v1868_v30 = vpack.c.bf16 %v481_v24, %v480_v23  ;;  %v465_v32 = vld [vmem:[%s2873_s18 + $0x18] sm:$0xff] }
 0x217   : > { %v1666_v38 = vadd.f32 -1e+09, %v638_v35  ;;  %v640_v39 = vpop.f32.mrb[27].mxu0  ;;  %v939_v41 = vmax.f32 %v3188_v33, %v3190_v34  ;;  %1865 = vmatprep.subr.bf16.mxu1 %v1864_v20 }
 0x218   : > { %v1667_v45 = vadd.f32 -1e+09, %v640_v39  ;;  %1867 = vmatpush3.bf16.msra.mxu1 %v1866_v26 }
 0x219   : > { %v3195_v46 = vsel %vm865_vm2, %v1666_v38, %v638_v35  ;;  %940 = vmax.xlane.f32.xlu0 %v939_v41  ;;  %v482_v35 = vld [vmem:[%s2873_s18 + $0xa0] sm:$0xff]  ;;  %v1870_v38 = vpack.c.bf16 %v465_v32, %v464_v31  ;;  %1869 = vmatprep.subr.bf16.mxu1 %v1868_v30 }
 0x21a   : > { %v3197_v47 = vsel %vm866_vm3, %v1667_v45, %v640_v39  ;;  %v644_v51 = vpop.f32.mrb[28].mxu0  ;;  %v1872_v39 = vpack.c.bf16 %v483_v37, %v482_v35  ;;  %v466_v41 = vld [vmem:[%s2873_s18 + $0x20] sm:$0xff] }
 0x21b   : > { %v1668_v54 = vadd.f32 -1e+09, %v644_v51  ;;  %v646_v55 = vpop.f32.mrb[29].mxu0  ;;  %v942_v56 = vmax.f32 %v3195_v46, %v3197_v47  ;;  %v1874_v43 = vpack.c.bf16 %v467_v42, %v466_v41 }
 0x21c   : > { %v1669_v29 = vadd.f32 -1e+09, %v646_v55  ;;  %1871 = vmatpush3.bf16.msra.mxu1 %v1870_v38 }
 0x21d   : > { %v3201_v58 = vsel %vm867_vm4, %v1668_v54, %v644_v51  ;;  %943 = vmax.xlane.f32.xlu1 %v942_v56  ;;  %1873 = vmatprep.subr.bf16.mxu1 %v1872_v39 }
 0x21e   : > { %v3203_v18 = vsel %vm868_vm5, %v1669_v29, %v646_v55  ;;  %v650_v59 = vpop.f32.mrb[30].mxu0 }
 0x21f   : > { %v1670_v60 = vadd.f32 -1e+09, %v650_v59  ;;  %v652_v0 = vpop.f32.mrb[31].mxu0  ;;  %v945_v1 = vmax.f32 %v3201_v58, %v3203_v18 }
 0x220   : > { %v1671_v3 = vadd.f32 -1e+09, %v652_v0  ;;  %1875 = vmatpush3.bf16.msra.mxu1 %v1874_v43 }
 0x221   : > { %v3207_v4 = vsel %vm869_vm6, %v1670_v60, %v650_v59  ;;  %946 = vmax.xlane.f32.xlu0 %v945_v1 }
 0x222   : > { %v3209_v5 = vsel %vm870_vm7, %v1671_v3, %v652_v0 }
 0x223   : > { %v948_v8 = vmax.f32 %v3207_v4, %v3209_v5 }
 0x225   : > { %949 = vmax.xlane.f32.xlu1 %v948_v8 }
 0x276   : > { %v905_v45 = vpop.xlane.xlu0 %904 }
 0x277   : > { %v951_v51 = vsub.f32 %v2961_v7, %v905_v45  ;;  %v952_v52 = vsub.f32 %v2971_v12, %v905_v45 }
 0x279   : > { %v983_v54 = vmul.f32 1.442695, %v951_v51  ;;  %v985_v55 = vmul.f32 1.442695, %v952_v52 }
 0x27a   : > { %v908_v56 = vpop.xlane.xlu0 %907 }
 0x27b   : > { %2051 = vpow2.f32 %v983_v54  ;;  %v953_v22 = vsub.f32 %v2983_v25, %v908_v56  ;;  %v954_v29 = vsub.f32 %v2987_v27, %v908_v56  ;;  %v485_v56 = vld [vmem:[%s2873_s18 + $0xb8] sm:$0xff] }
 0x27c   : > { %2053 = vpow2.f32 %v985_v55  ;;  %v484_v55 = vld [vmem:[%s2873_s18 + $0xb0] sm:$0xff] }
 0x27d   : > { %v987_v59 = vmul.f32 1.442695, %v953_v22  ;;  %v989_v60 = vmul.f32 1.442695, %v954_v29 }
 0x27e   : > { %v911_v0 = vpop.xlane.xlu1 %910 }
 0x27f   : > { %2055 = vpow2.f32 %v987_v59  ;;  %v955_v1 = vsub.f32 %v3003_v40, %v911_v0  ;;  %v956_v3 = vsub.f32 %v3009_v44, %v911_v0  ;;  %v468_v0 = vld [vmem:[%s2873_s18 + $0x30] sm:$0xff] }
 0x280   : > { %2057 = vpow2.f32 %v989_v60  ;;  %v1876_v60 = vpack.c.bf16 %v485_v56, %v484_v55 }
 0x281   : > { %v991_v7 = vmul.f32 1.442695, %v955_v1  ;;  %v993_v12 = vmul.f32 1.442695, %v956_v3  ;;  %v469_v1 = vld [vmem:[%s2873_s18 + $0x38] sm:$0xff] }
 0x282   : > { %v914_v8 = vpop.xlane.xlu1 %913  ;;  %1877 = vmatprep.subr.bf16.mxu1 %v1876_v60  ;;  %v474_v60 = vld [vmem:[%s2873_s18 + $0x60] sm:$0xff] }
 0x283   : > { %2059 = vpow2.f32 %v991_v7  ;;  %v957_v11 = vsub.f32 %v3021_v57, %v914_v8  ;;  %v958_v25 = vsub.f32 %v3026_v62, %v914_v8 }
 0x284   : > { %2061 = vpow2.f32 %v993_v12 }
 0x285   : > { %v3233_v27 = vpop.eup %2051  ;;  %v995_v14 = vmul.f32 1.442695, %v957_v11  ;;  %v997_v15 = vmul.f32 1.442695, %v958_v25  ;;  %v486_v11 = vld [vmem:[%s2873_s18 + $0xc0] sm:$0xff]  ;;  %v487_v25 = vld [vmem:[%s2873_s18 + $0xc8] sm:$0xff] }
 0x286   : > { %v3235_v20 = vpop.eup %2053  ;;  %v917_v21 = vpop.xlane.xlu0 %916 }
 0x287   : > { %2063 = vpow2.f32 %v995_v14  ;;  %v959_v40 = vsub.f32 %v3045_v13, %v917_v21  ;;  %v960_v44 = vsub.f32 %v3053_v17, %v917_v21  ;;  %v1047_v23 = vadd.f32 %v3235_v20, %v3233_v27 }
 0x288   : > { %2065 = vpow2.f32 %v997_v15 }
 0x289   : > { %v3241_v57 = vpop.eup %2055  ;;  %v999_v62 = vmul.f32 1.442695, %v959_v40  ;;  %v1001_v24 = vmul.f32 1.442695, %v960_v44  ;;  %1048 = vadd.xlane.f32.xlu0 %v1047_v23  ;;  %v1880_v40 = vpack.c.bf16 %v487_v25, %v486_v11  ;;  %v470_v44 = vld [vmem:[%s2873_s18 + $0x40] sm:$0xff] }
 0x28a   : > { %v3243_v26 = vpop.eup %2057  ;;  %v920_v30 = vpop.xlane.xlu1 %919 }
 0x28b   : > { %2067 = vpow2.f32 %v999_v62  ;;  %v961_v31 = vsub.f32 %v3071_v10, %v920_v30  ;;  %v962_v32 = vsub.f32 %v3082_v36, %v920_v30  ;;  %v1050_v13 = vadd.f32 %v3243_v26, %v3241_v57 }
 0x28c   : > { %2069 = vpow2.f32 %v1001_v24 }
 0x28d   : > { %v3249_v17 = vpop.eup %2059  ;;  %v1003_v35 = vmul.f32 1.442695, %v961_v31  ;;  %v1005_v37 = vmul.f32 1.442695, %v962_v32  ;;  %1051 = vadd.xlane.f32.xlu1 %v1050_v13  ;;  %v488_v32 = vld [vmem:[%s2873_s18 + $0xd0] sm:$0xff]  ;;  %v489_v13 = vld [vmem:[%s2873_s18 + $0xd8] sm:$0xff] }
 0x28e   : > { %v3251_v38 = vpop.eup %2061  ;;  %v923_v39 = vpop.xlane.xlu0 %922 }
 0x28f   : > { %2071 = vpow2.f32 %v1003_v35  ;;  %v963_v41 = vsub.f32 %v3098_v49, %v923_v39  ;;  %v964_v10 = vsub.f32 %v3103_v53, %v923_v39  ;;  %v1053_v36 = vadd.f32 %v3251_v38, %v3249_v17 }
 0x290   : > { %2073 = vpow2.f32 %v1005_v37 }
 0x291   : > { %v3257_v42 = vpop.eup %2063  ;;  %v1007_v43 = vmul.f32 1.442695, %v963_v41  ;;  %v1009_v45 = vmul.f32 1.442695, %v964_v10  ;;  %1054 = vadd.xlane.f32.xlu0 %v1053_v36  ;;  %v1884_v41 = vpack.c.bf16 %v489_v13, %v488_v32  ;;  %v472_v10 = vld [vmem:[%s2873_s18 + $0x50] sm:$0xff] }
 0x292   : > { %v3259_v51 = vpop.eup %2065  ;;  %v926_v52 = vpop.xlane.xlu1 %925 }
 0x293   : > { %2075 = vpow2.f32 %v1007_v43  ;;  %v965_v49 = vsub.f32 %v3115_v2, %v926_v52  ;;  %v966_v54 = vsub.f32 %v3123_v6, %v926_v52  ;;  %v1056_v53 = vadd.f32 %v3259_v51, %v3257_v42 }
 0x294   : > { %2077 = vpow2.f32 %v1009_v45  ;;  %v1878_v6 = vpack.c.bf16 %v469_v1, %v468_v0 }
 0x295   : > { %v3267_v22 = vpop.eup %2067  ;;  %v1011_v29 = vmul.f32 1.442695, %v965_v49  ;;  %v1013_v59 = vmul.f32 1.442695, %v966_v54  ;;  %1057 = vadd.xlane.f32.xlu1 %v1056_v53  ;;  %v490_v54 = vld [vmem:[%s2873_s18 + $0xe0] sm:$0xff]  ;;  %v491_v53 = vld [vmem:[%s2873_s18 + $0xe8] sm:$0xff] }
 0x296   : > { %v3271_v3 = vpop.eup %2069  ;;  %v929_v2 = vpop.xlane.xlu0 %928  ;;  %1879 = vmatpush3.bf16.msra.mxu1 %v1878_v6 }
 0x297   : > { %2079 = vpow2.f32 %v1011_v29  ;;  %v967_v7 = vsub.f32 %v3138_v28, %v929_v2  ;;  %v968_v12 = vsub.f32 %v3148_v9, %v929_v2  ;;  %v1059_v8 = vadd.f32 %v3271_v3, %v3267_v22  ;;  %v471_v28 = vld [vmem:[%s2873_s18 + $0x48] sm:$0xff]  ;;  %1881 = vmatprep.subr.bf16.mxu1 %v1880_v40  ;;  %v476_v40 = vld [vmem:[%s2873_s18 + $0x70] sm:$0xff] }
 0x298   : > { %2081 = vpow2.f32 %v1013_v59  ;;  %v1882_v62 = vpack.c.bf16 %v471_v28, %v470_v44  ;;  %v1888_v59 = vpack.c.bf16 %v491_v53, %v490_v54  ;;  %v477_v44 = vld [vmem:[%s2873_s18 + $0x78] sm:$0xff] }
 0x299   : > { %v3279_v14 = vpop.eup %2071  ;;  %v1015_v15 = vmul.f32 1.442695, %v967_v7  ;;  %v1017_v21 = vmul.f32 1.442695, %v968_v12  ;;  %1060 = vadd.xlane.f32.xlu0 %v1059_v8  ;;  %v492_v12 = vld [vmem:[%s2873_s18 + $0xf0] sm:$0xff]  ;;  %v493_v8 = vld [vmem:[%s2873_s18 + $0xf8] sm:$0xff] }
 0x29a   : > { %v3283_v23 = vpop.eup %2073  ;;  %v932_v9 = vpop.xlane.xlu1 %931  ;;  %1883 = vmatpush3.bf16.msra.mxu1 %v1882_v62 }
 0x29b   : > { %2083 = vpow2.f32 %v1015_v15  ;;  %v969_v24 = vsub.f32 %v3163_v48, %v932_v9  ;;  %v970_v30 = vsub.f32 %v3167_v50, %v932_v9  ;;  %v1062_v31 = vadd.f32 %v3283_v23, %v3279_v14  ;;  %v473_v48 = vld [vmem:[%s2873_s18 + $0x58] sm:$0xff]  ;;  %1885 = vmatprep.subr.bf16.mxu1 %v1884_v41 }
 0x29c   : > { %2085 = vpow2.f32 %v1017_v21  ;;  %v1886_v43 = vpack.c.bf16 %v473_v48, %v472_v10  ;;  %v1892_v21 = vpack.c.bf16 %v493_v8, %v492_v12 }
 0x29d   : > { %v3291_v35 = vpop.eup %2075  ;;  %v1019_v37 = vmul.f32 1.442695, %v969_v24  ;;  %v1021_v39 = vmul.f32 1.442695, %v970_v30  ;;  %1063 = vadd.xlane.f32.xlu1 %v1062_v31 }
 0x29e   : > { %v3295_v36 = vpop.eup %2077  ;;  %v935_v50 = vpop.xlane.xlu0 %934  ;;  %1887 = vmatpush3.bf16.msra.mxu1 %v1886_v43 }
 0x29f   : > { %2087 = vpow2.f32 %v1019_v37  ;;  %v971_v45 = vsub.f32 %v3174_v61, %v935_v50  ;;  %v972_v52 = vsub.f32 %v3176_v63, %v935_v50  ;;  %v1065_v49 = vadd.f32 %v3295_v36, %v3291_v35  ;;  %v475_v61 = vld [vmem:[%s2873_s18 + $0x68] sm:$0xff]  ;;  %1889 = vmatprep.subr.bf16.mxu1 %v1888_v59  ;;  %s3448_s18 = scalar_lea.hbm %s3714_s7, %s1680_s8 }
 0x2a0   : > { %2089 = vpow2.f32 %v1021_v39  ;;  %v1890_v1 = vpack.c.bf16 %v475_v61, %v474_v60 }
 0x2a1   : > { %v3303_v55 = vpop.eup %2079  ;;  %v1023_v56 = vmul.f32 1.442695, %v971_v45  ;;  %v1025_v29 = vmul.f32 1.442695, %v972_v52  ;;  %1066 = vadd.xlane.f32.xlu0 %v1065_v49 }
 0x2a2   : > { %v3307_v0 = vpop.eup %2081  ;;  %v938_v63 = vpop.xlane.xlu1 %937  ;;  %1891 = vmatpush3.bf16.msra.mxu1 %v1890_v1 }
 0x2a3   : > { %2091 = vpow2.f32 %v1023_v56  ;;  %v973_v2 = vsub.f32 %v3181_v16, %v938_v63  ;;  %v974_v6 = vsub.f32 %v3183_v19, %v938_v63  ;;  %v1068_v7 = vadd.f32 %v3307_v0, %v3303_v55  ;;  %1893 = vmatprep.subr.bf16.mxu1 %v1892_v21 }
 0x2a4   : > { %2093 = vpow2.f32 %v1025_v29  ;;  %v1894_v19 = vpack.c.bf16 %v477_v44, %v476_v40 }
 0x2a5   : > { %v3315_v11 = vpop.eup %2083  ;;  %v1027_v25 = vmul.f32 1.442695, %v973_v2  ;;  %v1029_v15 = vmul.f32 1.442695, %v974_v6  ;;  %1069 = vadd.xlane.f32.xlu1 %v1068_v7 }
 0x2a6   : > { %v3319_v28 = vpop.eup %2085  ;;  %v941_v16 = vpop.xlane.xlu0 %940  ;;  %1895 = vmatpush3.bf16.msra.mxu1 %v1894_v19 }
 0x2a7   : > { %2095 = vpow2.f32 %v1027_v25  ;;  %v975_v9 = vsub.f32 %v3188_v33, %v941_v16  ;;  %v976_v62 = vsub.f32 %v3190_v34, %v941_v16  ;;  %v1071_v24 = vadd.f32 %v3319_v28, %v3315_v11 }
 0x2a8   : > { %2097 = vpow2.f32 %v1029_v15 }
 0x2a9   : > { %v3325_v30 = vpop.eup %2087  ;;  %v1031_v31 = vmul.f32 1.442695, %v975_v9  ;;  %v1033_v32 = vmul.f32 1.442695, %v976_v62  ;;  %1072 = vadd.xlane.f32.xlu0 %v1071_v24 }
 0x2aa   : > { %v3327_v13 = vpop.eup %2089  ;;  %v944_v37 = vpop.xlane.xlu1 %943 }
 0x2ab   : > { %2099 = vpow2.f32 %v1031_v31  ;;  %v977_v39 = vsub.f32 %v3195_v46, %v944_v37  ;;  %v978_v33 = vsub.f32 %v3197_v47, %v944_v37  ;;  %v1074_v34 = vadd.f32 %v3327_v13, %v3325_v30 }
 0x2ac   : > { %2101 = vpow2.f32 %v1033_v32 }
 0x2ad   : > { %v3333_v41 = vpop.eup %2091  ;;  %v1035_v10 = vmul.f32 1.442695, %v977_v39  ;;  %v1037_v48 = vmul.f32 1.442695, %v978_v33  ;;  %1075 = vadd.xlane.f32.xlu1 %v1074_v34 }
 0x2ae   : > { %v3335_v50 = vpop.eup %2093  ;;  %v947_v43 = vpop.xlane.xlu0 %946 }
 0x2af   : > { %2103 = vpow2.f32 %v1035_v10  ;;  %v979_v45 = vsub.f32 %v3201_v58, %v947_v43  ;;  %v980_v52 = vsub.f32 %v3203_v18, %v947_v43  ;;  %v1077_v46 = vadd.f32 %v3335_v50, %v3333_v41 }
 0x2b0   : > { %2105 = vpow2.f32 %v1037_v48 }
 0x2b1   : > { %v3341_v47 = vpop.eup %2095  ;;  %v1039_v49 = vmul.f32 1.442695, %v979_v45  ;;  %v1041_v54 = vmul.f32 1.442695, %v980_v52  ;;  %1078 = vadd.xlane.f32.xlu0 %v1077_v46 }
 0x2b2   : > { %v3343_v53 = vpop.eup %2097  ;;  %v950_v56 = vpop.xlane.xlu1 %949 }
 0x2b3   : > { %2107 = vpow2.f32 %v1039_v49  ;;  %v981_v29 = vsub.f32 %v3207_v4, %v950_v56  ;;  %v982_v59 = vsub.f32 %v3209_v5, %v950_v56  ;;  %v1080_v58 = vadd.f32 %v3343_v53, %v3341_v47 }
 0x2b4   : > { %2109 = vpow2.f32 %v1041_v54 }
 0x2b5   : > { %v3349_v18 = vpop.eup %2099  ;;  %v1043_v60 = vmul.f32 1.442695, %v981_v29  ;;  %v1045_v61 = vmul.f32 1.442695, %v982_v59  ;;  %1081 = vadd.xlane.f32.xlu1 %v1080_v58 }
 0x2b6   : > { %v3351_v63 = vpop.eup %2101 }
 0x2b7   : > { %2111 = vpow2.f32 %v1043_v60  ;;  %v1083_v1 = vadd.f32 %v3351_v63, %v3349_v18 }
 0x2b8   : > { %2113 = vpow2.f32 %v1045_v61 }
 0x2b9   : > { %v3355_v2 = vpop.eup %2103  ;;  %1084 = vadd.xlane.f32.xlu0 %v1083_v1 }
 0x2ba   : > { %v3357_v4 = vpop.eup %2105 }
 0x2bb   : > { %v1086_v5 = vadd.f32 %v3357_v4, %v3355_v2 }
 0x2bd   : > { %v3361_v6 = vpop.eup %2107  ;;  %1087 = vadd.xlane.f32.xlu1 %v1086_v5 }
 0x2be   : > { %v3363_v7 = vpop.eup %2109 }
 0x2bf   : > { %v1089_v12 = vadd.f32 %v3363_v7, %v3361_v6 }
 0x2c1   : > { %v3367_v8 = vpop.eup %2111  ;;  %1090 = vadd.xlane.f32.xlu0 %v1089_v12 }
 0x2c2   : > { %v3369_v25 = vpop.eup %2113 }
 0x2c3   : > { %v1092_v15 = vadd.f32 %v3369_v25, %v3367_v8 }
 0x2c5   : > { %1093 = vadd.xlane.f32.xlu1 %v1092_v15 }
 0x316   : > { %v1049_v21 = vpop.xlane.xlu0 %1048 }
 0x317   : > { %2115 = vrcp.f32 %v1049_v21 }
 0x31a   : > { %v1052_v40 = vpop.xlane.xlu1 %1051 }
 0x31b   : > { %2117 = vrcp.f32 %v1052_v40 }
 0x31e   : > { %v1055_v44 = vpop.xlane.xlu0 %1054 }
 0x31f   : > { %2119 = vrcp.f32 %v1055_v44 }
 0x321   : > { %v2116_v16 = vpop.eup %2115 }
 0x322   : > { %v1111_v19 = vmul.f32 %v2116_v16, %v1049_v21  ;;  %v1058_v9 = vpop.xlane.xlu1 %1057 }
 0x323   : > { %2121 = vrcp.f32 %v1058_v9 }
 0x324   : > { %v1127_v62 = vsub.f32 2.0, %v1111_v19 }
 0x325   : > { %v2118_v24 = vpop.eup %2117 }
 0x326   : > { %v1112_v31 = vmul.f32 %v2118_v24, %v1052_v40  ;;  %v1061_v32 = vpop.xlane.xlu0 %1060  ;;  %v1143_v37 = vmul.f32 %v2116_v16, %v1127_v62 }
 0x327   : > { %2123 = vrcp.f32 %v1061_v32 }
 0x328   : > { %v1128_v39 = vsub.f32 2.0, %v1112_v31  ;;  %v1160_v33 = vmul.f32 %v3235_v20, %v1143_v37  ;;  %v1159_v34 = vmul.f32 %v3233_v27, %v1143_v37 }
 0x329   : > { %v2120_v10 = vpop.eup %2119 }
 0x32a   : > { %v1144_v48 = vmul.f32 %v2118_v24, %v1128_v39  ;;  %v1113_v43 = vmul.f32 %v2120_v10, %v1055_v44  ;;  %1192 = vst [vmem:[%s3376_s10 + $0x8] sm:$0xff] %v1160_v33  ;;  %1287 = vmatprep.mubr.f32.mxu1 %v1160_v33  ;;  %v1064_v45 = vpop.xlane.xlu1 %1063  ;;  %1191 = vst [vmem:[%s3376_s10] sm:$0xff] %v1159_v34 }
 0x32b   : > { %2125 = vrcp.f32 %v1064_v45  ;;  %1288 = vmatmul.mubr.f32.vlgmr.msra.gmra.mrb[0].mxu1 %v1159_v34 }
 0x32c   : > { %v1129_v52 = vsub.f32 2.0, %v1113_v43  ;;  %v1162_v20 = vmul.f32 %v3243_v26, %v1144_v48  ;;  %v1161_v27 = vmul.f32 %v3241_v57, %v1144_v48 }
 0x32d   : > { %v2122_v46 = vpop.eup %2121 }
 0x32e   : > { %v1145_v49 = vmul.f32 %v2120_v10, %v1129_v52  ;;  %v1114_v54 = vmul.f32 %v2122_v46, %v1058_v9  ;;  %v1067_v56 = vpop.xlane.xlu0 %1066  ;;  %1194 = vst [vmem:[%s3376_s10 + $0x18] sm:$0xff] %v1162_v20  ;;  %1292 = vmatprep.mubr.f32.mxu1 %v1162_v20  ;;  %1193 = vst [vmem:[%s3376_s10 + $0x10] sm:$0xff] %v1161_v27 }
 0x32f   : > { %2127 = vrcp.f32 %v1067_v56  ;;  %1293 = vmatmul.mubr.f32.gmra.mrb[2].mxu1 %v1161_v27 }
 0x330   : > { %v1130_v29 = vsub.f32 2.0, %v1114_v54  ;;  %v1164_v59 = vmul.f32 %v3251_v38, %v1145_v49  ;;  %v1163_v58 = vmul.f32 %v3249_v17, %v1145_v49 }
 0x331   : > { %v2124_v60 = vpop.eup %2123 }
 0x332   : > { %v1146_v26 = vmul.f32 %v2122_v46, %v1130_v29  ;;  %v1115_v57 = vmul.f32 %v2124_v60, %v1061_v32  ;;  %1196 = vst [vmem:[%s3376_s10 + $0x28] sm:$0xff] %v1164_v59  ;;  %1297 = vmatprep.mubr.f32.mxu1 %v1164_v59  ;;  %v1070_v61 = vpop.xlane.xlu1 %1069  ;;  %1195 = vst [vmem:[%s3376_s10 + $0x20] sm:$0xff] %v1163_v58 }
 0x333   : > { %2129 = vrcp.f32 %v1070_v61  ;;  %1298 = vmatmul.mubr.f32.gmra.mrb[4].mxu1 %v1163_v58 }
 0x334   : > { %v1131_v1 = vsub.f32 2.0, %v1115_v57  ;;  %v1166_v5 = vmul.f32 %v3259_v51, %v1146_v26  ;;  %v1165_v12 = vmul.f32 %v3257_v42, %v1146_v26 }
 0x335   : > { %v2126_v38 = vpop.eup %2125 }
 0x336   : > { %v1147_v15 = vmul.f32 %v2124_v60, %v1131_v1  ;;  %v1116_v17 = vmul.f32 %v2126_v38, %v1064_v45  ;;  %v1073_v21 = vpop.xlane.xlu0 %1072  ;;  %1198 = vst [vmem:[%s3376_s10 + $0x38] sm:$0xff] %v1166_v5  ;;  %1302 = vmatprep.mubr.f32.mxu1 %v1166_v5  ;;  %1197 = vst [vmem:[%s3376_s10 + $0x30] sm:$0xff] %v1165_v12 }
 0x337   : > { %2131 = vrcp.f32 %v1073_v21  ;;  %1303 = vmatmul.mubr.f32.gmra.mrb[6].mxu1 %v1165_v12 }
 0x338   : > { %v1132_v40 = vsub.f32 2.0, %v1116_v17  ;;  %v1168_v44 = vmul.f32 %v3271_v3, %v1147_v15  ;;  %v1167_v16 = vmul.f32 %v3267_v22, %v1147_v15 }
 0x339   : > { %v2128_v19 = vpop.eup %2127 }
 0x33a   : > { %v1148_v51 = vmul.f32 %v2126_v38, %v1132_v40  ;;  %v1117_v42 = vmul.f32 %v2128_v19, %v1067_v56  ;;  %1200 = vst [vmem:[%s3376_s10 + $0x48] sm:$0xff] %v1168_v44  ;;  %1307 = vmatprep.mubr.f32.mxu1 %v1168_v44  ;;  %v1076_v9 = vpop.xlane.xlu1 %1075  ;;  %1199 = vst [vmem:[%s3376_s10 + $0x40] sm:$0xff] %v1167_v16 }
 0x33b   : > { %2133 = vrcp.f32 %v1076_v9  ;;  %1308 = vmatmul.mubr.f32.gmra.mrb[8].mxu1 %v1167_v16 }
 0x33c   : > { %v1133_v62 = vsub.f32 2.0, %v1117_v42  ;;  %v1170_v24 = vmul.f32 %v3283_v23, %v1148_v51  ;;  %v1169_v31 = vmul.f32 %v3279_v14, %v1148_v51 }
 0x33d   : > { %v2130_v3 = vpop.eup %2129 }
 0x33e   : > { %v1149_v32 = vmul.f32 %v2128_v19, %v1133_v62  ;;  %v1118_v22 = vmul.f32 %v2130_v3, %v1070_v61  ;;  %v1079_v37 = vpop.xlane.xlu0 %1078  ;;  %1202 = vst [vmem:[%s3376_s10 + $0x58] sm:$0xff] %v1170_v24  ;;  %1312 = vmatprep.mubr.f32.mxu1 %v1170_v24  ;;  %1201 = vst [vmem:[%s3376_s10 + $0x50] sm:$0xff] %v1169_v31 }
 0x33f   : > { %2135 = vrcp.f32 %v1079_v37  ;;  %1313 = vmatmul.mubr.f32.gmra.mrb[10].mxu1 %v1169_v31 }
 0x340   : > { %v1134_v39 = vsub.f32 2.0, %v1118_v22  ;;  %v1172_v33 = vmul.f32 %v3295_v36, %v1149_v32  ;;  %v1171_v34 = vmul.f32 %v3291_v35, %v1149_v32 }
 0x341   : > { %v2132_v10 = vpop.eup %2131 }
 0x342   : > { %v1150_v23 = vmul.f32 %v2130_v3, %v1134_v39  ;;  %v1119_v14 = vmul.f32 %v2132_v10, %v1073_v21  ;;  %1204 = vst [vmem:[%s3376_s10 + $0x68] sm:$0xff] %v1172_v33  ;;  %1317 = vmatprep.mubr.f32.mxu1 %v1172_v33  ;;  %v1082_v48 = vpop.xlane.xlu1 %1081  ;;  %1203 = vst [vmem:[%s3376_s10 + $0x60] sm:$0xff] %v1171_v34 }
 0x343   : > { %2137 = vrcp.f32 %v1082_v48  ;;  %1318 = vmatmul.mubr.f32.gmra.mrb[12].mxu1 %v1171_v34 }
 0x344   : > { %v1135_v43 = vsub.f32 2.0, %v1119_v14  ;;  %v1174_v45 = vmul.f32 %v3307_v0, %v1150_v23  ;;  %v1173_v52 = vmul.f32 %v3303_v55, %v1150_v23 }
 0x345   : > { %v2134_v36 = vpop.eup %2133 }
 0x346   : > { %v1151_v20 = vmul.f32 %v2132_v10, %v1135_v43  ;;  %v1120_v35 = vmul.f32 %v2134_v36, %v1076_v9  ;;  %v1085_v27 = vpop.xlane.xlu0 %1084  ;;  %1206 = vst [vmem:[%s3376_s10 + $0x78] sm:$0xff] %v1174_v45  ;;  %1322 = vmatprep.mubr.f32.mxu1 %v1174_v45  ;;  %1205 = vst [vmem:[%s3376_s10 + $0x70] sm:$0xff] %v1173_v52 }
 0x347   : > { %2139 = vrcp.f32 %v1085_v27  ;;  %1323 = vmatmul.mubr.f32.gmra.mrb[14].mxu1 %v1173_v52 }
 0x348   : > { %v1136_v46 = vsub.f32 2.0, %v1120_v35  ;;  %v1176_v49 = vmul.f32 %v3319_v28, %v1151_v20  ;;  %v1175_v54 = vmul.f32 %v3315_v11, %v1151_v20 }
 0x349   : > { %v2136_v56 = vpop.eup %2135 }
 0x34a   : > { %v1152_v0 = vmul.f32 %v2134_v36, %v1136_v46  ;;  %v1121_v55 = vmul.f32 %v2136_v56, %v1079_v37  ;;  %1208 = vst [vmem:[%s3376_s10 + $0x88] sm:$0xff] %v1176_v49  ;;  %1327 = vmatprep.mubr.f32.mxu1 %v1176_v49  ;;  %v1088_v29 = vpop.xlane.xlu1 %1087  ;;  %1207 = vst [vmem:[%s3376_s10 + $0x80] sm:$0xff] %v1175_v54 }
 0x34b   : > { %2141 = vrcp.f32 %v1088_v29  ;;  %1328 = vmatmul.mubr.f32.gmra.mrb[16].mxu1 %v1175_v54 }
 0x34c   : > { %v1137_v59 = vsub.f32 2.0, %v1121_v55  ;;  %v1178_v58 = vmul.f32 %v3327_v13, %v1152_v0  ;;  %v1177_v60 = vmul.f32 %v3325_v30, %v1152_v0 }
 0x34d   : > { %v2138_v28 = vpop.eup %2137 }
 0x34e   : > { %v1153_v26 = vmul.f32 %v2136_v56, %v1137_v59  ;;  %v1122_v11 = vmul.f32 %v2138_v28, %v1082_v48  ;;  %v1091_v57 = vpop.xlane.xlu0 %1090  ;;  %1210 = vst [vmem:[%s3376_s10 + $0x98] sm:$0xff] %v1178_v58  ;;  %1332 = vmatprep.mubr.f32.mxu1 %v1178_v58  ;;  %1209 = vst [vmem:[%s3376_s10 + $0x90] sm:$0xff] %v1177_v60 }
 0x34f   : > { %2143 = vrcp.f32 %v1091_v57  ;;  %1333 = vmatmul.mubr.f32.gmra.mrb[18].mxu1 %v1177_v60 }
 0x350   : > { %v1138_v61 = vsub.f32 2.0, %v1122_v11  ;;  %v1180_v1 = vmul.f32 %v3335_v50, %v1153_v26  ;;  %v1179_v5 = vmul.f32 %v3333_v41, %v1153_v26 }
 0x351   : > { %v2140_v13 = vpop.eup %2139 }
 0x352   : > { %v1154_v12 = vmul.f32 %v2138_v28, %v1138_v61  ;;  %v1123_v30 = vmul.f32 %v2140_v13, %v1085_v27  ;;  %1212 = vst [vmem:[%s3376_s10 + $0xa8] sm:$0xff] %v1180_v1  ;;  %1337 = vmatprep.mubr.f32.mxu1 %v1180_v1  ;;  %v1094_v38 = vpop.xlane.xlu1 %1093  ;;  %1211 = vst [vmem:[%s3376_s10 + $0xa0] sm:$0xff] %v1179_v5 }
 0x353   : > { %2145 = vrcp.f32 %v1094_v38  ;;  %1338 = vmatmul.mubr.f32.gmra.mrb[20].mxu1 %v1179_v5 }
 0x354   : > { %v1139_v15 = vsub.f32 2.0, %v1123_v30  ;;  %v1182_v17 = vmul.f32 %v3343_v53, %v1154_v12  ;;  %v1181_v21 = vmul.f32 %v3341_v47, %v1154_v12 }
 0x355   : > { %v2142_v50 = vpop.eup %2141 }
 0x356   : > { %v1155_v41 = vmul.f32 %v2140_v13, %v1139_v15  ;;  %v1124_v40 = vmul.f32 %v2142_v50, %v1088_v29  ;;  %1214 = vst [vmem:[%s3376_s10 + $0xb8] sm:$0xff] %v1182_v17  ;;  %1342 = vmatprep.mubr.f32.mxu1 %v1182_v17  ;;  %1213 = vst [vmem:[%s3376_s10 + $0xb0] sm:$0xff] %v1181_v21 }
 0x357   : > { %1343 = vmatmul.mubr.f32.gmra.mrb[22].mxu1 %v1181_v21 }
 0x358   : > { %v1140_v44 = vsub.f32 2.0, %v1124_v40  ;;  %v1184_v16 = vmul.f32 %v3351_v63, %v1155_v41  ;;  %v1183_v19 = vmul.f32 %v3349_v18, %v1155_v41 }
 0x359   : > { %v2144_v51 = vpop.eup %2143 }
 0x35a   : > { %v1156_v42 = vmul.f32 %v2142_v50, %v1140_v44  ;;  %v1125_v53 = vmul.f32 %v2144_v51, %v1091_v57  ;;  %1216 = vst [vmem:[%s3376_s10 + $0xc8] sm:$0xff] %v1184_v16  ;;  %1347 = vmatprep.mubr.f32.mxu1 %v1184_v16  ;;  %1215 = vst [vmem:[%s3376_s10 + $0xc0] sm:$0xff] %v1183_v19 }
 0x35b   : > { %1348 = vmatmul.mubr.f32.gmra.mrb[24].mxu1 %v1183_v19 }
 0x35c   : > { %v1141_v47 = vsub.f32 2.0, %v1125_v53  ;;  %v1186_v9 = vmul.f32 %v3357_v4, %v1156_v42  ;;  %v1185_v62 = vmul.f32 %v3355_v2, %v1156_v42 }
 0x35d   : > { %v2146_v24 = vpop.eup %2145 }
 0x35e   : > { %v1157_v31 = vmul.f32 %v2144_v51, %v1141_v47  ;;  %v1126_v63 = vmul.f32 %v2146_v24, %v1094_v38  ;;  %1218 = vst [vmem:[%s3376_s10 + $0xd8] sm:$0xff] %v1186_v9  ;;  %1352 = vmatprep.mubr.f32.mxu1 %v1186_v9  ;;  %1217 = vst [vmem:[%s3376_s10 + $0xd0] sm:$0xff] %v1185_v62 }
 0x35f   : > { %1353 = vmatmul.mubr.f32.gmra.mrb[26].mxu1 %v1185_v62 }
 0x360   : > { %v1142_v18 = vsub.f32 2.0, %v1126_v63  ;;  %v1188_v3 = vmul.f32 %v3363_v7, %v1157_v31  ;;  %v1187_v32 = vmul.f32 %v3361_v6, %v1157_v31 }
 0x362   : > { %v1158_v4 = vmul.f32 %v2146_v24, %v1142_v18  ;;  %1220 = vst [vmem:[%s3376_s10 + $0xe8] sm:$0xff] %v1188_v3  ;;  %1357 = vmatprep.mubr.f32.mxu1 %v1188_v3  ;;  %1219 = vst [vmem:[%s3376_s10 + $0xe0] sm:$0xff] %v1187_v32 }
 0x363   : > { %1358 = vmatmul.mubr.f32.gmra.mrb[28].mxu1 %v1187_v32 }
 0x364   : > { %v1190_v2 = vmul.f32 %v3369_v25, %v1158_v4  ;;  %v1189_v22 = vmul.f32 %v3367_v8, %v1158_v4 }
 0x366   : > { %1222 = vst [vmem:[%s3376_s10 + $0xf8] sm:$0xff] %v1190_v2  ;;  %1362 = vmatprep.mubr.f32.mxu1 %v1190_v2  ;;  %1221 = vst [vmem:[%s3376_s10 + $0xf0] sm:$0xff] %v1189_v22  ;;  %s2271_s10 = sshll.u32 %s2464_s21, 4  ;;  %s2272_s10 = int_to_ptr.vmem [resolvable:$false] %s2271_s10 }
 0x367   : > { %1363 = vmatmul.mubr.f32.gmra.mrb[30].mxu1 %v1189_v22  ;;  %s2273_s27 = scalar_lea.vmem %s2272_s10, 8192  ;;  %p2274_p13 = scmp.lt.s32.totalorder %s3443_s4, %s2272_s10 }
 0x368   : > { %p2275_p3 = scmp.lt.s32.totalorder %s2273_s27, %s2267_s12 }
 0x36a   : > { %p2276_p11 = por %p2275_p3, %p2274_p13 }
 0x36c   : > { %p2277_p0 = pnand %p2276_p11, %p2270_p8 }
 0x36e   : > { %2280 = shalt.err (!%p2277_p0)
}
 0x36f   : > { %s2281_s28 = scalar_lea.hbm %s3448_s18, 4096  ;;  %s2285_s25 = scalar_lea.hbm %s3714_s7, 16384 }
 0x370   : > { %p2282_p7 = scmp.ne.s32.totalorder %s3448_s18, %s2281_s28  ;;  %p2286_p6 = scmp.lt.u32.totalorder %s3448_s18, %s3714_s7 }
 0x371   : > { %p2287_p12 = scmp.lt.u32.totalorder %s2285_s25, %s2281_s28  ;;  %p2289_p1 = scmp.lt.u32.totalorder %s2281_s28, %s3448_s18 }
 0x372   : > { %p2283_p5 = pnand %p2282_p7, %p3715_p9 }
 0x373   : > { %p2288_p2 = por %p2287_p12, %p2286_p6 }
 0x374   : > { %p2284_p10 = pneg %p2283_p5 }
 0x375   : > { %p2290_p4 = por %p2289_p1, %p2288_p2 }
 0x377   : > { %p2291_p8 = pnand %p2290_p4, %p2284_p10 }
 0x379   : > { %2294 = shalt.err (!%p2291_p8)
}
 0x37a   : > { %s2465_s12 = smov 256   ;;  %s2466_s10 = smov 16  }
 0x37b   : > { %1905 = dma.vmem_to_hbm [thread:$0]  (%p3715_p9), %s3443_s4, 4096, %s3448_s18, %s1390_s3, %s2465_s12, %s2465_s12, %s2466_s10  }
 0x37c   : > { %s3476_s27 = scalar_lea.vmem [#allocation10], %s1634_s14  ;;  %s1674_s14 = sshll.u32 %s3711_s17, 4 }
 0x37d   : > { %s1675_s4 = sshll.u32 %s3712_s1, 5  ;;  %s1405_s28 = sshll.u32 %s3476_s27, 4  ;;  %s3501_s28 = int_to_ptr.vmem [resolvable:$true] %s1405_s28 }
 0x37e   : > { %s1402_s18 = sadd.s32 %s1675_s4, %s1674_s14  ;;  %s3716_s25 = sld [smem:[#allocation33_spill]] }
 0x37f   : > { %s1676_s3 = sshll.u32 %s1402_s18, 7  ;;  %s1385_s1 = scalar_lea.sflag [#allocation4], %s2852_s16 }
 0x380   : > { %s2295_s24 = scalar_lea.vmem %s3501_s28, 2048  ;;  %s2467_s21 = smov [#allocation10]  }
 0x381   : > { %p2296_p13 = scmp.ne.s32.totalorder %s3501_s28, %s2295_s24  ;;  %s2299_s10 = sshll.u32 %s2467_s21, 4  ;;  %s2300_s10 = int_to_ptr.vmem [resolvable:$false] %s2299_s10 }
 0x382   : > { %s2301_s14 = scalar_lea.vmem %s2300_s10, 4096  ;;  %p2302_p0 = scmp.lt.s32.totalorder %s3501_s28, %s2300_s10 }
 0x383   : > { %p2297_p3 = pnand %p2296_p13, %p3715_p9  ;;  %p2303_p7 = scmp.lt.s32.totalorder %s2301_s14, %s2295_s24 }
 0x384   : > { %s3717_s12 = smov %s3716_s25  ;;  %s3499_s17 = scalar_lea.hbm %s3716_s25, %s1676_s3 }
 0x385   : > { %p2298_p11 = pneg %p2297_p3  ;;  %p2304_p5 = por %p2303_p7, %p2302_p0 }
 0x387   : > { %p2305_p10 = pnand %p2304_p5, %p2298_p11 }
 0x3fe   : > { %v1784_v6 = vpop.f32.mrb[0].mxu1 }
 0x3ff   : > { %v1785_v7 = vpop.f32.mrb[1].mxu1 }
 0x400   : > { %v1786_v8 = vadd.f32 %v1785_v7, %v1784_v6 }
 0x402   : > { %1368 = vst [vmem:[%s3476_s27] sm:$0xff] %v1786_v8  ;;  %v1787_v25 = vpop.f32.mrb[2].mxu1 }
 0x403   : > { %v1788_v37 = vpop.f32.mrb[3].mxu1 }
 0x404   : > { %v1789_v39 = vadd.f32 %v1788_v37, %v1787_v25 }
 0x406   : > { %1369 = vst [vmem:[%s3476_s27 + $0x8] sm:$0xff] %v1789_v39  ;;  %v1790_v33 = vpop.f32.mrb[4].mxu1 }
 0x407   : > { %v1791_v34 = vpop.f32.mrb[5].mxu1 }
 0x408   : > { %v1792_v10 = vadd.f32 %v1791_v34, %v1790_v33 }
 0x40a   : > { %1370 = vst [vmem:[%s3476_s27 + $0x10] sm:$0xff] %v1792_v10  ;;  %v1793_v23 = vpop.f32.mrb[6].mxu1 }
 0x40b   : > { %v1794_v14 = vpop.f32.mrb[7].mxu1 }
 0x40c   : > { %v1795_v48 = vadd.f32 %v1794_v14, %v1793_v23 }
 0x40e   : > { %1371 = vst [vmem:[%s3476_s27 + $0x18] sm:$0xff] %v1795_v48  ;;  %v1796_v43 = vpop.f32.mrb[8].mxu1 }
 0x40f   : > { %v1797_v45 = vpop.f32.mrb[9].mxu1 }
 0x410   : > { %v1798_v52 = vadd.f32 %v1797_v45, %v1796_v43 }
 0x412   : > { %1372 = vst [vmem:[%s3476_s27 + $0x20] sm:$0xff] %v1798_v52  ;;  %v1799_v36 = vpop.f32.mrb[10].mxu1 }
 0x413   : > { %v1800_v20 = vpop.f32.mrb[11].mxu1 }
 0x414   : > { %v1801_v35 = vadd.f32 %v1800_v20, %v1799_v36 }
 0x416   : > { %1373 = vst [vmem:[%s3476_s27 + $0x28] sm:$0xff] %v1801_v35  ;;  %v1802_v27 = vpop.f32.mrb[12].mxu1 }
 0x417   : > { %v1803_v46 = vpop.f32.mrb[13].mxu1 }
 0x418   : > { %v1804_v49 = vadd.f32 %v1803_v46, %v1802_v27 }
 0x41a   : > { %1374 = vst [vmem:[%s3476_s27 + $0x30] sm:$0xff] %v1804_v49  ;;  %v1805_v54 = vpop.f32.mrb[14].mxu1 }
 0x41b   : > { %v1806_v56 = vpop.f32.mrb[15].mxu1 }
 0x41c   : > { %v1807_v0 = vadd.f32 %v1806_v56, %v1805_v54 }
 0x41e   : > { %1375 = vst [vmem:[%s3476_s27 + $0x38] sm:$0xff] %v1807_v0  ;;  %v1808_v55 = vpop.f32.mrb[16].mxu1 }
 0x41f   : > { %v1809_v29 = vpop.f32.mrb[17].mxu1 }
 0x420   : > { %v1810_v59 = vadd.f32 %v1809_v29, %v1808_v55 }
 0x422   : > { %1376 = vst [vmem:[%s3476_s27 + $0x40] sm:$0xff] %v1810_v59  ;;  %v1811_v58 = vpop.f32.mrb[18].mxu1 }
 0x423   : > { %v1812_v60 = vpop.f32.mrb[19].mxu1 }
 0x424   : > { %v1813_v28 = vadd.f32 %v1812_v60, %v1811_v58 }
 0x426   : > { %1377 = vst [vmem:[%s3476_s27 + $0x48] sm:$0xff] %v1813_v28  ;;  %v1814_v26 = vpop.f32.mrb[20].mxu1 }
 0x427   : > { %v1815_v11 = vpop.f32.mrb[21].mxu1 }
 0x428   : > { %v1816_v57 = vadd.f32 %v1815_v11, %v1814_v26 }
 0x42a   : > { %1378 = vst [vmem:[%s3476_s27 + $0x50] sm:$0xff] %v1816_v57  ;;  %v1817_v61 = vpop.f32.mrb[22].mxu1 }
 0x42b   : > { %v1818_v1 = vpop.f32.mrb[23].mxu1 }
 0x42c   : > { %v1819_v5 = vadd.f32 %v1818_v1, %v1817_v61 }
 0x42e   : > { %1379 = vst [vmem:[%s3476_s27 + $0x58] sm:$0xff] %v1819_v5  ;;  %v1820_v13 = vpop.f32.mrb[24].mxu1 }
 0x42f   : > { %v1821_v12 = vpop.f32.mrb[25].mxu1 }
 0x430   : > { %v1822_v30 = vadd.f32 %v1821_v12, %v1820_v13 }
 0x432   : > { %1380 = vst [vmem:[%s3476_s27 + $0x60] sm:$0xff] %v1822_v30  ;;  %v1823_v38 = vpop.f32.mrb[26].mxu1 }
 0x433   : > { %v1824_v15 = vpop.f32.mrb[27].mxu1 }
 0x434   : > { %v1825_v17 = vadd.f32 %v1824_v15, %v1823_v38 }
 0x436   : > { %1381 = vst [vmem:[%s3476_s27 + $0x68] sm:$0xff] %v1825_v17  ;;  %v1826_v21 = vpop.f32.mrb[28].mxu1 }
 0x437   : > { %v1827_v50 = vpop.f32.mrb[29].mxu1 }
 0x438   : > { %v1828_v41 = vadd.f32 %v1827_v50, %v1826_v21 }
 0x43a   : > { %1382 = vst [vmem:[%s3476_s27 + $0x70] sm:$0xff] %v1828_v41  ;;  %v1829_v40 = vpop.f32.mrb[30].mxu1 }
 0x43b   : > { %v1830_v44 = vpop.f32.mrb[31].mxu1 }
 0x43c   : > { %v1831_v16 = vadd.f32 %v1830_v44, %v1829_v40 }
 0x43e   : > { %1383 = vst [vmem:[%s3476_s27 + $0x78] sm:$0xff] %v1831_v16 }
 0x43f   : > { %2308 = shalt.err (!%p2305_p10)
}
 0x440   : > { %s2309_s27 = scalar_lea.hbm %s3499_s17, 2048  ;;  %s2313_s3 = scalar_lea.hbm %s3717_s12, 8192 }
 0x441   : > { %p2310_p6 = scmp.ne.s32.totalorder %s3499_s17, %s2309_s27  ;;  %p2314_p1 = scmp.lt.u32.totalorder %s3499_s17, %s3717_s12 }
 0x442   : > { %p2315_p4 = scmp.lt.u32.totalorder %s2313_s3, %s2309_s27  ;;  %p2317_p13 = scmp.lt.u32.totalorder %s2309_s27, %s3499_s17 }
 0x443   : > { %p2311_p12 = pnand %p2310_p6, %p3715_p9 }
 0x444   : > { %p2316_p8 = por %p2315_p4, %p2314_p1 }
 0x445   : > { %p2312_p2 = pneg %p2311_p12 }
 0x446   : > { %p2318_p3 = por %p2317_p13, %p2316_p8 }
 0x448   : > { %p2319_p11 = pnand %p2318_p3, %p2312_p2 }
 0x44a   : > { %2322 = shalt.err (!%p2319_p11)
}
 0x44b   : > { %s2468_s25 = smov 128   ;;  %s2469_s24 = smov 8  }
 0x44c   : > { %1904 = dma.vmem_to_hbm [thread:$0]  (%p3715_p9), %s3501_s28, 2048, %s3499_s17, %s1385_s1, %s2468_s25, %s2468_s25, %s2469_s24  }
 0x44d PF: > { %s3718_s21 = sld [smem:[#allocation19_spill]]  ;;  %p1929_p0 = scmp.ge.s32.totalorder %s2453_s6, 2 }
 0x44e   : > { %s3719_s10 = sld [smem:[#allocation30_spill]] }
 0x453   : > { %s1439_s14 = sand.u32 1, %s3718_s21  }
 0x454   : > { %p3720_p7 = scmp.ne.s32.totalorder %s3719_s10, 0  ;;  %s1440_s27 = scalar_lea.sflag [#allocation4], %s1439_s14 }
 0x456   : > { %p1922_p5 = pnand %p1929_p0, %p3720_p7 }
 0x458   : > { %2392 = dma.done.wait (!%p1922_p5), %s1440_s27, 2048  }
 0x459   : > { %2394 = vsyncadd (!%p1922_p5), %s1440_s27, 4294965248  ;;  %s1449_s4 = scalar_lea.sflag [#allocation12], %s1439_s14 }
 0x45a   : > { %2396 = dma.done.wait (!%p1922_p5), %s1449_s4, 4096  }
 0x45b   : > { %2398 = vsyncadd (!%p1922_p5), %s1449_s4, 4294963200  ;;  %s31_s6 = sadd.s32 1, %s2453_s6   ;;  %s3722_s21 = sld [smem:[#allocation18_spill]] }
 0x45c   : > { %p3533_p10 = scmp.ge.s32.totalorder %s31_s6, 6   ;;  %s3723_s16 = smov %s2704_s22 }
 0x45d   : > { %s3724_s24 = sld [smem:[#allocation20_spill]]  ;;  %s3725_s17 = sld [smem:[#allocation26_spill]] }
 0x45e   : > { %s3726_s1 = sld [smem:[#allocation29_spill]]  ;;  %s3727_s18 = smov %s2405_s19 }
 0x45f   : > { %s3728_s19 = smov %s2409_s20  ;;  %s3729_s20 = smov %s2792_s5 }
 0x460   : > { %s3730_s22 = smov %s2421_s23  ;;  %s3731_s23 = smov %s3723_s16 }
 0x461   : > { %s3732_s25 = smov %s2433_s26  ;;  %s3733_s26 = smov %s2707_s11 }
 0x462   : > { %s3734_s27 = smov %s2445_s29  ;;  %s3735_s28 = smov %s2449_s30 }
 0x463   : > { %s3736_s29 = smov %s3725_s17  ;;  %30 = sbr.rel (!%p3533_p10) target bundleno = 21 (0x15), region = 135 }
 0x464   : > { %s3737_s30 = smov %s3726_s1 }
 0x46a   :  { %1454 = vsyncpa [#allocation3], 1 }
 0x46b   :  { %1456 = vsyncpa [#allocation3 + $0x1], 1 }
 0x46c   :  { %1457 = vsyncpa [#allocation6], 1 }
 0x46d   :  { %1459 = vsyncpa [#allocation6 + $0x1], 1 }
 0x46e   :  { %1460 = vsyncpa [#allocation9], 1 }
 0x46f   :  { %1462 = vsyncpa [#allocation9 + $0x1], 1 }
 0x470   :  { %1463 = vsyncpa [#allocation4], 1 }
 0x471   :  { %1465 = vsyncpa [#allocation4 + $0x1], 1 }
 0x472   :  { %1466 = vsyncpa [#allocation12], 1 }
 0x473   :  { %1468 = vsyncpa [#allocation12 + $0x1], 1 }

</bundles_post_ra>
